<compile_context>
chip_gen: v5e
topology: v5e:2x2
jax: 0.10.0
libtpu: 0.0.40
codegen_flags: <defaults>
</compile_context>

<pallas_src>
import math

import jax
import jax.numpy as jnp
from jax.experimental import pallas as pl
from jax.experimental.pallas import tpu as pltpu

_EPS = 1e-5  # norm eps (nn.InstanceNorm2d / nn.BatchNorm2d default)
_VMEM_LIMIT = 48 * 1024 * 1024  # safely below v7x's 64 MiB physical VMEM


def _round_up(v, m):
    return ((v + m - 1) // m) * m


# ---------------------------------------------------------------------------
# Pallas matmul kernel (all convs reduce to this)
# ---------------------------------------------------------------------------
def _matmul_kernel(x_ref, w_ref, o_ref, acc_ref):
    """One (tm, tn) output tile; contraction tiled along innermost grid axis."""
    k = pl.program_id(2)

    @pl.when(k == 0)
    def _():
        acc_ref[...] = jnp.zeros_like(acc_ref)

    acc_ref[...] += jnp.dot(x_ref[...], w_ref[...],
                            preferred_element_type=jnp.float32)

    @pl.when(k == pl.num_programs(2) - 1)
    def _():
        o_ref[...] = acc_ref[...].astype(o_ref.dtype)   # single store per tile


def _pallas_matmul(x, w, out_dtype=jnp.bfloat16):
    """x: (M, K), w: (K, Cout) -> (M, Cout) in out_dtype.

    bf16 operands on the MXU, f32 accumulation in a VMEM scratch, lane-dense
    (multiple-of-128) output tiles.  Inputs are zero-padded to tile multiples
    and the result sliced back, so arbitrary M / K / Cout are accepted.
    """
    M, K = x.shape
    Kw, Cout = w.shape
    assert K == Kw

    # M tile: multiple of 16 (bf16 sublane packing), capped at 512, sized so
    # the parallel i-axis has >= 2 steps whenever M allows.
    tm = min(512, max(16, _round_up(-(-M // 2), 16)))
    Mp = _round_up(M, tm)
    # Contraction tile: fold the whole K contraction into one MXU pass if it
    # fits; otherwise 512-wide chunks (VMEM-safe on all generations).
    if K <= 1024:
        tk, Kp = K, K
    else:
        tk, Kp = 512, _round_up(K, 512)
    # Output-channel tile: always lane-dense (multiple of 128).
    Np = _round_up(Cout, 128)
    if Np <= 512:
        tn = Np
    elif Np % 512 == 0:
        tn = 512
    elif Np % 256 == 0:
        tn = 256
    else:
        tn = 128

    xb = x.astype(jnp.bfloat16)
    wb = w.astype(jnp.bfloat16)
    if (Mp, Kp) != (M, K):
        xb = jnp.pad(xb, ((0, Mp - M), (0, Kp - K)))
    if (Kp, Np) != (K, Cout):
        wb = jnp.pad(wb, ((0, Kp - K), (0, Np - Cout)))

    out = pl.pallas_call(
        _matmul_kernel,
        out_shape=jax.ShapeDtypeStruct((Mp, Np), out_dtype),
        grid_spec=pltpu.PrefetchScalarGridSpec(
            num_scalar_prefetch=0,
            grid=(Mp // tm, Np // tn, Kp // tk),
            in_specs=[
                pl.BlockSpec((tm, tk), lambda i, j, k: (i, k)),
                pl.BlockSpec((tk, tn), lambda i, j, k: (k, j)),
            ],
            out_specs=pl.BlockSpec((tm, tn), lambda i, j, k: (i, j)),
            scratch_shapes=[pltpu.VMEM((tm, tn), jnp.float32)],
        ),
        compiler_params=pltpu.CompilerParams(
            dimension_semantics=("parallel", "parallel", "arbitrary"),
            vmem_limit_bytes=_VMEM_LIMIT),
    )(xb, wb)

    if (Mp, Np) != (M, Cout):
        out = out[:M, :Cout]
    return out


# ---------------------------------------------------------------------------
# Conv2d (bias-free) via the Pallas matmul
# ---------------------------------------------------------------------------
def conv2d(x, w, stride=1):
    """x: (N, H, W, Cin); w: (kh, kw, Cin, Cout) (HWIO).  Returns bf16.

    1x1 convs: no im2col (strided slice + matmul).
    kxk convs: padding=(k-1)//2, taps folded into one bf16 (M, k*k*Cin) slab.
    """
    kh, kw, Cin, Cout = w.shape
    x = x.astype(jnp.bfloat16)          # slab / matmul operand built in bf16
    if kh == 1 and kw == 1:
        if stride > 1:
            x = x[:, ::stride, ::stride, :]
        N, H, W, _ = x.shape
        out = _pallas_matmul(x.reshape(N * H * W, Cin), w.reshape(Cin, Cout))
        return out.reshape(N, H, W, Cout)

    pad = (kh - 1) // 2
    N, H, W, _ = x.shape
    Ho = (H + 2 * pad - kh) // stride + 1
    Wo = (W + 2 * pad - kw) // stride + 1
    xp = jnp.pad(x, ((0, 0), (pad, pad), (pad, pad), (0, 0)))
    taps = []
    for a in range(kh):
        for b in range(kw):
            taps.append(jax.lax.slice(
                xp, (0, a, b, 0),
                (N, a + (Ho - 1) * stride + 1, b + (Wo - 1) * stride + 1, Cin),
                (1, stride, stride, 1)))
    # bf16 (M, kh*kw*Cin) im2col slab built directly: written once, read once.
    patches = jnp.concatenate(taps, axis=-1).reshape(N * Ho * Wo, kh * kw * Cin)
    out = _pallas_matmul(patches, w.reshape(kh * kw * Cin, Cout))
    return out.reshape(N, Ho, Wo, Cout)


# ---------------------------------------------------------------------------
# Norm kernels: tiled single-pass stats + fused affine/residual/ReLU apply
# ---------------------------------------------------------------------------
def _stats_kernel(x_ref, sum_ref, sq_ref):
    """Per-(sample-group, channel) sum and sum-of-squares over spatial rows."""
    @pl.when(pl.program_id(1) == 0)
    def _():
        sum_ref[...] = jnp.zeros_like(sum_ref)
        sq_ref[...] = jnp.zeros_like(sq_ref)

    x = x_ref[0].astype(jnp.float32)                 # (ts, C)
    sum_ref[0] += jnp.sum(x, axis=0, keepdims=True)
    sq_ref[0] += jnp.sum(x * x, axis=0, keepdims=True)


def _make_apply_kernel(do_relu, has_residual):
    """y = x * scale + shift  (+ residual) (+ ReLU), fully fused, bf16 out."""
    if has_residual:
        def kernel(x_ref, r_ref, scale_ref, shift_ref, o_ref):
            y = (x_ref[0].astype(jnp.float32) * scale_ref[0] + shift_ref[0]
                 + r_ref[0].astype(jnp.float32))
            if do_relu:
                y = jnp.maximum(y, 0.0)
            o_ref[0] = y.astype(o_ref.dtype)
    else:
        def kernel(x_ref, scale_ref, shift_ref, o_ref):
            y = x_ref[0].astype(jnp.float32) * scale_ref[0] + shift_ref[0]
            if do_relu:
                y = jnp.maximum(y, 0.0)
            o_ref[0] = y.astype(o_ref.dtype)
    return kernel


def _spatial_tile(S, C, itemsize):
    """Largest spatial tile (multiple of 8) within ~2 MiB per block."""
    budget = max(8, (2 << 20) // max(1, itemsize * C))
    cap = min(budget, _round_up(S, 8))
    # Prefer a large tile that divides S exactly (no padding pass needed).
    for ts in (1024, 512, 256):
        if ts <= cap and S % ts == 0:
            return ts
    # Otherwise take the largest tile <= cap; the caller zero-pads S.
    for ts in (512, 256, 128, 64, 32, 16, 8):
        if ts <= cap:
            return ts
    return 8


def instance_norm(x, nparams, *, relu, residual=None, out_dtype=jnp.bfloat16):
    """Affine instance norm over H*W, optionally fused with residual + ReLU."""
    N, H, W, C = x.shape
    S = H * W
    ts = _spatial_tile(S, C, x.dtype.itemsize)
    # Keep >= 2 steps on the 'parallel' first grid axis when N == 1 so both
    # v7x TensorCores stay busy.
    G = 2 if (N == 1 and S >= 2 * ts) else 1
    Sp = _round_up(S, G * ts)
    Sg = Sp // G
    NG = N * G

    def to_blocks(a):
        a = a.reshape(N, S, C)
        if Sp != S:
            a = jnp.pad(a, ((0, 0), (0, Sp - S), (0, 0)))  # zeros: stats-safe
        return a.reshape(NG, Sg, C)

    x2 = to_blocks(x)

    x_spec = pl.BlockSpec((1, ts, C), lambda n, s: (n, s, 0))
    nc_spec = pl.BlockSpec((1, 1, C), lambda n, s: (n, 0, 0))

    s_sum, s_sq = pl.pallas_call(
        _stats_kernel,
        out_shape=(jax.ShapeDtypeStruct((NG, 1, C), jnp.float32),
                   jax.ShapeDtypeStruct((NG, 1, C), jnp.float32)),
        grid_spec=pltpu.PrefetchScalarGridSpec(
            num_scalar_prefetch=0,
            grid=(NG, Sg // ts),
            in_specs=[x_spec],
            out_specs=(nc_spec, nc_spec),
        ),
        compiler_params=pltpu.CompilerParams(
            dimension_semantics=("parallel", "arbitrary"),
            vmem_limit_bytes=_VMEM_LIMIT),
    )(x2)

    # Tiny per-(n, c) folding of statistics into an affine; variance clamped
    # at 0 (single-pass E[x^2] - mean^2 formulation).
    s_sum = s_sum.reshape(N, G, C).sum(axis=1)
    s_sq = s_sq.reshape(N, G, C).sum(axis=1)
    mean = s_sum / S
    var = jnp.maximum(s_sq / S - mean * mean, 0.0)
    rstd = jax.lax.rsqrt(var + _EPS)
    scale = nparams["gamma"][None, :] * rstd          # (N, C)
    shift = nparams["beta"][None, :] - mean * scale
    scale = jnp.repeat(scale[:, None, :], G, axis=0)  # (NG, 1, C)
    shift = jnp.repeat(shift[:, None, :], G, axis=0)

    has_res = residual is not None
    args = [x2]
    in_specs = [x_spec]
    if has_res:
        args.append(to_blocks(residual))
        in_specs.append(x_spec)
    args += [scale, shift]
    in_specs += [nc_spec, nc_spec]

    y = pl.pallas_call(
        _make_apply_kernel(relu, has_res),
        out_shape=jax.ShapeDtypeStruct((NG, Sg, C), out_dtype),
        grid_spec=pltpu.PrefetchScalarGridSpec(
            num_scalar_prefetch=0,
            grid=(NG, Sg // ts),
            in_specs=in_specs,
            out_specs=x_spec,
        ),
        compiler_params=pltpu.CompilerParams(
            dimension_semantics=("parallel", "parallel"),
            vmem_limit_bytes=_VMEM_LIMIT),
    )(*args)

    y = y.reshape(N, Sp, C)
    if Sp != S:
        y = y[:, :S, :]
    return y.reshape(N, H, W, C)


# ---------------------------------------------------------------------------
# Bottleneck block (expansion = 4)
# ---------------------------------------------------------------------------
def init_bottleneck_params(key, inplanes, planes, stride):
    def conv_w(k, ksz, cin, cout):
        fan = ksz * ksz * cout
        return math.sqrt(2.0 / fan) * jax.random.normal(
            k, (ksz, ksz, cin, cout), jnp.float32)

    def norm_p(c):
        return {"gamma": jnp.ones((c,), jnp.float32),
                "beta": jnp.zeros((c,), jnp.float32)}

    ks = jax.random.split(key, 4)
    p = {
        "conv1": conv_w(ks[0], 1, inplanes, planes),
        "bn1": norm_p(planes),
        "conv2": conv_w(ks[1], 3, planes, planes),
        "bn2": norm_p(planes),
        "conv3": conv_w(ks[2], 1, planes, 4 * planes),
        "bn3": norm_p(4 * planes),
    }
    if stride != 1 or inplanes != 4 * planes:
        p["down_conv"] = conv_w(ks[3], 1, inplanes, 4 * planes)
        p["down_bn"] = norm_p(4 * planes)
    return p


def bottleneck_forward(p, x, stride):
    out = conv2d(x, p["conv1"], 1)
    out = instance_norm(out, p["bn1"], relu=True)
    out = conv2d(out, p["conv2"], stride)
    out = instance_norm(out, p["bn2"], relu=True)
    out = conv2d(out, p["conv3"], 1)
    if "down_conv" in p:
        residual = conv2d(x, p["down_conv"], stride)
        residual = instance_norm(residual, p["down_bn"], relu=False)
    else:
        residual = x
    # bn3 + residual add + ReLU fused in one Pallas apply kernel.
    return instance_norm(out, p["bn3"], relu=True, residual=residual)


# ---------------------------------------------------------------------------
# Pure-JAX reference (for correctness check)
# ---------------------------------------------------------------------------
def _ref_conv(x, w, stride):
    pad = (w.shape[0] - 1) // 2
    return jax.lax.conv_general_dilated(
        x, w, window_strides=(stride, stride),
        padding=[(pad, pad), (pad, pad)],
        dimension_numbers=("NHWC", "HWIO", "NHWC"),
        precision=jax.lax.Precision.HIGHEST)


def _ref_norm(x, np_, relu, residual=None):
    mean = jnp.mean(x, axis=(1, 2), keepdims=True)
    var = jnp.mean(jnp.square(x - mean), axis=(1, 2), keepdims=True)
    y = (x - mean) * jax.lax.rsqrt(var + _EPS) * np_["gamma"] + np_["beta"]
    if residual is not None:
        y = y + residual
    if relu:
        y = jnp.maximum(y, 0.0)
    return y


def reference_forward(p, x, stride):
    out = _ref_norm(_ref_conv(x, p["conv1"], 1), p["bn1"], True)
    out = _ref_norm(_ref_conv(out, p["conv2"], stride), p["bn2"], True)
    out = _ref_conv(out, p["conv3"], 1)
    residual = x
    if "down_conv" in p:
        residual = _ref_norm(_ref_conv(x, p["down_conv"], stride),
                             p["down_bn"], False)
    return _ref_norm(out, p["bn3"], True, residual=residual)


# ---------------------------------------------------------------------------
if __name__ == "__main__":
    key = jax.random.PRNGKey(0)
    kx, k1, k2 = jax.random.split(key, 3)

    inplanes, planes, stride = 16, 8, 2
    # NHWC; equivalent PyTorch NCHW input shape: (2, 16, 16, 16)
    x = jax.random.normal(kx, (2, 16, 16, inplanes), jnp.float32)

    blk1 = init_bottleneck_params(k1, inplanes, planes, stride)   # downsample path
    blk2 = init_bottleneck_params(k2, 4 * planes, planes, 1)      # identity residual

    @jax.jit
    def fwd(x):
        h = bottleneck_forward(blk1, x, stride)
        return bottleneck_forward(blk2, h, 1)

    out = jax.block_until_ready(fwd(x))

    assert out.shape == (2, 8, 8, 4 * planes), out.shape
    out_f32 = out.astype(jnp.float32)
    assert bool(jnp.isfinite(out_f32).all())

    ref = reference_forward(blk2, reference_forward(blk1, x, stride), 1)
    max_diff = float(jnp.max(jnp.abs(out_f32 - ref)))
    assert bool(jnp.allclose(out_f32, ref, rtol=0.1, atol=0.25)), max_diff

    print("KERNEL_OK")
</pallas_src>

<mosaic_0001>
module attributes {stable_mosaic.version = 11 : i64} {
  func.func @_stats_kernel(%arg0: i32, %arg1: i32, %arg2: memref<1x64x32xbf16, #tpu.memory_space<vmem>>, %arg3: memref<1x1x32xf32, #tpu.memory_space<vmem>>, %arg4: memref<1x1x32xf32, #tpu.memory_space<vmem>>) attributes {dimension_semantics = [#tpu.dimension_semantics<parallel>, #tpu.dimension_semantics<arbitrary>], iteration_bounds = array<i64: 2, 1>, scalar_prefetch = 0 : i64, scratch_operands = 0 : i64, tpu.core_type = #tpu.core_type<tc>, window_params = [{transform_indices = @transform_0, window_bounds = array<i64: 1, 64, 32>}, {transform_indices = @transform_1, window_bounds = array<i64: 1, 1, 32>}, {transform_indices = @transform_2, window_bounds = array<i64: 1, 1, 32>}]} {
    %c0_i32 = arith.constant 0 : i32
    %0 = arith.cmpi eq, %arg1, %c0_i32 : i32
    %1 = arith.extui %0 : i1 to i32
    %c0_i32_0 = arith.constant 0 : i32
    %2 = arith.cmpi ne, %1, %c0_i32_0 : i32
    scf.if %2 {
      %cst_16 = arith.constant 0.000000e+00 : f32
      %23 = vector.broadcast %cst_16 : f32 to vector<1x1x32xf32>
      %c0_17 = arith.constant 0 : index
      %c0_18 = arith.constant 0 : index
      %c0_19 = arith.constant 0 : index
      %24 = vector.load %arg3[%c0_17, %c0_18, %c0_19] : memref<1x1x32xf32, #tpu.memory_space<vmem>>, vector<1x1x32xf32>
      tpu.vector_store %arg3[%c0_17, %c0_18, %c0_19], %23 {strides = array<i32>} : memref<1x1x32xf32, #tpu.memory_space<vmem>>, vector<1x1x32xf32>,
      %cst_20 = arith.constant 0.000000e+00 : f32
      %25 = vector.broadcast %cst_20 : f32 to vector<1x1x32xf32>
      %c0_21 = arith.constant 0 : index
      %c0_22 = arith.constant 0 : index
      %c0_23 = arith.constant 0 : index
      %26 = vector.load %arg4[%c0_21, %c0_22, %c0_23] : memref<1x1x32xf32, #tpu.memory_space<vmem>>, vector<1x1x32xf32>
      tpu.vector_store %arg4[%c0_21, %c0_22, %c0_23], %25 {strides = array<i32>} : memref<1x1x32xf32, #tpu.memory_space<vmem>>, vector<1x1x32xf32>,
    } else {
    }
    %c0 = arith.constant 0 : index
    %c0_1 = arith.constant 0 : index
    %c0_2 = arith.constant 0 : index
    %3 = vector.load %arg2[%c0, %c0_1, %c0_2] : memref<1x64x32xbf16, #tpu.memory_space<vmem>>, vector<1x64x32xbf16>
    %4 = vector.shape_cast %3 : vector<1x64x32xbf16> to vector<64x32xbf16>
    %5 = arith.extf %4 : vector<64x32xbf16> to vector<64x32xf32>
    %c0_3 = arith.constant 0 : index
    %c0_4 = arith.constant 0 : index
    %c0_5 = arith.constant 0 : index
    %6 = vector.load %arg3[%c0_3, %c0_4, %c0_5] : memref<1x1x32xf32, #tpu.memory_space<vmem>>, vector<1x1x32xf32>
    %7 = vector.shape_cast %6 : vector<1x1x32xf32> to vector<1x32xf32>
    %cst = arith.constant dense<0.000000e+00> : vector<32xf32>
    %8 = vector.multi_reduction <add>, %5, %cst [0] : vector<64x32xf32> to vector<32xf32>
    %9 = vector.shape_cast %8 : vector<32xf32> to vector<1x32xf32>
    %10 = arith.addf %7, %9 : vector<1x32xf32>
    %c0_6 = arith.constant 0 : index
    %c0_7 = arith.constant 0 : index
    %c0_8 = arith.constant 0 : index
    %11 = vector.load %arg3[%c0_6, %c0_7, %c0_8] : memref<1x1x32xf32, #tpu.memory_space<vmem>>, vector<1x1x32xf32>
    %12 = vector.shape_cast %11 : vector<1x1x32xf32> to vector<1x32xf32>
    %13 = vector.shape_cast %10 : vector<1x32xf32> to vector<1x1x32xf32>
    tpu.vector_store %arg3[%c0_6, %c0_7, %c0_8], %13 {strides = array<i32>} : memref<1x1x32xf32, #tpu.memory_space<vmem>>, vector<1x1x32xf32>,
    %c0_9 = arith.constant 0 : index
    %c0_10 = arith.constant 0 : index
    %c0_11 = arith.constant 0 : index
    %14 = vector.load %arg4[%c0_9, %c0_10, %c0_11] : memref<1x1x32xf32, #tpu.memory_space<vmem>>, vector<1x1x32xf32>
    %15 = vector.shape_cast %14 : vector<1x1x32xf32> to vector<1x32xf32>
    %16 = arith.mulf %5, %5 : vector<64x32xf32>
    %cst_12 = arith.constant dense<0.000000e+00> : vector<32xf32>
    %17 = vector.multi_reduction <add>, %16, %cst_12 [0] : vector<64x32xf32> to vector<32xf32>
    %18 = vector.shape_cast %17 : vector<32xf32> to vector<1x32xf32>
    %19 = arith.addf %15, %18 : vector<1x32xf32>
    %c0_13 = arith.constant 0 : index
    %c0_14 = arith.constant 0 : index
    %c0_15 = arith.constant 0 : index
    %20 = vector.load %arg4[%c0_13, %c0_14, %c0_15] : memref<1x1x32xf32, #tpu.memory_space<vmem>>, vector<1x1x32xf32>
    %21 = vector.shape_cast %20 : vector<1x1x32xf32> to vector<1x32xf32>
    %22 = vector.shape_cast %19 : vector<1x32xf32> to vector<1x1x32xf32>
    tpu.vector_store %arg4[%c0_13, %c0_14, %c0_15], %22 {strides = array<i32>} : memref<1x1x32xf32, #tpu.memory_space<vmem>>, vector<1x1x32xf32>,
    return
  }
  func.func @transform_0(%arg0: i32, %arg1: i32) -> (i32, i32, i32) {
    %c0_i32 = arith.constant 0 : i32
    %c0_i32_0 = arith.constant 0 : i32
    return %arg0, %arg1, %c0_i32 : i32, i32, i32
  }
  func.func @transform_1(%arg0: i32, %arg1: i32) -> (i32, i32, i32) {
    %c0_i32 = arith.constant 0 : i32
    %c0_i32_0 = arith.constant 0 : i32
    %c0_i32_1 = arith.constant 0 : i32
    return %arg0, %c0_i32, %c0_i32_0 : i32, i32, i32
  }
  func.func @transform_2(%arg0: i32, %arg1: i32) -> (i32, i32, i32) {
    %c0_i32 = arith.constant 0 : i32
    %c0_i32_0 = arith.constant 0 : i32
    %c0_i32_1 = arith.constant 0 : i32
    return %arg0, %c0_i32, %c0_i32_0 : i32, i32, i32
  }
}

module attributes {stable_mosaic.version = 11 : i64} {
  func.func @_matmul_kernel(%arg0: i32, %arg1: i32, %arg2: i32, %arg3: memref<64x16xbf16, #tpu.memory_space<vmem>>, %arg4: memref<16x128xbf16, #tpu.memory_space<vmem>>, %arg5: memref<64x128xbf16, #tpu.memory_space<vmem>>, %arg6: memref<64x128xf32, #tpu.memory_space<vmem>>) attributes {dimension_semantics = [#tpu.dimension_semantics<parallel>, #tpu.dimension_semantics<parallel>, #tpu.dimension_semantics<arbitrary>], iteration_bounds = array<i64: 2, 1, 1>, scalar_prefetch = 0 : i64, scratch_operands = 1 : i64, tpu.core_type = #tpu.core_type<tc>, window_params = [{transform_indices = @transform_0, window_bounds = array<i64: 64, 16>}, {transform_indices = @transform_1, window_bounds = array<i64: 16, 128>}, {transform_indices = @transform_2, window_bounds = array<i64: 64, 128>}]} {
    %c0_i32 = arith.constant 0 : i32
    %0 = arith.cmpi eq, %arg2, %c0_i32 : i32
    %1 = arith.extui %0 : i1 to i32
    %c0_i32_0 = arith.constant 0 : i32
    %2 = arith.cmpi ne, %1, %c0_i32_0 : i32
    scf.if %2 {
      %cst_10 = arith.constant 0.000000e+00 : f32
      %12 = vector.broadcast %cst_10 : f32 to vector<64x128xf32>
      %c0_11 = arith.constant 0 : index
      %c0_12 = arith.constant 0 : index
      %13 = vector.load %arg6[%c0_11, %c0_12] : memref<64x128xf32, #tpu.memory_space<vmem>>, vector<64x128xf32>
      tpu.vector_store %arg6[%c0_11, %c0_12], %12 {strides = array<i32>} : memref<64x128xf32, #tpu.memory_space<vmem>>, vector<64x128xf32>,
    } else {
    }
    %c0 = arith.constant 0 : index
    %c0_1 = arith.constant 0 : index
    %3 = vector.load %arg6[%c0, %c0_1] : memref<64x128xf32, #tpu.memory_space<vmem>>, vector<64x128xf32>
    %c0_2 = arith.constant 0 : index
    %c0_3 = arith.constant 0 : index
    %4 = vector.load %arg3[%c0_2, %c0_3] : memref<64x16xbf16, #tpu.memory_space<vmem>>, vector<64x16xbf16>
    %c0_4 = arith.constant 0 : index
    %c0_5 = arith.constant 0 : index
    %5 = vector.load %arg4[%c0_4, %c0_5] : memref<16x128xbf16, #tpu.memory_space<vmem>>, vector<16x128xbf16>
    %cst = arith.constant dense<0.000000e+00> : vector<64x128xf32>
    %6 = tpu.matmul %4, %5, %cst {dimension_numbers = #tpu.dot_dimension_numbers<[1], [0], [0], [1], [0, 0, 1, 1], [], []>} : vector<64x16xbf16>, vector<16x128xbf16>, vector<64x128xf32> -> vector<64x128xf32>
    %7 = arith.addf %3, %6 : vector<64x128xf32>
    %c0_6 = arith.constant 0 : index
    %c0_7 = arith.constant 0 : index
    %8 = vector.load %arg6[%c0_6, %c0_7] : memref<64x128xf32, #tpu.memory_space<vmem>>, vector<64x128xf32>
    tpu.vector_store %arg6[%c0_6, %c0_7], %7 {strides = array<i32>} : memref<64x128xf32, #tpu.memory_space<vmem>>, vector<64x128xf32>,
    %c0_i32_8 = arith.constant 0 : i32
    %9 = arith.cmpi eq, %arg2, %c0_i32_8 : i32
    %10 = arith.extui %9 : i1 to i32
    %c0_i32_9 = arith.constant 0 : i32
    %11 = arith.cmpi ne, %10, %c0_i32_9 : i32
    scf.if %11 {
      %c0_10 = arith.constant 0 : index
      %c0_11 = arith.constant 0 : index
      %12 = vector.load %arg6[%c0_10, %c0_11] : memref<64x128xf32, #tpu.memory_space<vmem>>, vector<64x128xf32>
      %13 = arith.truncf %12 : vector<64x128xf32> to vector<64x128xbf16>
      %c0_12 = arith.constant 0 : index
      %c0_13 = arith.constant 0 : index
      %14 = vector.load %arg5[%c0_12, %c0_13] : memref<64x128xbf16, #tpu.memory_space<vmem>>, vector<64x128xbf16>
      tpu.vector_store %arg5[%c0_12, %c0_13], %13 {strides = array<i32>} : memref<64x128xbf16, #tpu.memory_space<vmem>>, vector<64x128xbf16>,
    } else {
    }
    return
  }
  func.func @transform_0(%arg0: i32, %arg1: i32, %arg2: i32) -> (i32, i32) {
    %c0_i32 = arith.constant 0 : i32
    return %arg0, %arg2 : i32, i32
  }
  func.func @transform_1(%arg0: i32, %arg1: i32, %arg2: i32) -> (i32, i32) {
    %c0_i32 = arith.constant 0 : i32
    return %arg2, %arg1 : i32, i32
  }
  func.func @transform_2(%arg0: i32, %arg1: i32, %arg2: i32) -> (i32, i32) {
    %c0_i32 = arith.constant 0 : i32
    return %arg0, %arg1 : i32, i32
  }
}

module attributes {stable_mosaic.version = 11 : i64} {
  func.func @_matmul_kernel(%arg0: i32, %arg1: i32, %arg2: i32, %arg3: memref<256x16xbf16, #tpu.memory_space<vmem>>, %arg4: memref<16x128xbf16, #tpu.memory_space<vmem>>, %arg5: memref<256x128xbf16, #tpu.memory_space<vmem>>, %arg6: memref<256x128xf32, #tpu.memory_space<vmem>>) attributes {dimension_semantics = [#tpu.dimension_semantics<parallel>, #tpu.dimension_semantics<parallel>, #tpu.dimension_semantics<arbitrary>], iteration_bounds = array<i64: 2, 1, 1>, scalar_prefetch = 0 : i64, scratch_operands = 1 : i64, tpu.core_type = #tpu.core_type<tc>, window_params = [{transform_indices = @transform_0, window_bounds = array<i64: 256, 16>}, {transform_indices = @transform_1, window_bounds = array<i64: 16, 128>}, {transform_indices = @transform_2, window_bounds = array<i64: 256, 128>}]} {
    %c0_i32 = arith.constant 0 : i32
    %0 = arith.cmpi eq, %arg2, %c0_i32 : i32
    %1 = arith.extui %0 : i1 to i32
    %c0_i32_0 = arith.constant 0 : i32
    %2 = arith.cmpi ne, %1, %c0_i32_0 : i32
    scf.if %2 {
      %cst_10 = arith.constant 0.000000e+00 : f32
      %12 = vector.broadcast %cst_10 : f32 to vector<256x128xf32>
      %c0_11 = arith.constant 0 : index
      %c0_12 = arith.constant 0 : index
      %13 = vector.load %arg6[%c0_11, %c0_12] : memref<256x128xf32, #tpu.memory_space<vmem>>, vector<256x128xf32>
      tpu.vector_store %arg6[%c0_11, %c0_12], %12 {strides = array<i32>} : memref<256x128xf32, #tpu.memory_space<vmem>>, vector<256x128xf32>,
    } else {
    }
    %c0 = arith.constant 0 : index
    %c0_1 = arith.constant 0 : index
    %3 = vector.load %arg6[%c0, %c0_1] : memref<256x128xf32, #tpu.memory_space<vmem>>, vector<256x128xf32>
    %c0_2 = arith.constant 0 : index
    %c0_3 = arith.constant 0 : index
    %4 = vector.load %arg3[%c0_2, %c0_3] : memref<256x16xbf16, #tpu.memory_space<vmem>>, vector<256x16xbf16>
    %c0_4 = arith.constant 0 : index
    %c0_5 = arith.constant 0 : index
    %5 = vector.load %arg4[%c0_4, %c0_5] : memref<16x128xbf16, #tpu.memory_space<vmem>>, vector<16x128xbf16>
    %cst = arith.constant dense<0.000000e+00> : vector<256x128xf32>
    %6 = tpu.matmul %4, %5, %cst {dimension_numbers = #tpu.dot_dimension_numbers<[1], [0], [0], [1], [0, 0, 1, 1], [], []>} : vector<256x16xbf16>, vector<16x128xbf16>, vector<256x128xf32> -> vector<256x128xf32>
    %7 = arith.addf %3, %6 : vector<256x128xf32>
    %c0_6 = arith.constant 0 : index
    %c0_7 = arith.constant 0 : index
    %8 = vector.load %arg6[%c0_6, %c0_7] : memref<256x128xf32, #tpu.memory_space<vmem>>, vector<256x128xf32>
    tpu.vector_store %arg6[%c0_6, %c0_7], %7 {strides = array<i32>} : memref<256x128xf32, #tpu.memory_space<vmem>>, vector<256x128xf32>,
    %c0_i32_8 = arith.constant 0 : i32
    %9 = arith.cmpi eq, %arg2, %c0_i32_8 : i32
    %10 = arith.extui %9 : i1 to i32
    %c0_i32_9 = arith.constant 0 : i32
    %11 = arith.cmpi ne, %10, %c0_i32_9 : i32
    scf.if %11 {
      %c0_10 = arith.constant 0 : index
      %c0_11 = arith.constant 0 : index
      %12 = vector.load %arg6[%c0_10, %c0_11] : memref<256x128xf32, #tpu.memory_space<vmem>>, vector<256x128xf32>
      %13 = arith.truncf %12 : vector<256x128xf32> to vector<256x128xbf16>
      %c0_12 = arith.constant 0 : index
      %c0_13 = arith.constant 0 : index
      %14 = vector.load %arg5[%c0_12, %c0_13] : memref<256x128xbf16, #tpu.memory_space<vmem>>, vector<256x128xbf16>
      tpu.vector_store %arg5[%c0_12, %c0_13], %13 {strides = array<i32>} : memref<256x128xbf16, #tpu.memory_space<vmem>>, vector<256x128xbf16>,
    } else {
    }
    return
  }
  func.func @transform_0(%arg0: i32, %arg1: i32, %arg2: i32) -> (i32, i32) {
    %c0_i32 = arith.constant 0 : i32
    return %arg0, %arg2 : i32, i32
  }
  func.func @transform_1(%arg0: i32, %arg1: i32, %arg2: i32) -> (i32, i32) {
    %c0_i32 = arith.constant 0 : i32
    return %arg2, %arg1 : i32, i32
  }
  func.func @transform_2(%arg0: i32, %arg1: i32, %arg2: i32) -> (i32, i32) {
    %c0_i32 = arith.constant 0 : i32
    return %arg0, %arg1 : i32, i32
  }
}

module attributes {stable_mosaic.version = 11 : i64} {
  func.func @kernel(%arg0: i32, %arg1: i32, %arg2: memref<1x64x32xbf16, #tpu.memory_space<vmem>>, %arg3: memref<1x1x32xf32, #tpu.memory_space<vmem>>, %arg4: memref<1x1x32xf32, #tpu.memory_space<vmem>>, %arg5: memref<1x64x32xbf16, #tpu.memory_space<vmem>>) attributes {dimension_semantics = [#tpu.dimension_semantics<parallel>, #tpu.dimension_semantics<parallel>], iteration_bounds = array<i64: 2, 1>, scalar_prefetch = 0 : i64, scratch_operands = 0 : i64, tpu.core_type = #tpu.core_type<tc>, window_params = [{transform_indices = @transform_0, window_bounds = array<i64: 1, 64, 32>}, {transform_indices = @transform_1, window_bounds = array<i64: 1, 1, 32>}, {transform_indices = @transform_2, window_bounds = array<i64: 1, 1, 32>}, {transform_indices = @transform_3, window_bounds = array<i64: 1, 64, 32>}]} {
    %c0 = arith.constant 0 : index
    %c0_0 = arith.constant 0 : index
    %c0_1 = arith.constant 0 : index
    %0 = vector.load %arg2[%c0, %c0_0, %c0_1] : memref<1x64x32xbf16, #tpu.memory_space<vmem>>, vector<1x64x32xbf16>
    %1 = vector.shape_cast %0 : vector<1x64x32xbf16> to vector<64x32xbf16>
    %2 = arith.extf %1 : vector<64x32xbf16> to vector<64x32xf32>
    %c0_2 = arith.constant 0 : index
    %c0_3 = arith.constant 0 : index
    %c0_4 = arith.constant 0 : index
    %3 = vector.load %arg3[%c0_2, %c0_3, %c0_4] : memref<1x1x32xf32, #tpu.memory_space<vmem>>, vector<1x1x32xf32>
    %4 = vector.shape_cast %3 : vector<1x1x32xf32> to vector<1x32xf32>
    %5 = vector.broadcast %4 : vector<1x32xf32> to vector<64x32xf32>
    %6 = arith.mulf %2, %5 : vector<64x32xf32>
    %c0_5 = arith.constant 0 : index
    %c0_6 = arith.constant 0 : index
    %c0_7 = arith.constant 0 : index
    %7 = vector.load %arg4[%c0_5, %c0_6, %c0_7] : memref<1x1x32xf32, #tpu.memory_space<vmem>>, vector<1x1x32xf32>
    %8 = vector.shape_cast %7 : vector<1x1x32xf32> to vector<1x32xf32>
    %9 = vector.broadcast %8 : vector<1x32xf32> to vector<64x32xf32>
    %10 = arith.addf %6, %9 : vector<64x32xf32>
    %11 = arith.truncf %10 : vector<64x32xf32> to vector<64x32xbf16>
    %c0_8 = arith.constant 0 : index
    %c0_9 = arith.constant 0 : index
    %c0_10 = arith.constant 0 : index
    %12 = vector.load %arg5[%c0_8, %c0_9, %c0_10] : memref<1x64x32xbf16, #tpu.memory_space<vmem>>, vector<1x64x32xbf16>
    %13 = vector.shape_cast %12 : vector<1x64x32xbf16> to vector<64x32xbf16>
    %14 = vector.shape_cast %11 : vector<64x32xbf16> to vector<1x64x32xbf16>
    tpu.vector_store %arg5[%c0_8, %c0_9, %c0_10], %14 {strides = array<i32>} : memref<1x64x32xbf16, #tpu.memory_space<vmem>>, vector<1x64x32xbf16>,
    return
  }
  func.func @transform_0(%arg0: i32, %arg1: i32) -> (i32, i32, i32) {
    %c0_i32 = arith.constant 0 : i32
    %c0_i32_0 = arith.constant 0 : i32
    return %arg0, %arg1, %c0_i32 : i32, i32, i32
  }
  func.func @transform_1(%arg0: i32, %arg1: i32) -> (i32, i32, i32) {
    %c0_i32 = arith.constant 0 : i32
    %c0_i32_0 = arith.constant 0 : i32
    %c0_i32_1 = arith.constant 0 : i32
    return %arg0, %c0_i32, %c0_i32_0 : i32, i32, i32
  }
  func.func @transform_2(%arg0: i32, %arg1: i32) -> (i32, i32, i32) {
    %c0_i32 = arith.constant 0 : i32
    %c0_i32_0 = arith.constant 0 : i32
    %c0_i32_1 = arith.constant 0 : i32
    return %arg0, %c0_i32, %c0_i32_0 : i32, i32, i32
  }
  func.func @transform_3(%arg0: i32, %arg1: i32) -> (i32, i32, i32) {
    %c0_i32 = arith.constant 0 : i32
    %c0_i32_0 = arith.constant 0 : i32
    return %arg0, %arg1, %c0_i32 : i32, i32, i32
  }
}

module attributes {stable_mosaic.version = 11 : i64} {
  func.func @_stats_kernel(%arg0: i32, %arg1: i32, %arg2: memref<1x256x8xbf16, #tpu.memory_space<vmem>>, %arg3: memref<1x1x8xf32, #tpu.memory_space<vmem>>, %arg4: memref<1x1x8xf32, #tpu.memory_space<vmem>>) attributes {dimension_semantics = [#tpu.dimension_semantics<parallel>, #tpu.dimension_semantics<arbitrary>], iteration_bounds = array<i64: 2, 1>, scalar_prefetch = 0 : i64, scratch_operands = 0 : i64, tpu.core_type = #tpu.core_type<tc>, window_params = [{transform_indices = @transform_0, window_bounds = array<i64: 1, 256, 8>}, {transform_indices = @transform_1, window_bounds = array<i64: 1, 1, 8>}, {transform_indices = @transform_2, window_bounds = array<i64: 1, 1, 8>}]} {
    %c0_i32 = arith.constant 0 : i32
    %0 = arith.cmpi eq, %arg1, %c0_i32 : i32
    %1 = arith.extui %0 : i1 to i32
    %c0_i32_0 = arith.constant 0 : i32
    %2 = arith.cmpi ne, %1, %c0_i32_0 : i32
    scf.if %2 {
      %cst_16 = arith.constant 0.000000e+00 : f32
      %23 = vector.broadcast %cst_16 : f32 to vector<1x1x8xf32>
      %c0_17 = arith.constant 0 : index
      %c0_18 = arith.constant 0 : index
      %c0_19 = arith.constant 0 : index
      %24 = vector.load %arg3[%c0_17, %c0_18, %c0_19] : memref<1x1x8xf32, #tpu.memory_space<vmem>>, vector<1x1x8xf32>
      tpu.vector_store %arg3[%c0_17, %c0_18, %c0_19], %23 {strides = array<i32>} : memref<1x1x8xf32, #tpu.memory_space<vmem>>, vector<1x1x8xf32>,
      %cst_20 = arith.constant 0.000000e+00 : f32
      %25 = vector.broadcast %cst_20 : f32 to vector<1x1x8xf32>
      %c0_21 = arith.constant 0 : index
      %c0_22 = arith.constant 0 : index
      %c0_23 = arith.constant 0 : index
      %26 = vector.load %arg4[%c0_21, %c0_22, %c0_23] : memref<1x1x8xf32, #tpu.memory_space<vmem>>, vector<1x1x8xf32>
      tpu.vector_store %arg4[%c0_21, %c0_22, %c0_23], %25 {strides = array<i32>} : memref<1x1x8xf32, #tpu.memory_space<vmem>>, vector<1x1x8xf32>,
    } else {
    }
    %c0 = arith.constant 0 : index
    %c0_1 = arith.constant 0 : index
    %c0_2 = arith.constant 0 : index
    %3 = vector.load %arg2[%c0, %c0_1, %c0_2] : memref<1x256x8xbf16, #tpu.memory_space<vmem>>, vector<1x256x8xbf16>
    %4 = vector.shape_cast %3 : vector<1x256x8xbf16> to vector<256x8xbf16>
    %5 = arith.extf %4 : vector<256x8xbf16> to vector<256x8xf32>
    %c0_3 = arith.constant 0 : index
    %c0_4 = arith.constant 0 : index
    %c0_5 = arith.constant 0 : index
    %6 = vector.load %arg3[%c0_3, %c0_4, %c0_5] : memref<1x1x8xf32, #tpu.memory_space<vmem>>, vector<1x1x8xf32>
    %7 = vector.shape_cast %6 : vector<1x1x8xf32> to vector<1x8xf32>
    %cst = arith.constant dense<0.000000e+00> : vector<8xf32>
    %8 = vector.multi_reduction <add>, %5, %cst [0] : vector<256x8xf32> to vector<8xf32>
    %9 = vector.shape_cast %8 : vector<8xf32> to vector<1x8xf32>
    %10 = arith.addf %7, %9 : vector<1x8xf32>
    %c0_6 = arith.constant 0 : index
    %c0_7 = arith.constant 0 : index
    %c0_8 = arith.constant 0 : index
    %11 = vector.load %arg3[%c0_6, %c0_7, %c0_8] : memref<1x1x8xf32, #tpu.memory_space<vmem>>, vector<1x1x8xf32>
    %12 = vector.shape_cast %11 : vector<1x1x8xf32> to vector<1x8xf32>
    %13 = vector.shape_cast %10 : vector<1x8xf32> to vector<1x1x8xf32>
    tpu.vector_store %arg3[%c0_6, %c0_7, %c0_8], %13 {strides = array<i32>} : memref<1x1x8xf32, #tpu.memory_space<vmem>>, vector<1x1x8xf32>,
    %c0_9 = arith.constant 0 : index
    %c0_10 = arith.constant 0 : index
    %c0_11 = arith.constant 0 : index
    %14 = vector.load %arg4[%c0_9, %c0_10, %c0_11] : memref<1x1x8xf32, #tpu.memory_space<vmem>>, vector<1x1x8xf32>
    %15 = vector.shape_cast %14 : vector<1x1x8xf32> to vector<1x8xf32>
    %16 = arith.mulf %5, %5 : vector<256x8xf32>
    %cst_12 = arith.constant dense<0.000000e+00> : vector<8xf32>
    %17 = vector.multi_reduction <add>, %16, %cst_12 [0] : vector<256x8xf32> to vector<8xf32>
    %18 = vector.shape_cast %17 : vector<8xf32> to vector<1x8xf32>
    %19 = arith.addf %15, %18 : vector<1x8xf32>
    %c0_13 = arith.constant 0 : index
    %c0_14 = arith.constant 0 : index
    %c0_15 = arith.constant 0 : index
    %20 = vector.load %arg4[%c0_13, %c0_14, %c0_15] : memref<1x1x8xf32, #tpu.memory_space<vmem>>, vector<1x1x8xf32>
    %21 = vector.shape_cast %20 : vector<1x1x8xf32> to vector<1x8xf32>
    %22 = vector.shape_cast %19 : vector<1x8xf32> to vector<1x1x8xf32>
    tpu.vector_store %arg4[%c0_13, %c0_14, %c0_15], %22 {strides = array<i32>} : memref<1x1x8xf32, #tpu.memory_space<vmem>>, vector<1x1x8xf32>,
    return
  }
  func.func @transform_0(%arg0: i32, %arg1: i32) -> (i32, i32, i32) {
    %c0_i32 = arith.constant 0 : i32
    %c0_i32_0 = arith.constant 0 : i32
    return %arg0, %arg1, %c0_i32 : i32, i32, i32
  }
  func.func @transform_1(%arg0: i32, %arg1: i32) -> (i32, i32, i32) {
    %c0_i32 = arith.constant 0 : i32
    %c0_i32_0 = arith.constant 0 : i32
    %c0_i32_1 = arith.constant 0 : i32
    return %arg0, %c0_i32, %c0_i32_0 : i32, i32, i32
  }
  func.func @transform_2(%arg0: i32, %arg1: i32) -> (i32, i32, i32) {
    %c0_i32 = arith.constant 0 : i32
    %c0_i32_0 = arith.constant 0 : i32
    %c0_i32_1 = arith.constant 0 : i32
    return %arg0, %c0_i32, %c0_i32_0 : i32, i32, i32
  }
}

module attributes {stable_mosaic.version = 11 : i64} {
  func.func @kernel(%arg0: i32, %arg1: i32, %arg2: memref<1x256x8xbf16, #tpu.memory_space<vmem>>, %arg3: memref<1x1x8xf32, #tpu.memory_space<vmem>>, %arg4: memref<1x1x8xf32, #tpu.memory_space<vmem>>, %arg5: memref<1x256x8xbf16, #tpu.memory_space<vmem>>) attributes {dimension_semantics = [#tpu.dimension_semantics<parallel>, #tpu.dimension_semantics<parallel>], iteration_bounds = array<i64: 2, 1>, scalar_prefetch = 0 : i64, scratch_operands = 0 : i64, tpu.core_type = #tpu.core_type<tc>, window_params = [{transform_indices = @transform_0, window_bounds = array<i64: 1, 256, 8>}, {transform_indices = @transform_1, window_bounds = array<i64: 1, 1, 8>}, {transform_indices = @transform_2, window_bounds = array<i64: 1, 1, 8>}, {transform_indices = @transform_3, window_bounds = array<i64: 1, 256, 8>}]} {
    %c0 = arith.constant 0 : index
    %c0_0 = arith.constant 0 : index
    %c0_1 = arith.constant 0 : index
    %0 = vector.load %arg2[%c0, %c0_0, %c0_1] : memref<1x256x8xbf16, #tpu.memory_space<vmem>>, vector<1x256x8xbf16>
    %1 = vector.shape_cast %0 : vector<1x256x8xbf16> to vector<256x8xbf16>
    %2 = arith.extf %1 : vector<256x8xbf16> to vector<256x8xf32>
    %c0_2 = arith.constant 0 : index
    %c0_3 = arith.constant 0 : index
    %c0_4 = arith.constant 0 : index
    %3 = vector.load %arg3[%c0_2, %c0_3, %c0_4] : memref<1x1x8xf32, #tpu.memory_space<vmem>>, vector<1x1x8xf32>
    %4 = vector.shape_cast %3 : vector<1x1x8xf32> to vector<1x8xf32>
    %5 = vector.broadcast %4 : vector<1x8xf32> to vector<256x8xf32>
    %6 = arith.mulf %2, %5 : vector<256x8xf32>
    %c0_5 = arith.constant 0 : index
    %c0_6 = arith.constant 0 : index
    %c0_7 = arith.constant 0 : index
    %7 = vector.load %arg4[%c0_5, %c0_6, %c0_7] : memref<1x1x8xf32, #tpu.memory_space<vmem>>, vector<1x1x8xf32>
    %8 = vector.shape_cast %7 : vector<1x1x8xf32> to vector<1x8xf32>
    %9 = vector.broadcast %8 : vector<1x8xf32> to vector<256x8xf32>
    %10 = arith.addf %6, %9 : vector<256x8xf32>
    %cst = arith.constant 0.000000e+00 : f32
    %11 = vector.broadcast %cst : f32 to vector<256x8xf32>
    %12 = arith.maximumf %10, %11 : vector<256x8xf32>
    %13 = arith.truncf %12 : vector<256x8xf32> to vector<256x8xbf16>
    %c0_8 = arith.constant 0 : index
    %c0_9 = arith.constant 0 : index
    %c0_10 = arith.constant 0 : index
    %14 = vector.load %arg5[%c0_8, %c0_9, %c0_10] : memref<1x256x8xbf16, #tpu.memory_space<vmem>>, vector<1x256x8xbf16>
    %15 = vector.shape_cast %14 : vector<1x256x8xbf16> to vector<256x8xbf16>
    %16 = vector.shape_cast %13 : vector<256x8xbf16> to vector<1x256x8xbf16>
    tpu.vector_store %arg5[%c0_8, %c0_9, %c0_10], %16 {strides = array<i32>} : memref<1x256x8xbf16, #tpu.memory_space<vmem>>, vector<1x256x8xbf16>,
    return
  }
  func.func @transform_0(%arg0: i32, %arg1: i32) -> (i32, i32, i32) {
    %c0_i32 = arith.constant 0 : i32
    %c0_i32_0 = arith.constant 0 : i32
    return %arg0, %arg1, %c0_i32 : i32, i32, i32
  }
  func.func @transform_1(%arg0: i32, %arg1: i32) -> (i32, i32, i32) {
    %c0_i32 = arith.constant 0 : i32
    %c0_i32_0 = arith.constant 0 : i32
    %c0_i32_1 = arith.constant 0 : i32
    return %arg0, %c0_i32, %c0_i32_0 : i32, i32, i32
  }
  func.func @transform_2(%arg0: i32, %arg1: i32) -> (i32, i32, i32) {
    %c0_i32 = arith.constant 0 : i32
    %c0_i32_0 = arith.constant 0 : i32
    %c0_i32_1 = arith.constant 0 : i32
    return %arg0, %c0_i32, %c0_i32_0 : i32, i32, i32
  }
  func.func @transform_3(%arg0: i32, %arg1: i32) -> (i32, i32, i32) {
    %c0_i32 = arith.constant 0 : i32
    %c0_i32_0 = arith.constant 0 : i32
    return %arg0, %arg1, %c0_i32 : i32, i32, i32
  }
}

module attributes {stable_mosaic.version = 11 : i64} {
  func.func @_stats_kernel(%arg0: i32, %arg1: i32, %arg2: memref<1x64x8xbf16, #tpu.memory_space<vmem>>, %arg3: memref<1x1x8xf32, #tpu.memory_space<vmem>>, %arg4: memref<1x1x8xf32, #tpu.memory_space<vmem>>) attributes {dimension_semantics = [#tpu.dimension_semantics<parallel>, #tpu.dimension_semantics<arbitrary>], iteration_bounds = array<i64: 2, 1>, scalar_prefetch = 0 : i64, scratch_operands = 0 : i64, tpu.core_type = #tpu.core_type<tc>, window_params = [{transform_indices = @transform_0, window_bounds = array<i64: 1, 64, 8>}, {transform_indices = @transform_1, window_bounds = array<i64: 1, 1, 8>}, {transform_indices = @transform_2, window_bounds = array<i64: 1, 1, 8>}]} {
    %c0_i32 = arith.constant 0 : i32
    %0 = arith.cmpi eq, %arg1, %c0_i32 : i32
    %1 = arith.extui %0 : i1 to i32
    %c0_i32_0 = arith.constant 0 : i32
    %2 = arith.cmpi ne, %1, %c0_i32_0 : i32
    scf.if %2 {
      %cst_16 = arith.constant 0.000000e+00 : f32
      %23 = vector.broadcast %cst_16 : f32 to vector<1x1x8xf32>
      %c0_17 = arith.constant 0 : index
      %c0_18 = arith.constant 0 : index
      %c0_19 = arith.constant 0 : index
      %24 = vector.load %arg3[%c0_17, %c0_18, %c0_19] : memref<1x1x8xf32, #tpu.memory_space<vmem>>, vector<1x1x8xf32>
      tpu.vector_store %arg3[%c0_17, %c0_18, %c0_19], %23 {strides = array<i32>} : memref<1x1x8xf32, #tpu.memory_space<vmem>>, vector<1x1x8xf32>,
      %cst_20 = arith.constant 0.000000e+00 : f32
      %25 = vector.broadcast %cst_20 : f32 to vector<1x1x8xf32>
      %c0_21 = arith.constant 0 : index
      %c0_22 = arith.constant 0 : index
      %c0_23 = arith.constant 0 : index
      %26 = vector.load %arg4[%c0_21, %c0_22, %c0_23] : memref<1x1x8xf32, #tpu.memory_space<vmem>>, vector<1x1x8xf32>
      tpu.vector_store %arg4[%c0_21, %c0_22, %c0_23], %25 {strides = array<i32>} : memref<1x1x8xf32, #tpu.memory_space<vmem>>, vector<1x1x8xf32>,
    } else {
    }
    %c0 = arith.constant 0 : index
    %c0_1 = arith.constant 0 : index
    %c0_2 = arith.constant 0 : index
    %3 = vector.load %arg2[%c0, %c0_1, %c0_2] : memref<1x64x8xbf16, #tpu.memory_space<vmem>>, vector<1x64x8xbf16>
    %4 = vector.shape_cast %3 : vector<1x64x8xbf16> to vector<64x8xbf16>
    %5 = arith.extf %4 : vector<64x8xbf16> to vector<64x8xf32>
    %c0_3 = arith.constant 0 : index
    %c0_4 = arith.constant 0 : index
    %c0_5 = arith.constant 0 : index
    %6 = vector.load %arg3[%c0_3, %c0_4, %c0_5] : memref<1x1x8xf32, #tpu.memory_space<vmem>>, vector<1x1x8xf32>
    %7 = vector.shape_cast %6 : vector<1x1x8xf32> to vector<1x8xf32>
    %cst = arith.constant dense<0.000000e+00> : vector<8xf32>
    %8 = vector.multi_reduction <add>, %5, %cst [0] : vector<64x8xf32> to vector<8xf32>
    %9 = vector.shape_cast %8 : vector<8xf32> to vector<1x8xf32>
    %10 = arith.addf %7, %9 : vector<1x8xf32>
    %c0_6 = arith.constant 0 : index
    %c0_7 = arith.constant 0 : index
    %c0_8 = arith.constant 0 : index
    %11 = vector.load %arg3[%c0_6, %c0_7, %c0_8] : memref<1x1x8xf32, #tpu.memory_space<vmem>>, vector<1x1x8xf32>
    %12 = vector.shape_cast %11 : vector<1x1x8xf32> to vector<1x8xf32>
    %13 = vector.shape_cast %10 : vector<1x8xf32> to vector<1x1x8xf32>
    tpu.vector_store %arg3[%c0_6, %c0_7, %c0_8], %13 {strides = array<i32>} : memref<1x1x8xf32, #tpu.memory_space<vmem>>, vector<1x1x8xf32>,
    %c0_9 = arith.constant 0 : index
    %c0_10 = arith.constant 0 : index
    %c0_11 = arith.constant 0 : index
    %14 = vector.load %arg4[%c0_9, %c0_10, %c0_11] : memref<1x1x8xf32, #tpu.memory_space<vmem>>, vector<1x1x8xf32>
    %15 = vector.shape_cast %14 : vector<1x1x8xf32> to vector<1x8xf32>
    %16 = arith.mulf %5, %5 : vector<64x8xf32>
    %cst_12 = arith.constant dense<0.000000e+00> : vector<8xf32>
    %17 = vector.multi_reduction <add>, %16, %cst_12 [0] : vector<64x8xf32> to vector<8xf32>
    %18 = vector.shape_cast %17 : vector<8xf32> to vector<1x8xf32>
    %19 = arith.addf %15, %18 : vector<1x8xf32>
    %c0_13 = arith.constant 0 : index
    %c0_14 = arith.constant 0 : index
    %c0_15 = arith.constant 0 : index
    %20 = vector.load %arg4[%c0_13, %c0_14, %c0_15] : memref<1x1x8xf32, #tpu.memory_space<vmem>>, vector<1x1x8xf32>
    %21 = vector.shape_cast %20 : vector<1x1x8xf32> to vector<1x8xf32>
    %22 = vector.shape_cast %19 : vector<1x8xf32> to vector<1x1x8xf32>
    tpu.vector_store %arg4[%c0_13, %c0_14, %c0_15], %22 {strides = array<i32>} : memref<1x1x8xf32, #tpu.memory_space<vmem>>, vector<1x1x8xf32>,
    return
  }
  func.func @transform_0(%arg0: i32, %arg1: i32) -> (i32, i32, i32) {
    %c0_i32 = arith.constant 0 : i32
    %c0_i32_0 = arith.constant 0 : i32
    return %arg0, %arg1, %c0_i32 : i32, i32, i32
  }
  func.func @transform_1(%arg0: i32, %arg1: i32) -> (i32, i32, i32) {
    %c0_i32 = arith.constant 0 : i32
    %c0_i32_0 = arith.constant 0 : i32
    %c0_i32_1 = arith.constant 0 : i32
    return %arg0, %c0_i32, %c0_i32_0 : i32, i32, i32
  }
  func.func @transform_2(%arg0: i32, %arg1: i32) -> (i32, i32, i32) {
    %c0_i32 = arith.constant 0 : i32
    %c0_i32_0 = arith.constant 0 : i32
    %c0_i32_1 = arith.constant 0 : i32
    return %arg0, %c0_i32, %c0_i32_0 : i32, i32, i32
  }
}

module attributes {stable_mosaic.version = 11 : i64} {
  func.func @_matmul_kernel(%arg0: i32, %arg1: i32, %arg2: i32, %arg3: memref<64x72xbf16, #tpu.memory_space<vmem>>, %arg4: memref<72x128xbf16, #tpu.memory_space<vmem>>, %arg5: memref<64x128xbf16, #tpu.memory_space<vmem>>, %arg6: memref<64x128xf32, #tpu.memory_space<vmem>>) attributes {dimension_semantics = [#tpu.dimension_semantics<parallel>, #tpu.dimension_semantics<parallel>, #tpu.dimension_semantics<arbitrary>], iteration_bounds = array<i64: 2, 1, 1>, scalar_prefetch = 0 : i64, scratch_operands = 1 : i64, tpu.core_type = #tpu.core_type<tc>, window_params = [{transform_indices = @transform_0, window_bounds = array<i64: 64, 72>}, {transform_indices = @transform_1, window_bounds = array<i64: 72, 128>}, {transform_indices = @transform_2, window_bounds = array<i64: 64, 128>}]} {
    %c0_i32 = arith.constant 0 : i32
    %0 = arith.cmpi eq, %arg2, %c0_i32 : i32
    %1 = arith.extui %0 : i1 to i32
    %c0_i32_0 = arith.constant 0 : i32
    %2 = arith.cmpi ne, %1, %c0_i32_0 : i32
    scf.if %2 {
      %cst_10 = arith.constant 0.000000e+00 : f32
      %12 = vector.broadcast %cst_10 : f32 to vector<64x128xf32>
      %c0_11 = arith.constant 0 : index
      %c0_12 = arith.constant 0 : index
      %13 = vector.load %arg6[%c0_11, %c0_12] : memref<64x128xf32, #tpu.memory_space<vmem>>, vector<64x128xf32>
      tpu.vector_store %arg6[%c0_11, %c0_12], %12 {strides = array<i32>} : memref<64x128xf32, #tpu.memory_space<vmem>>, vector<64x128xf32>,
    } else {
    }
    %c0 = arith.constant 0 : index
    %c0_1 = arith.constant 0 : index
    %3 = vector.load %arg6[%c0, %c0_1] : memref<64x128xf32, #tpu.memory_space<vmem>>, vector<64x128xf32>
    %c0_2 = arith.constant 0 : index
    %c0_3 = arith.constant 0 : index
    %4 = vector.load %arg3[%c0_2, %c0_3] : memref<64x72xbf16, #tpu.memory_space<vmem>>, vector<64x72xbf16>
    %c0_4 = arith.constant 0 : index
    %c0_5 = arith.constant 0 : index
    %5 = vector.load %arg4[%c0_4, %c0_5] : memref<72x128xbf16, #tpu.memory_space<vmem>>, vector<72x128xbf16>
    %cst = arith.constant dense<0.000000e+00> : vector<64x128xf32>
    %6 = tpu.matmul %4, %5, %cst {dimension_numbers = #tpu.dot_dimension_numbers<[1], [0], [0], [1], [0, 0, 1, 1], [], []>} : vector<64x72xbf16>, vector<72x128xbf16>, vector<64x128xf32> -> vector<64x128xf32>
    %7 = arith.addf %3, %6 : vector<64x128xf32>
    %c0_6 = arith.constant 0 : index
    %c0_7 = arith.constant 0 : index
    %8 = vector.load %arg6[%c0_6, %c0_7] : memref<64x128xf32, #tpu.memory_space<vmem>>, vector<64x128xf32>
    tpu.vector_store %arg6[%c0_6, %c0_7], %7 {strides = array<i32>} : memref<64x128xf32, #tpu.memory_space<vmem>>, vector<64x128xf32>,
    %c0_i32_8 = arith.constant 0 : i32
    %9 = arith.cmpi eq, %arg2, %c0_i32_8 : i32
    %10 = arith.extui %9 : i1 to i32
    %c0_i32_9 = arith.constant 0 : i32
    %11 = arith.cmpi ne, %10, %c0_i32_9 : i32
    scf.if %11 {
      %c0_10 = arith.constant 0 : index
      %c0_11 = arith.constant 0 : index
      %12 = vector.load %arg6[%c0_10, %c0_11] : memref<64x128xf32, #tpu.memory_space<vmem>>, vector<64x128xf32>
      %13 = arith.truncf %12 : vector<64x128xf32> to vector<64x128xbf16>
      %c0_12 = arith.constant 0 : index
      %c0_13 = arith.constant 0 : index
      %14 = vector.load %arg5[%c0_12, %c0_13] : memref<64x128xbf16, #tpu.memory_space<vmem>>, vector<64x128xbf16>
      tpu.vector_store %arg5[%c0_12, %c0_13], %13 {strides = array<i32>} : memref<64x128xbf16, #tpu.memory_space<vmem>>, vector<64x128xbf16>,
    } else {
    }
    return
  }
  func.func @transform_0(%arg0: i32, %arg1: i32, %arg2: i32) -> (i32, i32) {
    %c0_i32 = arith.constant 0 : i32
    return %arg0, %arg2 : i32, i32
  }
  func.func @transform_1(%arg0: i32, %arg1: i32, %arg2: i32) -> (i32, i32) {
    %c0_i32 = arith.constant 0 : i32
    return %arg2, %arg1 : i32, i32
  }
  func.func @transform_2(%arg0: i32, %arg1: i32, %arg2: i32) -> (i32, i32) {
    %c0_i32 = arith.constant 0 : i32
    return %arg0, %arg1 : i32, i32
  }
}

module attributes {stable_mosaic.version = 11 : i64} {
  func.func @kernel(%arg0: i32, %arg1: i32, %arg2: memref<1x64x8xbf16, #tpu.memory_space<vmem>>, %arg3: memref<1x1x8xf32, #tpu.memory_space<vmem>>, %arg4: memref<1x1x8xf32, #tpu.memory_space<vmem>>, %arg5: memref<1x64x8xbf16, #tpu.memory_space<vmem>>) attributes {dimension_semantics = [#tpu.dimension_semantics<parallel>, #tpu.dimension_semantics<parallel>], iteration_bounds = array<i64: 2, 1>, scalar_prefetch = 0 : i64, scratch_operands = 0 : i64, tpu.core_type = #tpu.core_type<tc>, window_params = [{transform_indices = @transform_0, window_bounds = array<i64: 1, 64, 8>}, {transform_indices = @transform_1, window_bounds = array<i64: 1, 1, 8>}, {transform_indices = @transform_2, window_bounds = array<i64: 1, 1, 8>}, {transform_indices = @transform_3, window_bounds = array<i64: 1, 64, 8>}]} {
    %c0 = arith.constant 0 : index
    %c0_0 = arith.constant 0 : index
    %c0_1 = arith.constant 0 : index
    %0 = vector.load %arg2[%c0, %c0_0, %c0_1] : memref<1x64x8xbf16, #tpu.memory_space<vmem>>, vector<1x64x8xbf16>
    %1 = vector.shape_cast %0 : vector<1x64x8xbf16> to vector<64x8xbf16>
    %2 = arith.extf %1 : vector<64x8xbf16> to vector<64x8xf32>
    %c0_2 = arith.constant 0 : index
    %c0_3 = arith.constant 0 : index
    %c0_4 = arith.constant 0 : index
    %3 = vector.load %arg3[%c0_2, %c0_3, %c0_4] : memref<1x1x8xf32, #tpu.memory_space<vmem>>, vector<1x1x8xf32>
    %4 = vector.shape_cast %3 : vector<1x1x8xf32> to vector<1x8xf32>
    %5 = vector.broadcast %4 : vector<1x8xf32> to vector<64x8xf32>
    %6 = arith.mulf %2, %5 : vector<64x8xf32>
    %c0_5 = arith.constant 0 : index
    %c0_6 = arith.constant 0 : index
    %c0_7 = arith.constant 0 : index
    %7 = vector.load %arg4[%c0_5, %c0_6, %c0_7] : memref<1x1x8xf32, #tpu.memory_space<vmem>>, vector<1x1x8xf32>
    %8 = vector.shape_cast %7 : vector<1x1x8xf32> to vector<1x8xf32>
    %9 = vector.broadcast %8 : vector<1x8xf32> to vector<64x8xf32>
    %10 = arith.addf %6, %9 : vector<64x8xf32>
    %cst = arith.constant 0.000000e+00 : f32
    %11 = vector.broadcast %cst : f32 to vector<64x8xf32>
    %12 = arith.maximumf %10, %11 : vector<64x8xf32>
    %13 = arith.truncf %12 : vector<64x8xf32> to vector<64x8xbf16>
    %c0_8 = arith.constant 0 : index
    %c0_9 = arith.constant 0 : index
    %c0_10 = arith.constant 0 : index
    %14 = vector.load %arg5[%c0_8, %c0_9, %c0_10] : memref<1x64x8xbf16, #tpu.memory_space<vmem>>, vector<1x64x8xbf16>
    %15 = vector.shape_cast %14 : vector<1x64x8xbf16> to vector<64x8xbf16>
    %16 = vector.shape_cast %13 : vector<64x8xbf16> to vector<1x64x8xbf16>
    tpu.vector_store %arg5[%c0_8, %c0_9, %c0_10], %16 {strides = array<i32>} : memref<1x64x8xbf16, #tpu.memory_space<vmem>>, vector<1x64x8xbf16>,
    return
  }
  func.func @transform_0(%arg0: i32, %arg1: i32) -> (i32, i32, i32) {
    %c0_i32 = arith.constant 0 : i32
    %c0_i32_0 = arith.constant 0 : i32
    return %arg0, %arg1, %c0_i32 : i32, i32, i32
  }
  func.func @transform_1(%arg0: i32, %arg1: i32) -> (i32, i32, i32) {
    %c0_i32 = arith.constant 0 : i32
    %c0_i32_0 = arith.constant 0 : i32
    %c0_i32_1 = arith.constant 0 : i32
    return %arg0, %c0_i32, %c0_i32_0 : i32, i32, i32
  }
  func.func @transform_2(%arg0: i32, %arg1: i32) -> (i32, i32, i32) {
    %c0_i32 = arith.constant 0 : i32
    %c0_i32_0 = arith.constant 0 : i32
    %c0_i32_1 = arith.constant 0 : i32
    return %arg0, %c0_i32, %c0_i32_0 : i32, i32, i32
  }
  func.func @transform_3(%arg0: i32, %arg1: i32) -> (i32, i32, i32) {
    %c0_i32 = arith.constant 0 : i32
    %c0_i32_0 = arith.constant 0 : i32
    return %arg0, %arg1, %c0_i32 : i32, i32, i32
  }
}

module attributes {stable_mosaic.version = 11 : i64} {
  func.func @kernel(%arg0: i32, %arg1: i32, %arg2: memref<1x64x32xbf16, #tpu.memory_space<vmem>>, %arg3: memref<1x64x32xbf16, #tpu.memory_space<vmem>>, %arg4: memref<1x1x32xf32, #tpu.memory_space<vmem>>, %arg5: memref<1x1x32xf32, #tpu.memory_space<vmem>>, %arg6: memref<1x64x32xbf16, #tpu.memory_space<vmem>>) attributes {dimension_semantics = [#tpu.dimension_semantics<parallel>, #tpu.dimension_semantics<parallel>], iteration_bounds = array<i64: 2, 1>, scalar_prefetch = 0 : i64, scratch_operands = 0 : i64, tpu.core_type = #tpu.core_type<tc>, window_params = [{transform_indices = @transform_0, window_bounds = array<i64: 1, 64, 32>}, {transform_indices = @transform_1, window_bounds = array<i64: 1, 64, 32>}, {transform_indices = @transform_2, window_bounds = array<i64: 1, 1, 32>}, {transform_indices = @transform_3, window_bounds = array<i64: 1, 1, 32>}, {transform_indices = @transform_4, window_bounds = array<i64: 1, 64, 32>}]} {
    %c0 = arith.constant 0 : index
    %c0_0 = arith.constant 0 : index
    %c0_1 = arith.constant 0 : index
    %0 = vector.load %arg2[%c0, %c0_0, %c0_1] : memref<1x64x32xbf16, #tpu.memory_space<vmem>>, vector<1x64x32xbf16>
    %1 = vector.shape_cast %0 : vector<1x64x32xbf16> to vector<64x32xbf16>
    %2 = arith.extf %1 : vector<64x32xbf16> to vector<64x32xf32>
    %c0_2 = arith.constant 0 : index
    %c0_3 = arith.constant 0 : index
    %c0_4 = arith.constant 0 : index
    %3 = vector.load %arg4[%c0_2, %c0_3, %c0_4] : memref<1x1x32xf32, #tpu.memory_space<vmem>>, vector<1x1x32xf32>
    %4 = vector.shape_cast %3 : vector<1x1x32xf32> to vector<1x32xf32>
    %5 = vector.broadcast %4 : vector<1x32xf32> to vector<64x32xf32>
    %6 = arith.mulf %2, %5 : vector<64x32xf32>
    %c0_5 = arith.constant 0 : index
    %c0_6 = arith.constant 0 : index
    %c0_7 = arith.constant 0 : index
    %7 = vector.load %arg5[%c0_5, %c0_6, %c0_7] : memref<1x1x32xf32, #tpu.memory_space<vmem>>, vector<1x1x32xf32>
    %8 = vector.shape_cast %7 : vector<1x1x32xf32> to vector<1x32xf32>
    %9 = vector.broadcast %8 : vector<1x32xf32> to vector<64x32xf32>
    %10 = arith.addf %6, %9 : vector<64x32xf32>
    %c0_8 = arith.constant 0 : index
    %c0_9 = arith.constant 0 : index
    %c0_10 = arith.constant 0 : index
    %11 = vector.load %arg3[%c0_8, %c0_9, %c0_10] : memref<1x64x32xbf16, #tpu.memory_space<vmem>>, vector<1x64x32xbf16>
    %12 = vector.shape_cast %11 : vector<1x64x32xbf16> to vector<64x32xbf16>
    %13 = arith.extf %12 : vector<64x32xbf16> to vector<64x32xf32>
    %14 = arith.addf %10, %13 : vector<64x32xf32>
    %cst = arith.constant 0.000000e+00 : f32
    %15 = vector.broadcast %cst : f32 to vector<64x32xf32>
    %16 = arith.maximumf %14, %15 : vector<64x32xf32>
    %17 = arith.truncf %16 : vector<64x32xf32> to vector<64x32xbf16>
    %c0_11 = arith.constant 0 : index
    %c0_12 = arith.constant 0 : index
    %c0_13 = arith.constant 0 : index
    %18 = vector.load %arg6[%c0_11, %c0_12, %c0_13] : memref<1x64x32xbf16, #tpu.memory_space<vmem>>, vector<1x64x32xbf16>
    %19 = vector.shape_cast %18 : vector<1x64x32xbf16> to vector<64x32xbf16>
    %20 = vector.shape_cast %17 : vector<64x32xbf16> to vector<1x64x32xbf16>
    tpu.vector_store %arg6[%c0_11, %c0_12, %c0_13], %20 {strides = array<i32>} : memref<1x64x32xbf16, #tpu.memory_space<vmem>>, vector<1x64x32xbf16>,
    return
  }
  func.func @transform_0(%arg0: i32, %arg1: i32) -> (i32, i32, i32) {
    %c0_i32 = arith.constant 0 : i32
    %c0_i32_0 = arith.constant 0 : i32
    return %arg0, %arg1, %c0_i32 : i32, i32, i32
  }
  func.func @transform_1(%arg0: i32, %arg1: i32) -> (i32, i32, i32) {
    %c0_i32 = arith.constant 0 : i32
    %c0_i32_0 = arith.constant 0 : i32
    return %arg0, %arg1, %c0_i32 : i32, i32, i32
  }
  func.func @transform_2(%arg0: i32, %arg1: i32) -> (i32, i32, i32) {
    %c0_i32 = arith.constant 0 : i32
    %c0_i32_0 = arith.constant 0 : i32
    %c0_i32_1 = arith.constant 0 : i32
    return %arg0, %c0_i32, %c0_i32_0 : i32, i32, i32
  }
  func.func @transform_3(%arg0: i32, %arg1: i32) -> (i32, i32, i32) {
    %c0_i32 = arith.constant 0 : i32
    %c0_i32_0 = arith.constant 0 : i32
    %c0_i32_1 = arith.constant 0 : i32
    return %arg0, %c0_i32, %c0_i32_0 : i32, i32, i32
  }
  func.func @transform_4(%arg0: i32, %arg1: i32) -> (i32, i32, i32) {
    %c0_i32 = arith.constant 0 : i32
    %c0_i32_0 = arith.constant 0 : i32
    return %arg0, %arg1, %c0_i32 : i32, i32, i32
  }
}

module attributes {stable_mosaic.version = 11 : i64} {
  func.func @_matmul_kernel(%arg0: i32, %arg1: i32, %arg2: i32, %arg3: memref<64x8xbf16, #tpu.memory_space<vmem>>, %arg4: memref<8x128xbf16, #tpu.memory_space<vmem>>, %arg5: memref<64x128xbf16, #tpu.memory_space<vmem>>, %arg6: memref<64x128xf32, #tpu.memory_space<vmem>>) attributes {dimension_semantics = [#tpu.dimension_semantics<parallel>, #tpu.dimension_semantics<parallel>, #tpu.dimension_semantics<arbitrary>], iteration_bounds = array<i64: 2, 1, 1>, scalar_prefetch = 0 : i64, scratch_operands = 1 : i64, tpu.core_type = #tpu.core_type<tc>, window_params = [{transform_indices = @transform_0, window_bounds = array<i64: 64, 8>}, {transform_indices = @transform_1, window_bounds = array<i64: 8, 128>}, {transform_indices = @transform_2, window_bounds = array<i64: 64, 128>}]} {
    %c0_i32 = arith.constant 0 : i32
    %0 = arith.cmpi eq, %arg2, %c0_i32 : i32
    %1 = arith.extui %0 : i1 to i32
    %c0_i32_0 = arith.constant 0 : i32
    %2 = arith.cmpi ne, %1, %c0_i32_0 : i32
    scf.if %2 {
      %cst_10 = arith.constant 0.000000e+00 : f32
      %12 = vector.broadcast %cst_10 : f32 to vector<64x128xf32>
      %c0_11 = arith.constant 0 : index
      %c0_12 = arith.constant 0 : index
      %13 = vector.load %arg6[%c0_11, %c0_12] : memref<64x128xf32, #tpu.memory_space<vmem>>, vector<64x128xf32>
      tpu.vector_store %arg6[%c0_11, %c0_12], %12 {strides = array<i32>} : memref<64x128xf32, #tpu.memory_space<vmem>>, vector<64x128xf32>,
    } else {
    }
    %c0 = arith.constant 0 : index
    %c0_1 = arith.constant 0 : index
    %3 = vector.load %arg6[%c0, %c0_1] : memref<64x128xf32, #tpu.memory_space<vmem>>, vector<64x128xf32>
    %c0_2 = arith.constant 0 : index
    %c0_3 = arith.constant 0 : index
    %4 = vector.load %arg3[%c0_2, %c0_3] : memref<64x8xbf16, #tpu.memory_space<vmem>>, vector<64x8xbf16>
    %c0_4 = arith.constant 0 : index
    %c0_5 = arith.constant 0 : index
    %5 = vector.load %arg4[%c0_4, %c0_5] : memref<8x128xbf16, #tpu.memory_space<vmem>>, vector<8x128xbf16>
    %cst = arith.constant dense<0.000000e+00> : vector<64x128xf32>
    %6 = tpu.matmul %4, %5, %cst {dimension_numbers = #tpu.dot_dimension_numbers<[1], [0], [0], [1], [0, 0, 1, 1], [], []>} : vector<64x8xbf16>, vector<8x128xbf16>, vector<64x128xf32> -> vector<64x128xf32>
    %7 = arith.addf %3, %6 : vector<64x128xf32>
    %c0_6 = arith.constant 0 : index
    %c0_7 = arith.constant 0 : index
    %8 = vector.load %arg6[%c0_6, %c0_7] : memref<64x128xf32, #tpu.memory_space<vmem>>, vector<64x128xf32>
    tpu.vector_store %arg6[%c0_6, %c0_7], %7 {strides = array<i32>} : memref<64x128xf32, #tpu.memory_space<vmem>>, vector<64x128xf32>,
    %c0_i32_8 = arith.constant 0 : i32
    %9 = arith.cmpi eq, %arg2, %c0_i32_8 : i32
    %10 = arith.extui %9 : i1 to i32
    %c0_i32_9 = arith.constant 0 : i32
    %11 = arith.cmpi ne, %10, %c0_i32_9 : i32
    scf.if %11 {
      %c0_10 = arith.constant 0 : index
      %c0_11 = arith.constant 0 : index
      %12 = vector.load %arg6[%c0_10, %c0_11] : memref<64x128xf32, #tpu.memory_space<vmem>>, vector<64x128xf32>
      %13 = arith.truncf %12 : vector<64x128xf32> to vector<64x128xbf16>
      %c0_12 = arith.constant 0 : index
      %c0_13 = arith.constant 0 : index
      %14 = vector.load %arg5[%c0_12, %c0_13] : memref<64x128xbf16, #tpu.memory_space<vmem>>, vector<64x128xbf16>
      tpu.vector_store %arg5[%c0_12, %c0_13], %13 {strides = array<i32>} : memref<64x128xbf16, #tpu.memory_space<vmem>>, vector<64x128xbf16>,
    } else {
    }
    return
  }
  func.func @transform_0(%arg0: i32, %arg1: i32, %arg2: i32) -> (i32, i32) {
    %c0_i32 = arith.constant 0 : i32
    return %arg0, %arg2 : i32, i32
  }
  func.func @transform_1(%arg0: i32, %arg1: i32, %arg2: i32) -> (i32, i32) {
    %c0_i32 = arith.constant 0 : i32
    return %arg2, %arg1 : i32, i32
  }
  func.func @transform_2(%arg0: i32, %arg1: i32, %arg2: i32) -> (i32, i32) {
    %c0_i32 = arith.constant 0 : i32
    return %arg0, %arg1 : i32, i32
  }
}

module attributes {stable_mosaic.version = 11 : i64} {
  func.func @_matmul_kernel(%arg0: i32, %arg1: i32, %arg2: i32, %arg3: memref<64x32xbf16, #tpu.memory_space<vmem>>, %arg4: memref<32x128xbf16, #tpu.memory_space<vmem>>, %arg5: memref<64x128xbf16, #tpu.memory_space<vmem>>, %arg6: memref<64x128xf32, #tpu.memory_space<vmem>>) attributes {dimension_semantics = [#tpu.dimension_semantics<parallel>, #tpu.dimension_semantics<parallel>, #tpu.dimension_semantics<arbitrary>], iteration_bounds = array<i64: 2, 1, 1>, scalar_prefetch = 0 : i64, scratch_operands = 1 : i64, tpu.core_type = #tpu.core_type<tc>, window_params = [{transform_indices = @transform_0, window_bounds = array<i64: 64, 32>}, {transform_indices = @transform_1, window_bounds = array<i64: 32, 128>}, {transform_indices = @transform_2, window_bounds = array<i64: 64, 128>}]} {
    %c0_i32 = arith.constant 0 : i32
    %0 = arith.cmpi eq, %arg2, %c0_i32 : i32
    %1 = arith.extui %0 : i1 to i32
    %c0_i32_0 = arith.constant 0 : i32
    %2 = arith.cmpi ne, %1, %c0_i32_0 : i32
    scf.if %2 {
      %cst_10 = arith.constant 0.000000e+00 : f32
      %12 = vector.broadcast %cst_10 : f32 to vector<64x128xf32>
      %c0_11 = arith.constant 0 : index
      %c0_12 = arith.constant 0 : index
      %13 = vector.load %arg6[%c0_11, %c0_12] : memref<64x128xf32, #tpu.memory_space<vmem>>, vector<64x128xf32>
      tpu.vector_store %arg6[%c0_11, %c0_12], %12 {strides = array<i32>} : memref<64x128xf32, #tpu.memory_space<vmem>>, vector<64x128xf32>,
    } else {
    }
    %c0 = arith.constant 0 : index
    %c0_1 = arith.constant 0 : index
    %3 = vector.load %arg6[%c0, %c0_1] : memref<64x128xf32, #tpu.memory_space<vmem>>, vector<64x128xf32>
    %c0_2 = arith.constant 0 : index
    %c0_3 = arith.constant 0 : index
    %4 = vector.load %arg3[%c0_2, %c0_3] : memref<64x32xbf16, #tpu.memory_space<vmem>>, vector<64x32xbf16>
    %c0_4 = arith.constant 0 : index
    %c0_5 = arith.constant 0 : index
    %5 = vector.load %arg4[%c0_4, %c0_5] : memref<32x128xbf16, #tpu.memory_space<vmem>>, vector<32x128xbf16>
    %cst = arith.constant dense<0.000000e+00> : vector<64x128xf32>
    %6 = tpu.matmul %4, %5, %cst {dimension_numbers = #tpu.dot_dimension_numbers<[1], [0], [0], [1], [0, 0, 1, 1], [], []>} : vector<64x32xbf16>, vector<32x128xbf16>, vector<64x128xf32> -> vector<64x128xf32>
    %7 = arith.addf %3, %6 : vector<64x128xf32>
    %c0_6 = arith.constant 0 : index
    %c0_7 = arith.constant 0 : index
    %8 = vector.load %arg6[%c0_6, %c0_7] : memref<64x128xf32, #tpu.memory_space<vmem>>, vector<64x128xf32>
    tpu.vector_store %arg6[%c0_6, %c0_7], %7 {strides = array<i32>} : memref<64x128xf32, #tpu.memory_space<vmem>>, vector<64x128xf32>,
    %c0_i32_8 = arith.constant 0 : i32
    %9 = arith.cmpi eq, %arg2, %c0_i32_8 : i32
    %10 = arith.extui %9 : i1 to i32
    %c0_i32_9 = arith.constant 0 : i32
    %11 = arith.cmpi ne, %10, %c0_i32_9 : i32
    scf.if %11 {
      %c0_10 = arith.constant 0 : index
      %c0_11 = arith.constant 0 : index
      %12 = vector.load %arg6[%c0_10, %c0_11] : memref<64x128xf32, #tpu.memory_space<vmem>>, vector<64x128xf32>
      %13 = arith.truncf %12 : vector<64x128xf32> to vector<64x128xbf16>
      %c0_12 = arith.constant 0 : index
      %c0_13 = arith.constant 0 : index
      %14 = vector.load %arg5[%c0_12, %c0_13] : memref<64x128xbf16, #tpu.memory_space<vmem>>, vector<64x128xbf16>
      tpu.vector_store %arg5[%c0_12, %c0_13], %13 {strides = array<i32>} : memref<64x128xbf16, #tpu.memory_space<vmem>>, vector<64x128xbf16>,
    } else {
    }
    return
  }
  func.func @transform_0(%arg0: i32, %arg1: i32, %arg2: i32) -> (i32, i32) {
    %c0_i32 = arith.constant 0 : i32
    return %arg0, %arg2 : i32, i32
  }
  func.func @transform_1(%arg0: i32, %arg1: i32, %arg2: i32) -> (i32, i32) {
    %c0_i32 = arith.constant 0 : i32
    return %arg2, %arg1 : i32, i32
  }
  func.func @transform_2(%arg0: i32, %arg1: i32, %arg2: i32) -> (i32, i32) {
    %c0_i32 = arith.constant 0 : i32
    return %arg0, %arg1 : i32, i32
  }
}

module attributes {stable_mosaic.version = 11 : i64} {
  func.func @kernel(%arg0: i32, %arg1: i32, %arg2: memref<1x64x32xbf16, #tpu.memory_space<vmem>>, %arg3: memref<1x64x32xbf16, #tpu.memory_space<vmem>>, %arg4: memref<1x1x32xf32, #tpu.memory_space<vmem>>, %arg5: memref<1x1x32xf32, #tpu.memory_space<vmem>>, %arg6: memref<1x64x32xbf16, #tpu.memory_space<vmem>>) attributes {dimension_semantics = [#tpu.dimension_semantics<parallel>, #tpu.dimension_semantics<parallel>], iteration_bounds = array<i64: 2, 1>, scalar_prefetch = 0 : i64, scratch_operands = 0 : i64, tpu.core_type = #tpu.core_type<tc>, window_params = [{transform_indices = @transform_0, window_bounds = array<i64: 1, 64, 32>}, {transform_indices = @transform_1, window_bounds = array<i64: 1, 64, 32>}, {transform_indices = @transform_2, window_bounds = array<i64: 1, 1, 32>}, {transform_indices = @transform_3, window_bounds = array<i64: 1, 1, 32>}, {transform_indices = @transform_4, window_bounds = array<i64: 1, 64, 32>}]} {
    %c0 = arith.constant 0 : index
    %c0_0 = arith.constant 0 : index
    %c0_1 = arith.constant 0 : index
    %0 = vector.load %arg2[%c0, %c0_0, %c0_1] : memref<1x64x32xbf16, #tpu.memory_space<vmem>>, vector<1x64x32xbf16>
    %1 = vector.shape_cast %0 : vector<1x64x32xbf16> to vector<64x32xbf16>
    %2 = arith.extf %1 : vector<64x32xbf16> to vector<64x32xf32>
    %c0_2 = arith.constant 0 : index
    %c0_3 = arith.constant 0 : index
    %c0_4 = arith.constant 0 : index
    %3 = vector.load %arg4[%c0_2, %c0_3, %c0_4] : memref<1x1x32xf32, #tpu.memory_space<vmem>>, vector<1x1x32xf32>
    %4 = vector.shape_cast %3 : vector<1x1x32xf32> to vector<1x32xf32>
    %5 = vector.broadcast %4 : vector<1x32xf32> to vector<64x32xf32>
    %6 = arith.mulf %2, %5 : vector<64x32xf32>
    %c0_5 = arith.constant 0 : index
    %c0_6 = arith.constant 0 : index
    %c0_7 = arith.constant 0 : index
    %7 = vector.load %arg5[%c0_5, %c0_6, %c0_7] : memref<1x1x32xf32, #tpu.memory_space<vmem>>, vector<1x1x32xf32>
    %8 = vector.shape_cast %7 : vector<1x1x32xf32> to vector<1x32xf32>
    %9 = vector.broadcast %8 : vector<1x32xf32> to vector<64x32xf32>
    %10 = arith.addf %6, %9 : vector<64x32xf32>
    %c0_8 = arith.constant 0 : index
    %c0_9 = arith.constant 0 : index
    %c0_10 = arith.constant 0 : index
    %11 = vector.load %arg3[%c0_8, %c0_9, %c0_10] : memref<1x64x32xbf16, #tpu.memory_space<vmem>>, vector<1x64x32xbf16>
    %12 = vector.shape_cast %11 : vector<1x64x32xbf16> to vector<64x32xbf16>
    %13 = arith.extf %12 : vector<64x32xbf16> to vector<64x32xf32>
    %14 = arith.addf %10, %13 : vector<64x32xf32>
    %cst = arith.constant 0.000000e+00 : f32
    %15 = vector.broadcast %cst : f32 to vector<64x32xf32>
    %16 = arith.maximumf %14, %15 : vector<64x32xf32>
    %17 = arith.truncf %16 : vector<64x32xf32> to vector<64x32xbf16>
    %c0_11 = arith.constant 0 : index
    %c0_12 = arith.constant 0 : index
    %c0_13 = arith.constant 0 : index
    %18 = vector.load %arg6[%c0_11, %c0_12, %c0_13] : memref<1x64x32xbf16, #tpu.memory_space<vmem>>, vector<1x64x32xbf16>
    %19 = vector.shape_cast %18 : vector<1x64x32xbf16> to vector<64x32xbf16>
    %20 = vector.shape_cast %17 : vector<64x32xbf16> to vector<1x64x32xbf16>
    tpu.vector_store %arg6[%c0_11, %c0_12, %c0_13], %20 {strides = array<i32>} : memref<1x64x32xbf16, #tpu.memory_space<vmem>>, vector<1x64x32xbf16>,
    return
  }
  func.func @transform_0(%arg0: i32, %arg1: i32) -> (i32, i32, i32) {
    %c0_i32 = arith.constant 0 : i32
    %c0_i32_0 = arith.constant 0 : i32
    return %arg0, %arg1, %c0_i32 : i32, i32, i32
  }
  func.func @transform_1(%arg0: i32, %arg1: i32) -> (i32, i32, i32) {
    %c0_i32 = arith.constant 0 : i32
    %c0_i32_0 = arith.constant 0 : i32
    return %arg0, %arg1, %c0_i32 : i32, i32, i32
  }
  func.func @transform_2(%arg0: i32, %arg1: i32) -> (i32, i32, i32) {
    %c0_i32 = arith.constant 0 : i32
    %c0_i32_0 = arith.constant 0 : i32
    %c0_i32_1 = arith.constant 0 : i32
    return %arg0, %c0_i32, %c0_i32_0 : i32, i32, i32
  }
  func.func @transform_3(%arg0: i32, %arg1: i32) -> (i32, i32, i32) {
    %c0_i32 = arith.constant 0 : i32
    %c0_i32_0 = arith.constant 0 : i32
    %c0_i32_1 = arith.constant 0 : i32
    return %arg0, %c0_i32, %c0_i32_0 : i32, i32, i32
  }
  func.func @transform_4(%arg0: i32, %arg1: i32) -> (i32, i32, i32) {
    %c0_i32 = arith.constant 0 : i32
    %c0_i32_0 = arith.constant 0 : i32
    return %arg0, %arg1, %c0_i32 : i32, i32, i32
  }
}

</mosaic_0001>

<bundles_post_ra>
// kernel: fwd.29
= control target key start
LH: loop header
LB: loop body
LE: loop exit
PB: predicated region body
PF: predicated region fallthrough
CT: control target
= control target key end

     0   :  { %s438_s9 = smov 0   ;;  %s440_s10 = smov 0   ;;  %s504_s0 = inlined_call_operand.vmem [shape: bf16[2,64,32], index: 0, kind: input, shape index: {}]   ;;  %s505_s1 = inlined_call_operand.vmem [shape: f32[2,1,32], index: 1, kind: output, shape index: {0}]   ;;  %s506_s2 = inlined_call_operand.vmem [shape: f32[2,1,32], index: 2, kind: output, shape index: {1}]  }
   0x1   :  { %s442_s11 = smov 0  }
   0x2 LB: > { %s25_s12 = sadd.s32 1, %s416_s10  ;;  %p348_p0 = scmp.ge.s32.totalorder %s420_s11, 1  ;;  %s420_s11 = sphi %s442_s11, %s13_s11   ;;  %s416_s10 = sphi %s440_s10, %s508_s10   ;;  %s412_s9 = sphi %s438_s9, %s507_s9  }
   0x3   : > { %p27_p1 = scmp.ge.s32.totalorder %s25_s12, 2  ;;  %p134_p2 = scmp.lt.s32.totalorder %s420_s11, 3 }
   0x5   : > { %s510_s12 = smov (%p27_p1, %s25_s12), 0  ;;  %p135_p3 = pnand %p348_p0, %p134_p2 }
   0x6   : > { %p162_p4 = scmp.lt.s32.totalorder (!%p135_p3), %s412_s9, 1 }
   0x7   : > { %138 = sbr.rel (%p135_p3) target bundleno = 51 (0x33), region = 24 }
   0xc   : > { %s512_s9 = smov (!%p162_p4, %s412_s9), 1  ;;  %vm181_vm0 = vcmask 253952   ;;  %v422_v0 = vmov 0.0   ;;  %vm201_vm1 = vcmask 261120  }
   0xd   : > { %s353_s13 = sshll.u32 %s512_s9, 5  ;;  %s459_s16 = scalar_lea.vmem %s505_s1, %s512_s9 }
   0xe   : > { %s169_s19 = scalar_lea.vmem %s504_s0, %s353_s13  ;;  %182 = vst.msk [vmem:[%s459_s16] sm:$0x1] %vm181_vm0, %v422_v0  ;;  %s469_s22 = scalar_lea.vmem %s506_s2, %s512_s9 }
   0xf   : > { %v355_v1 = vld [vmem:[%s169_s19] sm:$0xff]   ;;  %v370_v2 = vld [vmem:[%s169_s19 + $0x8] sm:$0xff]   ;;  %v371_v3 = vld [vmem:[%s169_s19 + $0x10] sm:$0xff]   ;;  %183 = vst.msk [vmem:[%s469_s22] sm:$0x1] %vm181_vm0, %v422_v0 }
  0x10   : > { %v356_v4 = vunpack.c.l.bf16 %v355_v1  ;;  %v357_v5 = vunpack.c.h.bf16 %v355_v1  ;;  %v360_v6 = vunpack.c.l.bf16 %v370_v2  ;;  %v361_v7 = vunpack.c.h.bf16 %v370_v2  ;;  %v372_v9 = vld [vmem:[%s169_s19 + $0x18] sm:$0xff]  }
  0x11   : > { %v364_v8 = vunpack.c.l.bf16 %v371_v3  ;;  %v365_v13 = vunpack.c.h.bf16 %v371_v3  ;;  %v368_v19 = vunpack.c.l.bf16 %v372_v9  ;;  %v369_v29 = vunpack.c.h.bf16 %v372_v9 }
  0x12   : > { %v202_v10 = vsel %vm201_vm1, %v356_v4, 0.0  ;;  %v203_v11 = vsel %vm201_vm1, %v357_v5, 0.0  ;;  %v205_v12 = vsel %vm201_vm1, %v360_v6, 0.0  ;;  %v207_v15 = vsel %vm201_vm1, %v361_v7, 0.0 }
  0x13   : > { %v204_v14 = vadd.f32 %v203_v11, %v202_v10  ;;  %v227_v16 = vmul.f32 %v356_v4, %v356_v4  ;;  %v228_v17 = vmul.f32 %v357_v5, %v357_v5  ;;  %v229_v18 = vmul.f32 %v360_v6, %v360_v6 }
  0x14   : > { %v209_v21 = vsel %vm201_vm1, %v364_v8, 0.0  ;;  %v230_v22 = vmul.f32 %v361_v7, %v361_v7  ;;  %v231_v23 = vmul.f32 %v364_v8, %v364_v8  ;;  %v211_v30 = vsel %vm201_vm1, %v365_v13, 0.0 }
  0x15   : > { %v206_v20 = vadd.f32 %v205_v12, %v204_v14  ;;  %v235_v24 = vsel %vm201_vm1, %v227_v16, 0.0  ;;  %v236_v25 = vsel %vm201_vm1, %v228_v17, 0.0  ;;  %v238_v26 = vsel %vm201_vm1, %v229_v18, 0.0  ;;  %v200_v59 = vld [vmem:[%s459_s16] sm:$0x1] }
  0x16   : > { %v237_v28 = vadd.f32 %v236_v25, %v235_v24  ;;  %v232_v31 = vmul.f32 %v365_v13, %v365_v13  ;;  %v240_v32 = vsel %vm201_vm1, %v230_v22, 0.0  ;;  %v213_v35 = vsel %vm201_vm1, %v368_v19, 0.0  ;;  %v226_v0 = vld [vmem:[%s469_s22] sm:$0x1] }
  0x17   : > { %v208_v27 = vadd.f32 %v207_v15, %v206_v20  ;;  %v233_v36 = vmul.f32 %v368_v19, %v368_v19  ;;  %v242_v37 = vsel %vm201_vm1, %v231_v23, 0.0  ;;  %v215_v40 = vsel %vm201_vm1, %v369_v29, 0.0 }
  0x18   : > { %v239_v34 = vadd.f32 %v238_v26, %v237_v28  ;;  %v234_v41 = vmul.f32 %v369_v29, %v369_v29  ;;  %v244_v42 = vsel %vm201_vm1, %v232_v31, 0.0 }
  0x19   : > { %v210_v33 = vadd.f32 %v209_v21, %v208_v27  ;;  %v246_v45 = vsel %vm201_vm1, %v233_v36, 0.0 }
  0x1a   : > { %v241_v39 = vadd.f32 %v240_v32, %v239_v34  ;;  %v248_v48 = vsel %vm201_vm1, %v234_v41, 0.0 }
  0x1b   : > { %v212_v38 = vadd.f32 %v211_v30, %v210_v33 }
  0x1c   : > { %v243_v44 = vadd.f32 %v242_v37, %v241_v39 }
  0x1d   : > { %v214_v43 = vadd.f32 %v213_v35, %v212_v38 }
  0x1e   : > { %v245_v47 = vadd.f32 %v244_v42, %v243_v44 }
  0x1f   : > { %v216_v46 = vadd.f32 %v215_v40, %v214_v43 }
  0x20   : > { %v247_v50 = vadd.f32 %v246_v45, %v245_v47 }
  0x21   : > { %v217_v49 = vrot.slane %v216_v46, 4 }
  0x22   : > { %v249_v52 = vadd.f32 %v248_v48, %v247_v50 }
  0x23   : > { %v218_v51 = vadd.f32 %v217_v49, %v216_v46 }
  0x24   : > { %v250_v54 = vrot.slane %v249_v52, 4 }
  0x25   : > { %v219_v53 = vrot.slane %v218_v51, 2 }
  0x26   : > { %v251_v56 = vadd.f32 %v250_v54, %v249_v52 }
  0x27   : > { %v220_v55 = vadd.f32 %v219_v53, %v218_v51 }
  0x28   : > { %v252_v58 = vrot.slane %v251_v56, 2 }
  0x29   : > { %v221_v57 = vrot.slane %v220_v55, 1 }
  0x2a   : > { %v253_v61 = vadd.f32 %v252_v58, %v251_v56 }
  0x2b   : > { %v222_v60 = vadd.f32 %v221_v57, %v220_v55 }
  0x2c   : > { %v254_v63 = vrot.slane %v253_v61, 1 }
  0x2d   : > { %v223_v62 = vadd.f32 %v222_v60, %v200_v59 }
  0x2e   : > { %v255_v1 = vadd.f32 %v254_v63, %v253_v61 }
  0x2f   : > { %225 = vst.msk [vmem:[%s459_s16] sm:$0x1] %vm181_vm0, %v223_v62 }
  0x30   : > { %v256_v2 = vadd.f32 %v255_v1, %v226_v0 }
  0x32   : > { %257 = vst.msk [vmem:[%s469_s22] sm:$0x1] %vm181_vm0, %v256_v2 }
  0x33 PF: > { %s13_s11 = sadd.s32 1, %s420_s11   ;;  %s507_s9 = smov %s416_s10 }
  0x34   : > { %p10_p5 = scmp.ge.s32.totalorder %s13_s11, 4   ;;  %s508_s10 = smov %s510_s12 }
  0x36   :  { %12 = sbr.rel (!%p10_p5) target bundleno = 2 (0x2), region = 70 }

// kernel: fwd.28
= control target key start
LH: loop header
LB: loop body
LE: loop exit
PB: predicated region body
PF: predicated region fallthrough
CT: control target
= control target key end

     0   :  { %s589_s9 = smov 0   ;;  %s591_s10 = smov 0   ;;  %s625_s0 = inlined_call_operand.vmem [shape: bf16[128,16], index: 0, kind: input, shape index: {}]   ;;  %s626_s1 = inlined_call_operand.vmem [shape: bf16[16,128], index: 1, kind: input, shape index: {}]   ;;  %s627_s2 = inlined_call_operand.vmem [shape: bf16[128,128], index: 2, kind: output, shape index: {}]  }
   0x1   :  { %s593_s11 = smov 0  }
   0x2 LB: > { %s31_s12 = sadd.s32 1, %s568_s10  ;;  %p464_p0 = scmp.ge.s32.totalorder %s572_s11, 1  ;;  %s572_s11 = sphi %s593_s11, %s12_s11   ;;  %s568_s10 = sphi %s591_s10, %s629_s10   ;;  %s564_s9 = sphi %s589_s9, %s628_s9  }
   0x3   : > { %p33_p1 = scmp.ge.s32.totalorder %s31_s12, 2  ;;  %p155_p2 = scmp.lt.s32.totalorder %s572_s11, 3 }
   0x5   : > { %s631_s12 = smov (%p33_p1, %s31_s12), 0  ;;  %p156_p3 = pnand %p464_p0, %p155_p2 }
   0x6   : > { %s465_s15 = sshll.u32 (!%p156_p3), %s564_s9, 3 }
   0x7   : > { %159 = sbr.rel (%p156_p3) target bundleno = 161 (0xa1), region = 28  ;;  %p192_p4 = scmp.lt.s32.totalorder (!%p156_p3), %s465_s15, 15 }
   0xc   : > { %v499_v0 = vld [vmem:[%s626_s1] sm:$0xff]  ;;  %s633_s15 = smov (!%p192_p4, %s465_s15), 15  ;;  %vm275_vm0 = vcmask 130048  }
   0xd   : > { %295 = vmatpush.bf16.msra.mxu0 %v499_v0  ;;  %523 = vmatpush.bf16.msra.mxu1 %v499_v0  ;;  %s466_s16 = sshll.u32 %s633_s15, 2 }
   0xe   : > { %524 = vmatpush.bf16.msra.mxu2 %v499_v0  ;;  %525 = vmatpush.bf16.msra.mxu3 %v499_v0  ;;  %s198_s19 = scalar_lea.vmem %s625_s0, %s466_s16  ;;  %s216_s22 = scalar_lea.vmem %s627_s2, %s466_s16 }
   0xf   : > { %v495_v1 = vld [vmem:[%s198_s19] sm:$0xff]  ;;  %v496_v2 = vld [vmem:[%s198_s19 + $0x8] sm:$0xff]  ;;  %v497_v3 = vld [vmem:[%s198_s19 + $0x10] sm:$0xff] }
  0x10   : > { %v498_v4 = vld [vmem:[%s198_s19 + $0x18] sm:$0xff]  ;;  %489 = vmatmul.msk.bf16.vlgmr.msra.gmra.mxu0 %vm275_vm0, %v495_v1  ;;  %490 = vmatmul.msk.bf16.vlgmr.msra.gmra.mxu1 %vm275_vm0, %v496_v2 }
  0x11   : > { %491 = vmatmul.msk.bf16.vlgmr.msra.gmra.mxu2 %vm275_vm0, %v497_v3  ;;  %492 = vmatmul.msk.bf16.vlgmr.msra.gmra.mxu3 %vm275_vm0, %v498_v4 }
  0x8d   : > { %v297_v5 = vpop.f32.mrf.mxu0  ;;  %v302_v6 = vpop.f32.mrf.mxu1 }
  0x94   : > { %v307_v7 = vpop.f32.mrf.mxu2  ;;  %v312_v8 = vpop.f32.mrf.mxu3 }
  0x95   : > { %v299_v9 = vpop.f32.mrf.mxu0  ;;  %v304_v10 = vpop.f32.mrf.mxu1 }
  0x96   : > { %v503_v11 = vpack.c.bf16 %v299_v9, %v297_v5  ;;  %v508_v12 = vpack.c.bf16 %v304_v10, %v302_v6 }
  0x98   : > { %504 = vst [vmem:[%s216_s22] sm:$0xff] %v503_v11  }
  0x99   : > { %520 = vst [vmem:[%s216_s22 + $0x8] sm:$0xff] %v508_v12  }
  0x9c   : > { %v309_v13 = vpop.f32.mrf.mxu2  ;;  %v314_v14 = vpop.f32.mrf.mxu3 }
  0x9d   : > { %v513_v15 = vpack.c.bf16 %v309_v13, %v307_v7  ;;  %v518_v16 = vpack.c.bf16 %v314_v14, %v312_v8 }
  0x9f   : > { %521 = vst [vmem:[%s216_s22 + $0x10] sm:$0xff] %v513_v15  }
  0xa0   : > { %522 = vst [vmem:[%s216_s22 + $0x18] sm:$0xff] %v518_v16  }
  0xa1 PF: > { %s12_s11 = sadd.s32 1, %s572_s11   ;;  %s628_s9 = smov %s568_s10 }
  0xa2   : > { %p9_p5 = scmp.ge.s32.totalorder %s12_s11, 4   ;;  %s629_s10 = smov %s631_s12 }
  0xa4   :  { %11 = sbr.rel (!%p9_p5) target bundleno = 2 (0x2), region = 69 }

// kernel: fwd.30
= control target key start
LH: loop header
LB: loop body
LE: loop exit
PB: predicated region body
PF: predicated region fallthrough
CT: control target
= control target key end

     0   :  { %s502_s12 = smov 0   ;;  %s504_s13 = smov 0   ;;  %s558_s0 = inlined_call_operand.vmem [shape: bf16[2,64,32], index: 0, kind: input, shape index: {}]   ;;  %s559_s1 = inlined_call_operand.vmem [shape: f32[2,1,32], index: 1, kind: input, shape index: {}]   ;;  %s560_s2 = inlined_call_operand.vmem [shape: f32[2,1,32], index: 2, kind: input, shape index: {}]   ;;  %s561_s3 = inlined_call_operand.vmem [shape: bf16[2,64,32], index: 3, kind: output, shape index: {}]  }
   0x1   :  { %s506_s14 = smov 0  }
   0x2 LB: > { %s25_s15 = sadd.s32 1, %s476_s13  ;;  %p404_p0 = scmp.ge.s32.totalorder %s480_s14, 1  ;;  %s480_s14 = sphi %s506_s14, %s13_s14   ;;  %s476_s13 = sphi %s504_s13, %s563_s13   ;;  %s472_s12 = sphi %s502_s12, %s562_s12  }
   0x3   : > { %p27_p1 = scmp.ge.s32.totalorder %s25_s15, 2  ;;  %p174_p2 = scmp.lt.s32.totalorder %s480_s14, 3 }
   0x5   : > { %s565_s15 = smov (%p27_p1, %s25_s15), 0  ;;  %p175_p3 = pnand %p404_p0, %p174_p2 }
   0x6   : > { %p213_p4 = scmp.lt.s32.totalorder (!%p175_p3), %s472_s12, 1 }
   0x7   : > { %178 = sbr.rel (%p175_p3) target bundleno = 32 (0x20), region = 32 }
   0xc   : > { %s567_s12 = smov (!%p213_p4, %s472_s12), 1  ;;  %vm286_vm0 = vcmask 257024  }
   0xd   : > { %s411_s16 = sshll.u32 %s567_s12, 5  ;;  %s224_s19 = scalar_lea.vmem %s559_s1, %s567_s12 }
   0xe   : > { %s220_s22 = scalar_lea.vmem %s558_s0, %s411_s16  ;;  %s227_s25 = scalar_lea.vmem %s560_s2, %s567_s12  ;;  %v456_v0 = vld [vmem:[%s224_s19] ss:$0 sm:$0xff] }
   0xf   : > { %v414_v1 = vld [vmem:[%s220_s22] sm:$0xff]   ;;  %v429_v5 = vld [vmem:[%s220_s22 + $0x8] sm:$0xff]   ;;  %v430_v6 = vld [vmem:[%s220_s22 + $0x10] sm:$0xff]   ;;  %s236_s28 = scalar_lea.vmem %s561_s3, %s411_s16 }
  0x10   : > { %v457_v2 = vld [vmem:[%s227_s25] ss:$0 sm:$0xff]  ;;  %v415_v3 = vunpack.c.l.bf16 %v414_v1  ;;  %v416_v4 = vunpack.c.h.bf16 %v414_v1  ;;  %v431_v7 = vld [vmem:[%s220_s22 + $0x18] sm:$0xff]   ;;  %v419_v8 = vunpack.c.l.bf16 %v429_v5  ;;  %v420_v9 = vunpack.c.h.bf16 %v429_v5 }
  0x11   : > { %v423_v10 = vunpack.c.l.bf16 %v430_v6  ;;  %v424_v11 = vunpack.c.h.bf16 %v430_v6  ;;  %v427_v14 = vunpack.c.l.bf16 %v431_v7  ;;  %v428_v15 = vunpack.c.h.bf16 %v431_v7 }
  0x12   : > { %v258_v12 = vmul.f32 %v456_v0, %v415_v3  ;;  %v259_v13 = vmul.f32 %v456_v0, %v416_v4  ;;  %v260_v16 = vmul.f32 %v456_v0, %v419_v8  ;;  %v261_v17 = vmul.f32 %v456_v0, %v420_v9 }
  0x13   : > { %v262_v18 = vmul.f32 %v456_v0, %v423_v10  ;;  %v263_v19 = vmul.f32 %v456_v0, %v424_v11  ;;  %v264_v22 = vmul.f32 %v456_v0, %v427_v14  ;;  %v265_v23 = vmul.f32 %v456_v0, %v428_v15 }
  0x14   : > { %v270_v20 = vadd.f32 %v457_v2, %v258_v12  ;;  %v271_v21 = vadd.f32 %v457_v2, %v259_v13  ;;  %v272_v24 = vadd.f32 %v457_v2, %v260_v16  ;;  %v273_v25 = vadd.f32 %v457_v2, %v261_v17 }
  0x15   : > { %v274_v26 = vadd.f32 %v457_v2, %v262_v18  ;;  %v275_v27 = vadd.f32 %v457_v2, %v263_v19  ;;  %v276_v30 = vadd.f32 %v457_v2, %v264_v22  ;;  %v277_v33 = vadd.f32 %v457_v2, %v265_v23 }
  0x16   : > { %v278_v28 = vpack.c.bf16 %v270_v20, %v270_v20  ;;  %v279_v29 = vpack.c.bf16 %v271_v21, %v271_v21  ;;  %v280_v31 = vpack.c.bf16 %v272_v24, %v272_v24  ;;  %v281_v32 = vpack.c.bf16 %v273_v25, %v273_v25 }
  0x17   : > { %v282_v34 = vpack.c.bf16 %v274_v26, %v274_v26  ;;  %v283_v35 = vpack.c.bf16 %v275_v27, %v275_v27  ;;  %v284_v36 = vpack.c.bf16 %v276_v30, %v276_v30  ;;  %v285_v37 = vpack.c.bf16 %v277_v33, %v277_v33 }
  0x18   : > { %287 = vst.msk [vmem:[%s236_s28] sm:$0xf] %vm286_vm0, %v278_v28 }
  0x19   : > { %288 = vst.msk [vmem:[%s236_s28 + $0x4] sm:$0xf] %vm286_vm0, %v279_v29 }
  0x1a   : > { %289 = vst.msk [vmem:[%s236_s28 + $0x8] sm:$0xf] %vm286_vm0, %v280_v31 }
  0x1b   : > { %290 = vst.msk [vmem:[%s236_s28 + $0xc] sm:$0xf] %vm286_vm0, %v281_v32 }
  0x1c   : > { %291 = vst.msk [vmem:[%s236_s28 + $0x10] sm:$0xf] %vm286_vm0, %v282_v34 }
  0x1d   : > { %292 = vst.msk [vmem:[%s236_s28 + $0x14] sm:$0xf] %vm286_vm0, %v283_v35 }
  0x1e   : > { %293 = vst.msk [vmem:[%s236_s28 + $0x18] sm:$0xf] %vm286_vm0, %v284_v36 }
  0x1f   : > { %294 = vst.msk [vmem:[%s236_s28 + $0x1c] sm:$0xf] %vm286_vm0, %v285_v37 }
  0x20 PF: > { %s13_s14 = sadd.s32 1, %s480_s14   ;;  %s562_s12 = smov %s476_s13 }
  0x21   : > { %p10_p5 = scmp.ge.s32.totalorder %s13_s14, 4   ;;  %s563_s13 = smov %s565_s15 }
  0x23   :  { %12 = sbr.rel (!%p10_p5) target bundleno = 2 (0x2), region = 68 }

// kernel: fwd.21
= control target key start
LH: loop header
LB: loop body
LE: loop exit
PB: predicated region body
PF: predicated region fallthrough
CT: control target
= control target key end

     0   :  { %s1081_s9 = smov 0   ;;  %s1083_s10 = smov 0   ;;  %s1158_s0 = inlined_call_operand.vmem [shape: bf16[512,16], index: 0, kind: input, shape index: {}]   ;;  %s1159_s1 = inlined_call_operand.vmem [shape: bf16[16,128], index: 1, kind: input, shape index: {}]   ;;  %s1160_s2 = inlined_call_operand.vmem [shape: bf16[512,128], index: 2, kind: output, shape index: {}]  }
   0x1   :  { %s1085_s11 = smov 0  }
   0x2 LB: > { %s31_s12 = sadd.s32 1, %s1060_s10  ;;  %p812_p0 = scmp.ge.s32.totalorder %s1064_s11, 1  ;;  %s1064_s11 = sphi %s1085_s11, %s12_s11   ;;  %s1060_s10 = sphi %s1083_s10, %s1162_s10   ;;  %s1056_s9 = sphi %s1081_s9, %s1161_s9  }
   0x3   : > { %p33_p1 = scmp.ge.s32.totalorder %s31_s12, 2  ;;  %p155_p2 = scmp.lt.s32.totalorder %s1064_s11, 3 }
   0x5   : > { %s1164_s12 = smov (%p33_p1, %s31_s12), 0  ;;  %p156_p3 = pnand %p812_p0, %p155_p2 }
   0x6   : > { %s813_s15 = sshll.u32 (!%p156_p3), %s1056_s9, 5 }
   0x7   : > { %159 = sbr.rel (%p156_p3) target bundleno = 210 (0xd2), region = 28  ;;  %p192_p4 = scmp.lt.s32.totalorder (!%p156_p3), %s813_s15, 63 }
   0xc   : > { %v919_v0 = vld [vmem:[%s1159_s1] sm:$0xff]  ;;  %s1166_s15 = smov (!%p192_p4, %s813_s15), 63  ;;  %vm407_vm0 = vcmask 130048  }
   0xd   : > { %463 = vmatpush.bf16.msra.mxu0 %v919_v0  ;;  %1015 = vmatpush.bf16.msra.mxu1 %v919_v0  ;;  %s814_s16 = sshll.u32 %s1166_s15, 2 }
   0xe   : > { %1016 = vmatpush.bf16.msra.mxu2 %v919_v0  ;;  %1017 = vmatpush.bf16.msra.mxu3 %v919_v0  ;;  %s198_s19 = scalar_lea.vmem %s1158_s0, %s814_s16  ;;  %s1131_s22 = scalar_lea.vmem %s1160_s2, %s814_s16 }
   0xf   : > { %v903_v1 = vld [vmem:[%s198_s19] sm:$0xff]  ;;  %v904_v5 = vld [vmem:[%s198_s19 + $0x8] sm:$0xff]  ;;  %v905_v9 = vld [vmem:[%s198_s19 + $0x10] sm:$0xff] }
  0x10   : > { %v907_v2 = vld [vmem:[%s198_s19 + $0x20] sm:$0xff]  ;;  %885 = vmatmul.msk.bf16.vlgmr.msra.gmra.mxu0 %vm407_vm0, %v903_v1  ;;  %v908_v6 = vld [vmem:[%s198_s19 + $0x28] sm:$0xff]  ;;  %v909_v10 = vld [vmem:[%s198_s19 + $0x30] sm:$0xff] }
  0x11   : > { %v911_v3 = vld [vmem:[%s198_s19 + $0x40] sm:$0xff]  ;;  %889 = vmatmul.msk.bf16.vlgmr.msra.gmra.mxu1 %vm407_vm0, %v907_v2  ;;  %v912_v7 = vld [vmem:[%s198_s19 + $0x48] sm:$0xff]  ;;  %v913_v11 = vld [vmem:[%s198_s19 + $0x50] sm:$0xff] }
  0x12   : > { %v915_v4 = vld [vmem:[%s198_s19 + $0x60] sm:$0xff]  ;;  %893 = vmatmul.msk.bf16.vlgmr.msra.gmra.mxu2 %vm407_vm0, %v911_v3  ;;  %v916_v8 = vld [vmem:[%s198_s19 + $0x68] sm:$0xff]  ;;  %v917_v12 = vld [vmem:[%s198_s19 + $0x70] sm:$0xff] }
  0x13   : > { %897 = vmatmul.msk.bf16.vlgmr.msra.gmra.mxu3 %vm407_vm0, %v915_v4  ;;  %v906_v13 = vld [vmem:[%s198_s19 + $0x18] sm:$0xff] }
  0x14   : > { %v910_v14 = vld [vmem:[%s198_s19 + $0x38] sm:$0xff] }
  0x15   : > { %v914_v15 = vld [vmem:[%s198_s19 + $0x58] sm:$0xff] }
  0x16   : > { %v918_v16 = vld [vmem:[%s198_s19 + $0x78] sm:$0xff] }
  0x20   : > { %886 = vmatmul.msk.bf16.gmra.mxu0 %vm407_vm0, %v904_v5 }
  0x21   : > { %890 = vmatmul.msk.bf16.gmra.mxu1 %vm407_vm0, %v908_v6 }
  0x22   : > { %894 = vmatmul.msk.bf16.gmra.mxu2 %vm407_vm0, %v912_v7 }
  0x23   : > { %898 = vmatmul.msk.bf16.gmra.mxu3 %vm407_vm0, %v916_v8 }
  0x30   : > { %887 = vmatmul.msk.bf16.gmra.mxu0 %vm407_vm0, %v905_v9 }
  0x31   : > { %891 = vmatmul.msk.bf16.gmra.mxu1 %vm407_vm0, %v909_v10 }
  0x32   : > { %895 = vmatmul.msk.bf16.gmra.mxu2 %vm407_vm0, %v913_v11 }
  0x33   : > { %899 = vmatmul.msk.bf16.gmra.mxu3 %vm407_vm0, %v917_v12 }
  0x40   : > { %888 = vmatmul.msk.bf16.gmra.mxu0 %vm407_vm0, %v906_v13 }
  0x41   : > { %892 = vmatmul.msk.bf16.gmra.mxu1 %vm407_vm0, %v910_v14 }
  0x42   : > { %896 = vmatmul.msk.bf16.gmra.mxu2 %vm407_vm0, %v914_v15 }
  0x43   : > { %900 = vmatmul.msk.bf16.gmra.mxu3 %vm407_vm0, %v918_v16 }
  0x8d   : > { %v465_v17 = vpop.f32.mrf.mxu0 }
  0x8e   : > { %v485_v18 = vpop.f32.mrf.mxu1 }
  0x95   : > { %v505_v19 = vpop.f32.mrf.mxu2  ;;  %v467_v21 = vpop.f32.mrf.mxu0 }
  0x96   : > { %v525_v20 = vpop.f32.mrf.mxu3  ;;  %v487_v22 = vpop.f32.mrf.mxu1  ;;  %v923_v23 = vpack.c.bf16 %v467_v21, %v465_v17 }
  0x97   : > { %v943_v24 = vpack.c.bf16 %v487_v22, %v485_v18 }
  0x98   : > { %924 = vst [vmem:[%s1131_s22] sm:$0xff] %v923_v23  }
  0x99   : > { %1003 = vst [vmem:[%s1131_s22 + $0x20] sm:$0xff] %v943_v24  }
  0x9d   : > { %v507_v25 = vpop.f32.mrf.mxu2  ;;  %v470_v29 = vpop.f32.mrf.mxu0 }
  0x9e   : > { %v527_v26 = vpop.f32.mrf.mxu3  ;;  %v963_v27 = vpack.c.bf16 %v507_v25, %v505_v19  ;;  %v490_v30 = vpop.f32.mrf.mxu1 }
  0x9f   : > { %v983_v28 = vpack.c.bf16 %v527_v26, %v525_v20 }
  0xa0   : > { %1007 = vst [vmem:[%s1131_s22 + $0x40] sm:$0xff] %v963_v27  }
  0xa1   : > { %1011 = vst [vmem:[%s1131_s22 + $0x60] sm:$0xff] %v983_v28  }
  0xa5   : > { %v510_v31 = vpop.f32.mrf.mxu2  ;;  %v472_v33 = vpop.f32.mrf.mxu0 }
  0xa6   : > { %v530_v32 = vpop.f32.mrf.mxu3  ;;  %v492_v34 = vpop.f32.mrf.mxu1  ;;  %v928_v35 = vpack.c.bf16 %v472_v33, %v470_v29 }
  0xa7   : > { %v948_v36 = vpack.c.bf16 %v492_v34, %v490_v30 }
  0xa8   : > { %1000 = vst [vmem:[%s1131_s22 + $0x8] sm:$0xff] %v928_v35  }
  0xa9   : > { %1004 = vst [vmem:[%s1131_s22 + $0x28] sm:$0xff] %v948_v36  }
  0xad   : > { %v512_v37 = vpop.f32.mrf.mxu2  ;;  %v475_v41 = vpop.f32.mrf.mxu0 }
  0xae   : > { %v532_v38 = vpop.f32.mrf.mxu3  ;;  %v968_v39 = vpack.c.bf16 %v512_v37, %v510_v31  ;;  %v495_v42 = vpop.f32.mrf.mxu1 }
  0xaf   : > { %v988_v40 = vpack.c.bf16 %v532_v38, %v530_v32 }
  0xb0   : > { %1008 = vst [vmem:[%s1131_s22 + $0x48] sm:$0xff] %v968_v39  }
  0xb1   : > { %1012 = vst [vmem:[%s1131_s22 + $0x68] sm:$0xff] %v988_v40  }
  0xb5   : > { %v515_v43 = vpop.f32.mrf.mxu2  ;;  %v477_v45 = vpop.f32.mrf.mxu0 }
  0xb6   : > { %v535_v44 = vpop.f32.mrf.mxu3  ;;  %v497_v46 = vpop.f32.mrf.mxu1  ;;  %v933_v47 = vpack.c.bf16 %v477_v45, %v475_v41 }
  0xb7   : > { %v953_v48 = vpack.c.bf16 %v497_v46, %v495_v42 }
  0xb8   : > { %1001 = vst [vmem:[%s1131_s22 + $0x10] sm:$0xff] %v933_v47  }
  0xb9   : > { %1005 = vst [vmem:[%s1131_s22 + $0x30] sm:$0xff] %v953_v48  }
  0xbd   : > { %v517_v49 = vpop.f32.mrf.mxu2  ;;  %v480_v53 = vpop.f32.mrf.mxu0 }
  0xbe   : > { %v537_v50 = vpop.f32.mrf.mxu3  ;;  %v973_v51 = vpack.c.bf16 %v517_v49, %v515_v43  ;;  %v500_v54 = vpop.f32.mrf.mxu1 }
  0xbf   : > { %v993_v52 = vpack.c.bf16 %v537_v50, %v535_v44 }
  0xc0   : > { %1009 = vst [vmem:[%s1131_s22 + $0x50] sm:$0xff] %v973_v51  }
  0xc1   : > { %1013 = vst [vmem:[%s1131_s22 + $0x70] sm:$0xff] %v993_v52  }
  0xc5   : > { %v520_v55 = vpop.f32.mrf.mxu2  ;;  %v482_v57 = vpop.f32.mrf.mxu0 }
  0xc6   : > { %v540_v56 = vpop.f32.mrf.mxu3  ;;  %v502_v58 = vpop.f32.mrf.mxu1  ;;  %v938_v59 = vpack.c.bf16 %v482_v57, %v480_v53 }
  0xc7   : > { %v958_v60 = vpack.c.bf16 %v502_v58, %v500_v54 }
  0xc8   : > { %1002 = vst [vmem:[%s1131_s22 + $0x18] sm:$0xff] %v938_v59  }
  0xc9   : > { %1006 = vst [vmem:[%s1131_s22 + $0x38] sm:$0xff] %v958_v60  }
  0xcd   : > { %v522_v61 = vpop.f32.mrf.mxu2 }
  0xce   : > { %v542_v62 = vpop.f32.mrf.mxu3  ;;  %v978_v63 = vpack.c.bf16 %v522_v61, %v520_v55 }
  0xcf   : > { %v998_v0 = vpack.c.bf16 %v542_v62, %v540_v56 }
  0xd0   : > { %1010 = vst [vmem:[%s1131_s22 + $0x58] sm:$0xff] %v978_v63  }
  0xd1   : > { %1014 = vst [vmem:[%s1131_s22 + $0x78] sm:$0xff] %v998_v0  }
  0xd2 PF: > { %s12_s11 = sadd.s32 1, %s1064_s11   ;;  %s1161_s9 = smov %s1060_s10 }
  0xd3   : > { %p9_p5 = scmp.ge.s32.totalorder %s12_s11, 4   ;;  %s1162_s10 = smov %s1164_s12 }
  0xd5   :  { %11 = sbr.rel (!%p9_p5) target bundleno = 2 (0x2), region = 69 }

// kernel: fwd.22
= control target key start
LH: loop header
LB: loop body
LE: loop exit
PB: predicated region body
PF: predicated region fallthrough
CT: control target
= control target key end

     0   :  { %s666_s9 = smov 0   ;;  %s668_s10 = smov 0   ;;  %s798_s0 = inlined_call_operand.vmem [shape: bf16[2,256,8], index: 0, kind: input, shape index: {}]   ;;  %s799_s1 = inlined_call_operand.vmem [shape: f32[2,1,8], index: 1, kind: output, shape index: {0}]   ;;  %s800_s2 = inlined_call_operand.vmem [shape: f32[2,1,8], index: 2, kind: output, shape index: {1}]  }
   0x1   :  { %s670_s11 = smov 0  }
   0x2 LB: > { %s25_s12 = sadd.s32 1, %s644_s10  ;;  %p516_p0 = scmp.ge.s32.totalorder %s648_s11, 1  ;;  %s648_s11 = sphi %s670_s11, %s13_s11   ;;  %s644_s10 = sphi %s668_s10, %s802_s10   ;;  %s640_s9 = sphi %s666_s9, %s801_s9  }
   0x3   : > { %p27_p1 = scmp.ge.s32.totalorder %s25_s12, 2  ;;  %p134_p2 = scmp.lt.s32.totalorder %s648_s11, 3 }
   0x5   : > { %s804_s12 = smov (%p27_p1, %s25_s12), 0  ;;  %p135_p3 = pnand %p516_p0, %p134_p2 }
   0x6   : > { %p162_p4 = scmp.lt.s32.totalorder (!%p135_p3), %s640_s9, 1 }
   0x7   : > { %138 = sbr.rel (%p135_p3) target bundleno = 101 (0x65), region = 24 }
   0xc   : > { %s806_s9 = smov (!%p162_p4, %s640_s9), 1  ;;  %vm181_vm0 = vcmask 57344   ;;  %v650_v0 = vmov 0.0   ;;  %vm249_vm1 = vcmask 64512  }
   0xd   : > { %s521_s13 = sshll.u32 %s806_s9, 7  ;;  %s687_s16 = scalar_lea.vmem %s799_s1, %s806_s9 }
   0xe   : > { %182 = vst.msk [vmem:[%s687_s16] sm:$0x1] %vm181_vm0, %v650_v0  ;;  %s694_s19 = scalar_lea.vmem %s800_s2, %s806_s9  ;;  %s701_s22 = scalar_lea.vmem %s798_s0, %s521_s13 }
   0xf   : > { %183 = vst.msk [vmem:[%s694_s19] sm:$0x1] %vm181_vm0, %v650_v0  ;;  %v523_v1 = vld [vmem:[%s701_s22] sm:$0xff]   ;;  %v586_v2 = vld [vmem:[%s701_s22 + $0x8] sm:$0xff]   ;;  %v587_v6 = vld [vmem:[%s701_s22 + $0x10] sm:$0xff]  }
  0x10   : > { %v524_v3 = vunpack.c.l.bf16 %v523_v1  ;;  %v525_v4 = vunpack.c.h.bf16 %v523_v1  ;;  %v528_v5 = vunpack.c.l.bf16 %v586_v2  ;;  %v529_v7 = vunpack.c.h.bf16 %v586_v2  ;;  %v588_v14 = vld [vmem:[%s701_s22 + $0x18] sm:$0xff]   ;;  %v589_v21 = vld [vmem:[%s701_s22 + $0x20] sm:$0xff]   ;;  %v590_v31 = vld [vmem:[%s701_s22 + $0x28] sm:$0xff]  }
  0x11   : > { %v532_v12 = vunpack.c.l.bf16 %v587_v6  ;;  %v533_v16 = vunpack.c.h.bf16 %v587_v6  ;;  %v536_v19 = vunpack.c.l.bf16 %v588_v14  ;;  %v537_v23 = vunpack.c.h.bf16 %v588_v14  ;;  %v591_v44 = vld [vmem:[%s701_s22 + $0x30] sm:$0xff]   ;;  %v592_v57 = vld [vmem:[%s701_s22 + $0x38] sm:$0xff]   ;;  %v593_v6 = vld [vmem:[%s701_s22 + $0x40] sm:$0xff]  }
  0x12   : > { %v250_v8 = vsel %vm249_vm1, %v524_v3, 0.0  ;;  %v251_v9 = vsel %vm249_vm1, %v525_v4, 0.0  ;;  %v253_v10 = vsel %vm249_vm1, %v528_v5, 0.0  ;;  %v255_v13 = vsel %vm249_vm1, %v529_v7, 0.0 }
  0x13   : > { %v252_v11 = vadd.f32 %v251_v9, %v250_v8  ;;  %v257_v17 = vsel %vm249_vm1, %v532_v12, 0.0  ;;  %v259_v20 = vsel %vm249_vm1, %v533_v16, 0.0  ;;  %v261_v24 = vsel %vm249_vm1, %v536_v19, 0.0 }
  0x14   : > { %v323_v25 = vmul.f32 %v524_v3, %v524_v3  ;;  %v324_v27 = vmul.f32 %v525_v4, %v525_v4  ;;  %v325_v28 = vmul.f32 %v528_v5, %v528_v5  ;;  %v540_v29 = vunpack.c.l.bf16 %v589_v21 }
  0x15   : > { %v254_v15 = vadd.f32 %v253_v10, %v252_v11  ;;  %v263_v30 = vsel %vm249_vm1, %v537_v23, 0.0  ;;  %v326_v33 = vmul.f32 %v529_v7, %v529_v7  ;;  %v541_v34 = vunpack.c.h.bf16 %v589_v21 }
  0x16   : > { %v265_v35 = vsel %vm249_vm1, %v540_v29, 0.0  ;;  %v355_v36 = vsel %vm249_vm1, %v323_v25, 0.0  ;;  %v327_v38 = vmul.f32 %v532_v12, %v532_v12  ;;  %v356_v39 = vsel %vm249_vm1, %v324_v27, 0.0 }
  0x17   : > { %v256_v18 = vadd.f32 %v255_v13, %v254_v15  ;;  %v358_v40 = vsel %vm249_vm1, %v325_v28, 0.0  ;;  %v544_v41 = vunpack.c.l.bf16 %v590_v31  ;;  %v267_v42 = vsel %vm249_vm1, %v541_v34, 0.0 }
  0x18   : > { %v357_v43 = vadd.f32 %v356_v39, %v355_v36  ;;  %v328_v46 = vmul.f32 %v533_v16, %v533_v16  ;;  %v360_v47 = vsel %vm249_vm1, %v326_v33, 0.0  ;;  %v545_v48 = vunpack.c.h.bf16 %v590_v31 }
  0x19   : > { %v258_v22 = vadd.f32 %v257_v17, %v256_v18  ;;  %v269_v49 = vsel %vm249_vm1, %v544_v41, 0.0  ;;  %v329_v52 = vmul.f32 %v536_v19, %v536_v19  ;;  %v362_v53 = vsel %vm249_vm1, %v327_v38, 0.0  ;;  %v594_v19 = vld [vmem:[%s701_s22 + $0x48] sm:$0xff]  }
  0x1a   : > { %v359_v50 = vadd.f32 %v358_v40, %v357_v43  ;;  %v548_v54 = vunpack.c.l.bf16 %v591_v44  ;;  %v271_v55 = vsel %vm249_vm1, %v545_v48, 0.0  ;;  %v330_v59 = vmul.f32 %v537_v23, %v537_v23 }
  0x1b   : > { %v260_v26 = vadd.f32 %v259_v20, %v258_v22  ;;  %v364_v60 = vsel %vm249_vm1, %v328_v46, 0.0  ;;  %v549_v61 = vunpack.c.h.bf16 %v591_v44  ;;  %v331_v1 = vmul.f32 %v540_v29, %v540_v29 }
  0x1c   : > { %v361_v56 = vadd.f32 %v360_v47, %v359_v50  ;;  %v273_v62 = vsel %vm249_vm1, %v548_v54, 0.0  ;;  %v366_v2 = vsel %vm249_vm1, %v329_v52, 0.0  ;;  %v552_v3 = vunpack.c.l.bf16 %v592_v57 }
  0x1d   : > { %v262_v32 = vadd.f32 %v261_v24, %v260_v26  ;;  %v275_v4 = vsel %vm249_vm1, %v549_v61, 0.0  ;;  %v332_v8 = vmul.f32 %v541_v34, %v541_v34  ;;  %v368_v9 = vsel %vm249_vm1, %v330_v59, 0.0 }
  0x1e   : > { %v363_v63 = vadd.f32 %v362_v53, %v361_v56  ;;  %v553_v10 = vunpack.c.h.bf16 %v592_v57  ;;  %v277_v11 = vsel %vm249_vm1, %v552_v3, 0.0  ;;  %v333_v14 = vmul.f32 %v544_v41, %v544_v41 }
  0x1f   : > { %v264_v37 = vadd.f32 %v263_v30, %v262_v32  ;;  %v370_v15 = vsel %vm249_vm1, %v331_v1, 0.0  ;;  %v556_v16 = vunpack.c.l.bf16 %v593_v6  ;;  %v334_v21 = vmul.f32 %v545_v48, %v545_v48  ;;  %v595_v32 = vld [vmem:[%s701_s22 + $0x50] sm:$0xff]  }
  0x20   : > { %v365_v5 = vadd.f32 %v364_v60, %v363_v63  ;;  %v279_v17 = vsel %vm249_vm1, %v553_v10, 0.0  ;;  %v372_v22 = vsel %vm249_vm1, %v332_v8, 0.0  ;;  %v557_v23 = vunpack.c.h.bf16 %v593_v6 }
  0x21   : > { %v266_v45 = vadd.f32 %v265_v35, %v264_v37  ;;  %v281_v24 = vsel %vm249_vm1, %v556_v16, 0.0  ;;  %v335_v27 = vmul.f32 %v548_v54, %v548_v54  ;;  %v374_v28 = vsel %vm249_vm1, %v333_v14, 0.0 }
  0x22   : > { %v367_v12 = vadd.f32 %v366_v2, %v365_v5  ;;  %v560_v29 = vunpack.c.l.bf16 %v594_v19  ;;  %v283_v30 = vsel %vm249_vm1, %v557_v23, 0.0  ;;  %v336_v34 = vmul.f32 %v549_v61, %v549_v61 }
  0x23   : > { %v268_v51 = vadd.f32 %v267_v42, %v266_v45  ;;  %v376_v35 = vsel %vm249_vm1, %v334_v21, 0.0  ;;  %v561_v36 = vunpack.c.h.bf16 %v594_v19  ;;  %v337_v40 = vmul.f32 %v552_v3, %v552_v3  ;;  %v596_v45 = vld [vmem:[%s701_s22 + $0x58] sm:$0xff]  }
  0x24   : > { %v369_v18 = vadd.f32 %v368_v9, %v367_v12  ;;  %v285_v37 = vsel %vm249_vm1, %v560_v29, 0.0  ;;  %v378_v41 = vsel %vm249_vm1, %v335_v27, 0.0  ;;  %v564_v42 = vunpack.c.l.bf16 %v595_v32 }
  0x25   : > { %v270_v58 = vadd.f32 %v269_v49, %v268_v51  ;;  %v287_v43 = vsel %vm249_vm1, %v561_v36, 0.0  ;;  %v338_v47 = vmul.f32 %v553_v10, %v553_v10  ;;  %v380_v48 = vsel %vm249_vm1, %v336_v34, 0.0 }
  0x26   : > { %v371_v25 = vadd.f32 %v370_v15, %v369_v18  ;;  %v565_v49 = vunpack.c.h.bf16 %v595_v32  ;;  %v289_v50 = vsel %vm249_vm1, %v564_v42, 0.0  ;;  %v339_v53 = vmul.f32 %v556_v16, %v556_v16 }
  0x27   : > { %v272_v0 = vadd.f32 %v271_v55, %v270_v58  ;;  %v382_v54 = vsel %vm249_vm1, %v337_v40, 0.0  ;;  %v568_v55 = vunpack.c.l.bf16 %v596_v45  ;;  %v597_v58 = vld [vmem:[%s701_s22 + $0x60] sm:$0xff]   ;;  %v340_v60 = vmul.f32 %v557_v23, %v557_v23 }
  0x28   : > { %v373_v31 = vadd.f32 %v372_v22, %v371_v25  ;;  %v291_v56 = vsel %vm249_vm1, %v565_v49, 0.0  ;;  %v384_v61 = vsel %vm249_vm1, %v338_v47, 0.0  ;;  %v341_v2 = vmul.f32 %v560_v29, %v560_v29 }
  0x29   : > { %v274_v7 = vadd.f32 %v273_v62, %v272_v0  ;;  %v569_v62 = vunpack.c.h.bf16 %v596_v45  ;;  %v293_v63 = vsel %vm249_vm1, %v568_v55, 0.0  ;;  %v386_v3 = vsel %vm249_vm1, %v339_v53, 0.0 }
  0x2a   : > { %v375_v38 = vadd.f32 %v374_v28, %v373_v31  ;;  %v342_v9 = vmul.f32 %v561_v36, %v561_v36  ;;  %v388_v10 = vsel %vm249_vm1, %v340_v60, 0.0  ;;  %v343_v15 = vmul.f32 %v564_v42, %v564_v42 }
  0x2b   : > { %v276_v13 = vadd.f32 %v275_v4, %v274_v7  ;;  %v572_v4 = vunpack.c.l.bf16 %v597_v58  ;;  %v295_v5 = vsel %vm249_vm1, %v569_v62, 0.0  ;;  %v598_v7 = vld [vmem:[%s701_s22 + $0x68] sm:$0xff]   ;;  %v390_v16 = vsel %vm249_vm1, %v341_v2, 0.0 }
  0x2c   : > { %v377_v44 = vadd.f32 %v376_v35, %v375_v38  ;;  %v344_v22 = vmul.f32 %v565_v49, %v565_v49  ;;  %v392_v23 = vsel %vm249_vm1, %v342_v9, 0.0  ;;  %v345_v28 = vmul.f32 %v568_v55, %v568_v55 }
  0x2d   : > { %v278_v20 = vadd.f32 %v277_v11, %v276_v13  ;;  %v573_v11 = vunpack.c.h.bf16 %v597_v58  ;;  %v297_v12 = vsel %vm249_vm1, %v572_v4, 0.0  ;;  %v394_v29 = vsel %vm249_vm1, %v343_v15, 0.0 }
  0x2e   : > { %v379_v51 = vadd.f32 %v378_v41, %v377_v44  ;;  %v346_v35 = vmul.f32 %v569_v62, %v569_v62  ;;  %v396_v36 = vsel %vm249_vm1, %v344_v22, 0.0  ;;  %v347_v41 = vmul.f32 %v572_v4, %v572_v4 }
  0x2f   : > { %v280_v26 = vadd.f32 %v279_v17, %v278_v20  ;;  %v576_v17 = vunpack.c.l.bf16 %v598_v7  ;;  %v299_v18 = vsel %vm249_vm1, %v573_v11, 0.0  ;;  %v599_v20 = vld [vmem:[%s701_s22 + $0x70] sm:$0xff]   ;;  %v398_v42 = vsel %vm249_vm1, %v345_v28, 0.0  ;;  %v322_v28 = vld [vmem:[%s694_s19] sm:$0x1] }
  0x30   : > { %v381_v57 = vadd.f32 %v380_v48, %v379_v51  ;;  %v348_v47 = vmul.f32 %v573_v11, %v573_v11  ;;  %v400_v48 = vsel %vm249_vm1, %v346_v35, 0.0 }
  0x31   : > { %v282_v33 = vadd.f32 %v281_v24, %v280_v26  ;;  %v577_v24 = vunpack.c.h.bf16 %v598_v7  ;;  %v301_v25 = vsel %vm249_vm1, %v576_v17, 0.0  ;;  %v349_v53 = vmul.f32 %v576_v17, %v576_v17 }
  0x32   : > { %v383_v0 = vadd.f32 %v382_v54, %v381_v57  ;;  %v402_v54 = vsel %vm249_vm1, %v347_v41, 0.0 }
  0x33   : > { %v284_v39 = vadd.f32 %v283_v30, %v282_v33  ;;  %v580_v30 = vunpack.c.l.bf16 %v599_v20  ;;  %v303_v31 = vsel %vm249_vm1, %v577_v24, 0.0  ;;  %v600_v33 = vld [vmem:[%s701_s22 + $0x78] sm:$0xff]   ;;  %v350_v58 = vmul.f32 %v577_v24, %v577_v24 }
  0x34   : > { %v385_v6 = vadd.f32 %v384_v61, %v383_v0  ;;  %v585_v49 = vunpack.c.h.bf16 %v600_v33 }
  0x35   : > { %v286_v46 = vadd.f32 %v285_v37, %v284_v39  ;;  %v581_v37 = vunpack.c.h.bf16 %v599_v20  ;;  %v305_v38 = vsel %vm249_vm1, %v580_v30, 0.0  ;;  %v351_v62 = vmul.f32 %v580_v30, %v580_v30 }
  0x36   : > { %v387_v13 = vadd.f32 %v386_v3, %v385_v6  ;;  %v311_v55 = vsel %vm249_vm1, %v585_v49, 0.0  ;;  %v408_v3 = vsel %vm249_vm1, %v350_v58, 0.0 }
  0x37   : > { %v288_v52 = vadd.f32 %v287_v43, %v286_v46  ;;  %v584_v43 = vunpack.c.l.bf16 %v600_v33  ;;  %v307_v44 = vsel %vm249_vm1, %v581_v37, 0.0  ;;  %v352_v2 = vmul.f32 %v581_v37, %v581_v37 }
  0x38   : > { %v389_v19 = vadd.f32 %v388_v10, %v387_v13  ;;  %v410_v7 = vsel %vm249_vm1, %v351_v62, 0.0  ;;  %v354_v10 = vmul.f32 %v585_v49, %v585_v49 }
  0x39   : > { %v290_v59 = vadd.f32 %v289_v50, %v288_v52  ;;  %v309_v50 = vsel %vm249_vm1, %v584_v43, 0.0  ;;  %v353_v6 = vmul.f32 %v584_v43, %v584_v43  ;;  %v412_v11 = vsel %vm249_vm1, %v352_v2, 0.0 }
  0x3a   : > { %v391_v26 = vadd.f32 %v390_v16, %v389_v19  ;;  %v416_v17 = vsel %vm249_vm1, %v354_v10, 0.0 }
  0x3b   : > { %v292_v1 = vadd.f32 %v291_v56, %v290_v59  ;;  %v404_v59 = vsel %vm249_vm1, %v348_v47, 0.0 }
  0x3c   : > { %v393_v32 = vadd.f32 %v392_v23, %v391_v26 }
  0x3d   : > { %v294_v8 = vadd.f32 %v293_v63, %v292_v1  ;;  %v406_v63 = vsel %vm249_vm1, %v349_v53, 0.0 }
  0x3e   : > { %v395_v39 = vadd.f32 %v394_v29, %v393_v32 }
  0x3f   : > { %v296_v14 = vadd.f32 %v295_v5, %v294_v8 }
  0x40   : > { %v397_v45 = vadd.f32 %v396_v36, %v395_v39 }
  0x41   : > { %v298_v21 = vadd.f32 %v297_v12, %v296_v14  ;;  %v414_v14 = vsel %vm249_vm1, %v353_v6, 0.0 }
  0x42   : > { %v399_v51 = vadd.f32 %v398_v42, %v397_v45 }
  0x43   : > { %v300_v27 = vadd.f32 %v299_v18, %v298_v21  ;;  %v248_v18 = vld [vmem:[%s687_s16] sm:$0x1] }
  0x44   : > { %v401_v56 = vadd.f32 %v400_v48, %v399_v51 }
  0x45   : > { %v302_v34 = vadd.f32 %v301_v25, %v300_v27 }
  0x46   : > { %v403_v60 = vadd.f32 %v402_v54, %v401_v56 }
  0x47   : > { %v304_v40 = vadd.f32 %v303_v31, %v302_v34 }
  0x48   : > { %v405_v0 = vadd.f32 %v404_v59, %v403_v60 }
  0x49   : > { %v306_v46 = vadd.f32 %v305_v38, %v304_v40 }
  0x4a   : > { %v407_v4 = vadd.f32 %v406_v63, %v405_v0 }
  0x4b   : > { %v308_v52 = vadd.f32 %v307_v44, %v306_v46 }
  0x4c   : > { %v409_v8 = vadd.f32 %v408_v3, %v407_v4 }
  0x4d   : > { %v310_v57 = vadd.f32 %v309_v50, %v308_v52 }
  0x4e   : > { %v411_v12 = vadd.f32 %v410_v7, %v409_v8 }
  0x4f   : > { %v312_v61 = vadd.f32 %v311_v55, %v310_v57 }
  0x50   : > { %v413_v15 = vadd.f32 %v412_v11, %v411_v12 }
  0x51   : > { %v313_v1 = vrot.slane %v312_v61, 4 }
  0x52   : > { %v415_v19 = vadd.f32 %v414_v14, %v413_v15 }
  0x53   : > { %v314_v5 = vadd.f32 %v313_v1, %v312_v61 }
  0x54   : > { %v417_v21 = vadd.f32 %v416_v17, %v415_v19 }
  0x55   : > { %v315_v9 = vrot.slane %v314_v5, 2 }
  0x56   : > { %v418_v23 = vrot.slane %v417_v21, 4 }
  0x57   : > { %v316_v13 = vadd.f32 %v315_v9, %v314_v5 }
  0x58   : > { %v419_v24 = vadd.f32 %v418_v23, %v417_v21 }
  0x59   : > { %v317_v16 = vrot.slane %v316_v13, 1 }
  0x5a   : > { %v420_v25 = vrot.slane %v419_v24, 2 }
  0x5b   : > { %v318_v20 = vadd.f32 %v317_v16, %v316_v13 }
  0x5c   : > { %v421_v26 = vadd.f32 %v420_v25, %v419_v24 }
  0x5d   : > { %v319_v22 = vadd.f32 %v318_v20, %v248_v18 }
  0x5e   : > { %v422_v27 = vrot.slane %v421_v26, 1 }
  0x5f   : > { %321 = vst.msk [vmem:[%s687_s16] sm:$0x1] %vm181_vm0, %v319_v22 }
  0x60   : > { %v423_v29 = vadd.f32 %v422_v27, %v421_v26 }
  0x62   : > { %v424_v30 = vadd.f32 %v423_v29, %v322_v28 }
  0x64   : > { %425 = vst.msk [vmem:[%s694_s19] sm:$0x1] %vm181_vm0, %v424_v30 }
  0x65 PF: > { %s13_s11 = sadd.s32 1, %s648_s11   ;;  %s801_s9 = smov %s644_s10 }
  0x66   : > { %p10_p5 = scmp.ge.s32.totalorder %s13_s11, 4   ;;  %s802_s10 = smov %s804_s12 }
  0x68   :  { %12 = sbr.rel (!%p10_p5) target bundleno = 2 (0x2), region = 70 }

// kernel: fwd.23
= control target key start
LH: loop header
LB: loop body
LE: loop exit
PB: predicated region body
PF: predicated region fallthrough
CT: control target
= control target key end

     0   :  { %s738_s12 = smov 0   ;;  %s740_s13 = smov 0   ;;  %s938_s0 = inlined_call_operand.vmem [shape: bf16[2,256,8], index: 0, kind: input, shape index: {}]   ;;  %s939_s1 = inlined_call_operand.vmem [shape: f32[2,1,8], index: 1, kind: input, shape index: {}]   ;;  %s940_s2 = inlined_call_operand.vmem [shape: f32[2,1,8], index: 2, kind: input, shape index: {}]   ;;  %s941_s3 = inlined_call_operand.vmem [shape: bf16[2,256,8], index: 3, kind: output, shape index: {}]  }
   0x1   :  { %s742_s14 = smov 0  }
   0x2 LB: > { %s25_s15 = sadd.s32 1, %s712_s13  ;;  %p580_p0 = scmp.ge.s32.totalorder %s716_s14, 1  ;;  %s716_s14 = sphi %s742_s14, %s13_s14   ;;  %s712_s13 = sphi %s740_s13, %s943_s13   ;;  %s708_s12 = sphi %s738_s12, %s942_s12  }
   0x3   : > { %p27_p1 = scmp.ge.s32.totalorder %s25_s15, 2  ;;  %p174_p2 = scmp.lt.s32.totalorder %s716_s14, 3 }
   0x5   : > { %s945_s15 = smov (%p27_p1, %s25_s15), 0  ;;  %p175_p3 = pnand %p580_p0, %p174_p2 }
   0x6   : > { %p213_p4 = scmp.lt.s32.totalorder (!%p175_p3), %s708_s12, 1 }
   0x7   : > { %178 = sbr.rel (%p175_p3) target bundleno = 64 (0x40), region = 32 }
   0xc   : > { %s947_s12 = smov (!%p213_p4, %s708_s12), 1  ;;  %vm438_vm0 = vcmask 60416  }
   0xd   : > { %s587_s16 = sshll.u32 %s947_s12, 7  ;;  %s224_s19 = scalar_lea.vmem %s939_s1, %s947_s12 }
   0xe   : > { %s768_s22 = scalar_lea.vmem %s938_s0, %s587_s16  ;;  %s227_s25 = scalar_lea.vmem %s940_s2, %s947_s12  ;;  %v774_v0 = vld [vmem:[%s224_s19] ss:$0 sm:$0xff] }
   0xf   : > { %v590_v1 = vld [vmem:[%s768_s22] sm:$0xff]   ;;  %v653_v5 = vld [vmem:[%s768_s22 + $0x8] sm:$0xff]   ;;  %v654_v6 = vld [vmem:[%s768_s22 + $0x10] sm:$0xff]   ;;  %s803_s28 = scalar_lea.vmem %s941_s3, %s587_s16 }
  0x10   : > { %v777_v2 = vld [vmem:[%s227_s25] ss:$0 sm:$0xff]  ;;  %v591_v3 = vunpack.c.l.bf16 %v590_v1  ;;  %v592_v4 = vunpack.c.h.bf16 %v590_v1  ;;  %v655_v7 = vld [vmem:[%s768_s22 + $0x18] sm:$0xff]   ;;  %v595_v8 = vunpack.c.l.bf16 %v653_v5  ;;  %v596_v9 = vunpack.c.h.bf16 %v653_v5  ;;  %v657_v41 = vld [vmem:[%s768_s22 + $0x28] sm:$0xff]  }
  0x11   : > { %v599_v10 = vunpack.c.l.bf16 %v654_v6  ;;  %v600_v11 = vunpack.c.h.bf16 %v654_v6  ;;  %v603_v14 = vunpack.c.l.bf16 %v655_v7  ;;  %v604_v15 = vunpack.c.h.bf16 %v655_v7  ;;  %v656_v36 = vld [vmem:[%s768_s22 + $0x20] sm:$0xff]   ;;  %v658_v42 = vld [vmem:[%s768_s22 + $0x30] sm:$0xff]   ;;  %v659_v47 = vld [vmem:[%s768_s22 + $0x38] sm:$0xff]  }
  0x12   : > { %v306_v12 = vmul.f32 %v774_v0, %v591_v3  ;;  %v307_v13 = vmul.f32 %v774_v0, %v592_v4  ;;  %v308_v16 = vmul.f32 %v774_v0, %v595_v8  ;;  %v309_v17 = vmul.f32 %v774_v0, %v596_v9 }
  0x13   : > { %v310_v18 = vmul.f32 %v774_v0, %v599_v10  ;;  %v311_v19 = vmul.f32 %v774_v0, %v600_v11  ;;  %v312_v22 = vmul.f32 %v774_v0, %v603_v14  ;;  %v313_v23 = vmul.f32 %v774_v0, %v604_v15  ;;  %v660_v14 = vld [vmem:[%s768_s22 + $0x40] sm:$0xff]  }
  0x14   : > { %v342_v20 = vadd.f32 %v777_v2, %v306_v12  ;;  %v343_v21 = vadd.f32 %v777_v2, %v307_v13  ;;  %v344_v24 = vadd.f32 %v777_v2, %v308_v16  ;;  %v345_v25 = vadd.f32 %v777_v2, %v309_v17 }
  0x15   : > { %v346_v26 = vadd.f32 %v777_v2, %v310_v18  ;;  %v347_v27 = vadd.f32 %v777_v2, %v311_v19  ;;  %v348_v30 = vadd.f32 %v777_v2, %v312_v22  ;;  %v349_v31 = vadd.f32 %v777_v2, %v313_v23  ;;  %v661_v23 = vld [vmem:[%s768_s22 + $0x48] sm:$0xff]  }
  0x16   : > { %v374_v28 = vmax.f32 %v342_v20, 0.0  ;;  %v375_v29 = vmax.f32 %v343_v21, 0.0  ;;  %v376_v32 = vmax.f32 %v344_v24, 0.0  ;;  %v377_v33 = vmax.f32 %v345_v25, 0.0  ;;  %v662_v24 = vld [vmem:[%s768_s22 + $0x50] sm:$0xff]  }
  0x17   : > { %v378_v34 = vmax.f32 %v346_v26, 0.0  ;;  %v379_v35 = vmax.f32 %v347_v27, 0.0  ;;  %v380_v39 = vmax.f32 %v348_v30, 0.0  ;;  %v381_v40 = vmax.f32 %v349_v31, 0.0 }
  0x18   : > { %v406_v37 = vpack.c.bf16 %v374_v28, %v374_v28  ;;  %v407_v38 = vpack.c.bf16 %v375_v29, %v375_v29  ;;  %v408_v43 = vpack.c.bf16 %v376_v32, %v376_v32  ;;  %v409_v44 = vpack.c.bf16 %v377_v33, %v377_v33  ;;  %v663_v29 = vld [vmem:[%s768_s22 + $0x58] sm:$0xff]  }
  0x19   : > { %v410_v45 = vpack.c.bf16 %v378_v34, %v378_v34  ;;  %v411_v46 = vpack.c.bf16 %v379_v35, %v379_v35  ;;  %v412_v48 = vpack.c.bf16 %v380_v39, %v380_v39  ;;  %v413_v49 = vpack.c.bf16 %v381_v40, %v381_v40 }
  0x1a   : > { %439 = vst.msk [vmem:[%s803_s28] sm:$0xf] %vm438_vm0, %v406_v37  ;;  %v607_v50 = vunpack.c.l.bf16 %v656_v36  ;;  %v608_v51 = vunpack.c.h.bf16 %v656_v36  ;;  %v611_v52 = vunpack.c.l.bf16 %v657_v41  ;;  %v612_v53 = vunpack.c.h.bf16 %v657_v41 }
  0x1b   : > { %440 = vst.msk [vmem:[%s803_s28 + $0x4] sm:$0xf] %vm438_vm0, %v407_v38  ;;  %v615_v54 = vunpack.c.l.bf16 %v658_v42  ;;  %v616_v55 = vunpack.c.h.bf16 %v658_v42  ;;  %v619_v58 = vunpack.c.l.bf16 %v659_v47  ;;  %v620_v59 = vunpack.c.h.bf16 %v659_v47 }
  0x1c   : > { %441 = vst.msk [vmem:[%s803_s28 + $0x8] sm:$0xf] %vm438_vm0, %v408_v43  ;;  %v314_v56 = vmul.f32 %v774_v0, %v607_v50  ;;  %v315_v57 = vmul.f32 %v774_v0, %v608_v51  ;;  %v316_v60 = vmul.f32 %v774_v0, %v611_v52  ;;  %v317_v61 = vmul.f32 %v774_v0, %v612_v53 }
  0x1d   : > { %442 = vst.msk [vmem:[%s803_s28 + $0xc] sm:$0xf] %vm438_vm0, %v409_v44  ;;  %v318_v62 = vmul.f32 %v774_v0, %v615_v54  ;;  %v319_v63 = vmul.f32 %v774_v0, %v616_v55  ;;  %v320_v4 = vmul.f32 %v774_v0, %v619_v58  ;;  %v321_v5 = vmul.f32 %v774_v0, %v620_v59  ;;  %v664_v58 = vld [vmem:[%s768_s22 + $0x60] sm:$0xff]  }
  0x1e   : > { %443 = vst.msk [vmem:[%s803_s28 + $0x10] sm:$0xf] %vm438_vm0, %v410_v45  ;;  %v350_v1 = vadd.f32 %v777_v2, %v314_v56  ;;  %v351_v3 = vadd.f32 %v777_v2, %v315_v57  ;;  %v352_v6 = vadd.f32 %v777_v2, %v316_v60  ;;  %v353_v7 = vadd.f32 %v777_v2, %v317_v61 }
  0x1f   : > { %444 = vst.msk [vmem:[%s803_s28 + $0x14] sm:$0xf] %vm438_vm0, %v411_v46  ;;  %v354_v8 = vadd.f32 %v777_v2, %v318_v62  ;;  %v355_v9 = vadd.f32 %v777_v2, %v319_v63  ;;  %v356_v12 = vadd.f32 %v777_v2, %v320_v4  ;;  %v357_v13 = vadd.f32 %v777_v2, %v321_v5  ;;  %v665_v5 = vld [vmem:[%s768_s22 + $0x68] sm:$0xff]  }
  0x20   : > { %445 = vst.msk [vmem:[%s803_s28 + $0x18] sm:$0xf] %vm438_vm0, %v412_v48  ;;  %v382_v10 = vmax.f32 %v350_v1, 0.0  ;;  %v383_v11 = vmax.f32 %v351_v3, 0.0  ;;  %v384_v15 = vmax.f32 %v352_v6, 0.0  ;;  %v385_v16 = vmax.f32 %v353_v7, 0.0 }
  0x21   : > { %446 = vst.msk [vmem:[%s803_s28 + $0x1c] sm:$0xf] %vm438_vm0, %v413_v49  ;;  %v386_v17 = vmax.f32 %v354_v8, 0.0  ;;  %v387_v18 = vmax.f32 %v355_v9, 0.0  ;;  %v388_v21 = vmax.f32 %v356_v12, 0.0  ;;  %v389_v22 = vmax.f32 %v357_v13, 0.0 }
  0x22   : > { %v414_v19 = vpack.c.bf16 %v382_v10, %v382_v10  ;;  %v415_v20 = vpack.c.bf16 %v383_v11, %v383_v11  ;;  %v416_v25 = vpack.c.bf16 %v384_v15, %v384_v15  ;;  %v417_v26 = vpack.c.bf16 %v385_v16, %v385_v16  ;;  %v666_v6 = vld [vmem:[%s768_s22 + $0x70] sm:$0xff]   ;;  %v667_v11 = vld [vmem:[%s768_s22 + $0x78] sm:$0xff]  }
  0x23   : > { %v418_v27 = vpack.c.bf16 %v386_v17, %v386_v17  ;;  %v419_v28 = vpack.c.bf16 %v387_v18, %v387_v18  ;;  %v420_v30 = vpack.c.bf16 %v388_v21, %v388_v21  ;;  %v421_v31 = vpack.c.bf16 %v389_v22, %v389_v22 }
  0x24   : > { %447 = vst.msk [vmem:[%s803_s28 + $0x20] sm:$0xf] %vm438_vm0, %v414_v19  ;;  %v623_v32 = vunpack.c.l.bf16 %v660_v14  ;;  %v624_v33 = vunpack.c.h.bf16 %v660_v14  ;;  %v627_v34 = vunpack.c.l.bf16 %v661_v23  ;;  %v628_v35 = vunpack.c.h.bf16 %v661_v23 }
  0x25   : > { %448 = vst.msk [vmem:[%s803_s28 + $0x24] sm:$0xf] %vm438_vm0, %v415_v20  ;;  %v631_v36 = vunpack.c.l.bf16 %v662_v24  ;;  %v632_v37 = vunpack.c.h.bf16 %v662_v24  ;;  %v635_v40 = vunpack.c.l.bf16 %v663_v29  ;;  %v636_v41 = vunpack.c.h.bf16 %v663_v29 }
  0x26   : > { %449 = vst.msk [vmem:[%s803_s28 + $0x28] sm:$0xf] %vm438_vm0, %v416_v25  ;;  %v322_v38 = vmul.f32 %v774_v0, %v623_v32  ;;  %v323_v39 = vmul.f32 %v774_v0, %v624_v33  ;;  %v324_v42 = vmul.f32 %v774_v0, %v627_v34  ;;  %v325_v43 = vmul.f32 %v774_v0, %v628_v35 }
  0x27   : > { %450 = vst.msk [vmem:[%s803_s28 + $0x2c] sm:$0xf] %vm438_vm0, %v417_v26  ;;  %v326_v44 = vmul.f32 %v774_v0, %v631_v36  ;;  %v327_v45 = vmul.f32 %v774_v0, %v632_v37  ;;  %v328_v48 = vmul.f32 %v774_v0, %v635_v40  ;;  %v329_v49 = vmul.f32 %v774_v0, %v636_v41 }
  0x28   : > { %451 = vst.msk [vmem:[%s803_s28 + $0x30] sm:$0xf] %vm438_vm0, %v418_v27  ;;  %v358_v46 = vadd.f32 %v777_v2, %v322_v38  ;;  %v359_v47 = vadd.f32 %v777_v2, %v323_v39  ;;  %v360_v50 = vadd.f32 %v777_v2, %v324_v42  ;;  %v361_v51 = vadd.f32 %v777_v2, %v325_v43 }
  0x29   : > { %452 = vst.msk [vmem:[%s803_s28 + $0x34] sm:$0xf] %vm438_vm0, %v419_v28  ;;  %v362_v52 = vadd.f32 %v777_v2, %v326_v44  ;;  %v363_v53 = vadd.f32 %v777_v2, %v327_v45  ;;  %v364_v56 = vadd.f32 %v777_v2, %v328_v48  ;;  %v365_v57 = vadd.f32 %v777_v2, %v329_v49 }
  0x2a   : > { %453 = vst.msk [vmem:[%s803_s28 + $0x38] sm:$0xf] %vm438_vm0, %v420_v30  ;;  %v390_v54 = vmax.f32 %v358_v46, 0.0  ;;  %v391_v55 = vmax.f32 %v359_v47, 0.0  ;;  %v392_v59 = vmax.f32 %v360_v50, 0.0  ;;  %v393_v60 = vmax.f32 %v361_v51, 0.0 }
  0x2b   : > { %454 = vst.msk [vmem:[%s803_s28 + $0x3c] sm:$0xf] %vm438_vm0, %v421_v31  ;;  %v394_v61 = vmax.f32 %v362_v52, 0.0  ;;  %v395_v62 = vmax.f32 %v363_v53, 0.0  ;;  %v396_v3 = vmax.f32 %v364_v56, 0.0  ;;  %v397_v4 = vmax.f32 %v365_v57, 0.0 }
  0x2c   : > { %v422_v63 = vpack.c.bf16 %v390_v54, %v390_v54  ;;  %v423_v1 = vpack.c.bf16 %v391_v55, %v391_v55  ;;  %v424_v7 = vpack.c.bf16 %v392_v59, %v392_v59  ;;  %v425_v8 = vpack.c.bf16 %v393_v60, %v393_v60 }
  0x2d   : > { %v426_v9 = vpack.c.bf16 %v394_v61, %v394_v61  ;;  %v427_v10 = vpack.c.bf16 %v395_v62, %v395_v62  ;;  %v428_v12 = vpack.c.bf16 %v396_v3, %v396_v3  ;;  %v429_v13 = vpack.c.bf16 %v397_v4, %v397_v4 }
  0x2e   : > { %455 = vst.msk [vmem:[%s803_s28 + $0x40] sm:$0xf] %vm438_vm0, %v422_v63  ;;  %v639_v14 = vunpack.c.l.bf16 %v664_v58  ;;  %v640_v15 = vunpack.c.h.bf16 %v664_v58  ;;  %v643_v16 = vunpack.c.l.bf16 %v665_v5  ;;  %v644_v17 = vunpack.c.h.bf16 %v665_v5 }
  0x2f   : > { %456 = vst.msk [vmem:[%s803_s28 + $0x44] sm:$0xf] %vm438_vm0, %v423_v1  ;;  %v647_v18 = vunpack.c.l.bf16 %v666_v6  ;;  %v648_v19 = vunpack.c.h.bf16 %v666_v6  ;;  %v651_v22 = vunpack.c.l.bf16 %v667_v11  ;;  %v652_v23 = vunpack.c.h.bf16 %v667_v11 }
  0x30   : > { %457 = vst.msk [vmem:[%s803_s28 + $0x48] sm:$0xf] %vm438_vm0, %v424_v7  ;;  %v330_v20 = vmul.f32 %v774_v0, %v639_v14  ;;  %v331_v21 = vmul.f32 %v774_v0, %v640_v15  ;;  %v332_v24 = vmul.f32 %v774_v0, %v643_v16  ;;  %v333_v25 = vmul.f32 %v774_v0, %v644_v17 }
  0x31   : > { %458 = vst.msk [vmem:[%s803_s28 + $0x4c] sm:$0xf] %vm438_vm0, %v425_v8  ;;  %v334_v26 = vmul.f32 %v774_v0, %v647_v18  ;;  %v335_v27 = vmul.f32 %v774_v0, %v648_v19  ;;  %v336_v30 = vmul.f32 %v774_v0, %v651_v22  ;;  %v337_v31 = vmul.f32 %v774_v0, %v652_v23 }
  0x32   : > { %459 = vst.msk [vmem:[%s803_s28 + $0x50] sm:$0xf] %vm438_vm0, %v426_v9  ;;  %v366_v28 = vadd.f32 %v777_v2, %v330_v20  ;;  %v367_v29 = vadd.f32 %v777_v2, %v331_v21  ;;  %v368_v32 = vadd.f32 %v777_v2, %v332_v24  ;;  %v369_v33 = vadd.f32 %v777_v2, %v333_v25 }
  0x33   : > { %460 = vst.msk [vmem:[%s803_s28 + $0x54] sm:$0xf] %vm438_vm0, %v427_v10  ;;  %v370_v34 = vadd.f32 %v777_v2, %v334_v26  ;;  %v371_v35 = vadd.f32 %v777_v2, %v335_v27  ;;  %v372_v38 = vadd.f32 %v777_v2, %v336_v30  ;;  %v373_v0 = vadd.f32 %v777_v2, %v337_v31 }
  0x34   : > { %461 = vst.msk [vmem:[%s803_s28 + $0x58] sm:$0xf] %vm438_vm0, %v428_v12  ;;  %v398_v36 = vmax.f32 %v366_v28, 0.0  ;;  %v399_v37 = vmax.f32 %v367_v29, 0.0  ;;  %v400_v39 = vmax.f32 %v368_v32, 0.0  ;;  %v401_v40 = vmax.f32 %v369_v33, 0.0 }
  0x35   : > { %462 = vst.msk [vmem:[%s803_s28 + $0x5c] sm:$0xf] %vm438_vm0, %v429_v13  ;;  %v402_v41 = vmax.f32 %v370_v34, 0.0  ;;  %v403_v42 = vmax.f32 %v371_v35, 0.0  ;;  %v404_v45 = vmax.f32 %v372_v38, 0.0  ;;  %v405_v48 = vmax.f32 %v373_v0, 0.0 }
  0x36   : > { %v430_v43 = vpack.c.bf16 %v398_v36, %v398_v36  ;;  %v431_v44 = vpack.c.bf16 %v399_v37, %v399_v37  ;;  %v432_v46 = vpack.c.bf16 %v400_v39, %v400_v39  ;;  %v433_v47 = vpack.c.bf16 %v401_v40, %v401_v40 }
  0x37   : > { %v434_v2 = vpack.c.bf16 %v402_v41, %v402_v41  ;;  %v435_v49 = vpack.c.bf16 %v403_v42, %v403_v42  ;;  %v436_v50 = vpack.c.bf16 %v404_v45, %v404_v45  ;;  %v437_v51 = vpack.c.bf16 %v405_v48, %v405_v48 }
  0x38   : > { %463 = vst.msk [vmem:[%s803_s28 + $0x60] sm:$0xf] %vm438_vm0, %v430_v43 }
  0x39   : > { %464 = vst.msk [vmem:[%s803_s28 + $0x64] sm:$0xf] %vm438_vm0, %v431_v44 }
  0x3a   : > { %465 = vst.msk [vmem:[%s803_s28 + $0x68] sm:$0xf] %vm438_vm0, %v432_v46 }
  0x3b   : > { %466 = vst.msk [vmem:[%s803_s28 + $0x6c] sm:$0xf] %vm438_vm0, %v433_v47 }
  0x3c   : > { %467 = vst.msk [vmem:[%s803_s28 + $0x70] sm:$0xf] %vm438_vm0, %v434_v2 }
  0x3d   : > { %468 = vst.msk [vmem:[%s803_s28 + $0x74] sm:$0xf] %vm438_vm0, %v435_v49 }
  0x3e   : > { %469 = vst.msk [vmem:[%s803_s28 + $0x78] sm:$0xf] %vm438_vm0, %v436_v50 }
  0x3f   : > { %470 = vst.msk [vmem:[%s803_s28 + $0x7c] sm:$0xf] %vm438_vm0, %v437_v51 }
  0x40 PF: > { %s13_s14 = sadd.s32 1, %s716_s14   ;;  %s942_s12 = smov %s712_s13 }
  0x41   : > { %p10_p5 = scmp.ge.s32.totalorder %s13_s14, 4   ;;  %s943_s13 = smov %s945_s15 }
  0x43   :  { %12 = sbr.rel (!%p10_p5) target bundleno = 2 (0x2), region = 68 }

// kernel: fwd.25
= control target key start
LH: loop header
LB: loop body
LE: loop exit
PB: predicated region body
PF: predicated region fallthrough
CT: control target
= control target key end

     0   :  { %s438_s9 = smov 0   ;;  %s440_s10 = smov 0   ;;  %s504_s0 = inlined_call_operand.vmem [shape: bf16[2,64,8], index: 0, kind: input, shape index: {}]   ;;  %s505_s1 = inlined_call_operand.vmem [shape: f32[2,1,8], index: 1, kind: output, shape index: {0}]   ;;  %s506_s2 = inlined_call_operand.vmem [shape: f32[2,1,8], index: 2, kind: output, shape index: {1}]  }
   0x1   :  { %s442_s11 = smov 0  }
   0x2 LB: > { %s25_s12 = sadd.s32 1, %s416_s10  ;;  %p348_p0 = scmp.ge.s32.totalorder %s420_s11, 1  ;;  %s420_s11 = sphi %s442_s11, %s13_s11   ;;  %s416_s10 = sphi %s440_s10, %s508_s10   ;;  %s412_s9 = sphi %s438_s9, %s507_s9  }
   0x3   : > { %p27_p1 = scmp.ge.s32.totalorder %s25_s12, 2  ;;  %p134_p2 = scmp.lt.s32.totalorder %s420_s11, 3 }
   0x5   : > { %s510_s12 = smov (%p27_p1, %s25_s12), 0  ;;  %p135_p3 = pnand %p348_p0, %p134_p2 }
   0x6   : > { %p162_p4 = scmp.lt.s32.totalorder (!%p135_p3), %s412_s9, 1 }
   0x7   : > { %138 = sbr.rel (%p135_p3) target bundleno = 51 (0x33), region = 24 }
   0xc   : > { %s512_s9 = smov (!%p162_p4, %s412_s9), 1  ;;  %vm181_vm0 = vcmask 57344   ;;  %v422_v0 = vmov 0.0   ;;  %vm201_vm1 = vcmask 64512  }
   0xd   : > { %s353_s13 = sshll.u32 %s512_s9, 5  ;;  %s459_s16 = scalar_lea.vmem %s505_s1, %s512_s9 }
   0xe   : > { %s169_s19 = scalar_lea.vmem %s504_s0, %s353_s13  ;;  %182 = vst.msk [vmem:[%s459_s16] sm:$0x1] %vm181_vm0, %v422_v0  ;;  %s469_s22 = scalar_lea.vmem %s506_s2, %s512_s9 }
   0xf   : > { %v355_v1 = vld [vmem:[%s169_s19] sm:$0xff]   ;;  %v370_v2 = vld [vmem:[%s169_s19 + $0x8] sm:$0xff]   ;;  %v371_v3 = vld [vmem:[%s169_s19 + $0x10] sm:$0xff]   ;;  %183 = vst.msk [vmem:[%s469_s22] sm:$0x1] %vm181_vm0, %v422_v0 }
  0x10   : > { %v356_v4 = vunpack.c.l.bf16 %v355_v1  ;;  %v357_v5 = vunpack.c.h.bf16 %v355_v1  ;;  %v360_v6 = vunpack.c.l.bf16 %v370_v2  ;;  %v361_v7 = vunpack.c.h.bf16 %v370_v2  ;;  %v372_v9 = vld [vmem:[%s169_s19 + $0x18] sm:$0xff]  }
  0x11   : > { %v364_v8 = vunpack.c.l.bf16 %v371_v3  ;;  %v365_v13 = vunpack.c.h.bf16 %v371_v3  ;;  %v368_v19 = vunpack.c.l.bf16 %v372_v9  ;;  %v369_v29 = vunpack.c.h.bf16 %v372_v9 }
  0x12   : > { %v202_v10 = vsel %vm201_vm1, %v356_v4, 0.0  ;;  %v203_v11 = vsel %vm201_vm1, %v357_v5, 0.0  ;;  %v205_v12 = vsel %vm201_vm1, %v360_v6, 0.0  ;;  %v207_v15 = vsel %vm201_vm1, %v361_v7, 0.0 }
  0x13   : > { %v204_v14 = vadd.f32 %v203_v11, %v202_v10  ;;  %v227_v16 = vmul.f32 %v356_v4, %v356_v4  ;;  %v228_v17 = vmul.f32 %v357_v5, %v357_v5  ;;  %v229_v18 = vmul.f32 %v360_v6, %v360_v6 }
  0x14   : > { %v209_v21 = vsel %vm201_vm1, %v364_v8, 0.0  ;;  %v230_v22 = vmul.f32 %v361_v7, %v361_v7  ;;  %v231_v23 = vmul.f32 %v364_v8, %v364_v8  ;;  %v211_v30 = vsel %vm201_vm1, %v365_v13, 0.0 }
  0x15   : > { %v206_v20 = vadd.f32 %v205_v12, %v204_v14  ;;  %v235_v24 = vsel %vm201_vm1, %v227_v16, 0.0  ;;  %v236_v25 = vsel %vm201_vm1, %v228_v17, 0.0  ;;  %v238_v26 = vsel %vm201_vm1, %v229_v18, 0.0  ;;  %v200_v59 = vld [vmem:[%s459_s16] sm:$0x1] }
  0x16   : > { %v237_v28 = vadd.f32 %v236_v25, %v235_v24  ;;  %v232_v31 = vmul.f32 %v365_v13, %v365_v13  ;;  %v240_v32 = vsel %vm201_vm1, %v230_v22, 0.0  ;;  %v213_v35 = vsel %vm201_vm1, %v368_v19, 0.0  ;;  %v226_v0 = vld [vmem:[%s469_s22] sm:$0x1] }
  0x17   : > { %v208_v27 = vadd.f32 %v207_v15, %v206_v20  ;;  %v233_v36 = vmul.f32 %v368_v19, %v368_v19  ;;  %v242_v37 = vsel %vm201_vm1, %v231_v23, 0.0  ;;  %v215_v40 = vsel %vm201_vm1, %v369_v29, 0.0 }
  0x18   : > { %v239_v34 = vadd.f32 %v238_v26, %v237_v28  ;;  %v234_v41 = vmul.f32 %v369_v29, %v369_v29  ;;  %v244_v42 = vsel %vm201_vm1, %v232_v31, 0.0 }
  0x19   : > { %v210_v33 = vadd.f32 %v209_v21, %v208_v27  ;;  %v246_v45 = vsel %vm201_vm1, %v233_v36, 0.0 }
  0x1a   : > { %v241_v39 = vadd.f32 %v240_v32, %v239_v34  ;;  %v248_v48 = vsel %vm201_vm1, %v234_v41, 0.0 }
  0x1b   : > { %v212_v38 = vadd.f32 %v211_v30, %v210_v33 }
  0x1c   : > { %v243_v44 = vadd.f32 %v242_v37, %v241_v39 }
  0x1d   : > { %v214_v43 = vadd.f32 %v213_v35, %v212_v38 }
  0x1e   : > { %v245_v47 = vadd.f32 %v244_v42, %v243_v44 }
  0x1f   : > { %v216_v46 = vadd.f32 %v215_v40, %v214_v43 }
  0x20   : > { %v247_v50 = vadd.f32 %v246_v45, %v245_v47 }
  0x21   : > { %v217_v49 = vrot.slane %v216_v46, 4 }
  0x22   : > { %v249_v52 = vadd.f32 %v248_v48, %v247_v50 }
  0x23   : > { %v218_v51 = vadd.f32 %v217_v49, %v216_v46 }
  0x24   : > { %v250_v54 = vrot.slane %v249_v52, 4 }
  0x25   : > { %v219_v53 = vrot.slane %v218_v51, 2 }
  0x26   : > { %v251_v56 = vadd.f32 %v250_v54, %v249_v52 }
  0x27   : > { %v220_v55 = vadd.f32 %v219_v53, %v218_v51 }
  0x28   : > { %v252_v58 = vrot.slane %v251_v56, 2 }
  0x29   : > { %v221_v57 = vrot.slane %v220_v55, 1 }
  0x2a   : > { %v253_v61 = vadd.f32 %v252_v58, %v251_v56 }
  0x2b   : > { %v222_v60 = vadd.f32 %v221_v57, %v220_v55 }
  0x2c   : > { %v254_v63 = vrot.slane %v253_v61, 1 }
  0x2d   : > { %v223_v62 = vadd.f32 %v222_v60, %v200_v59 }
  0x2e   : > { %v255_v1 = vadd.f32 %v254_v63, %v253_v61 }
  0x2f   : > { %225 = vst.msk [vmem:[%s459_s16] sm:$0x1] %vm181_vm0, %v223_v62 }
  0x30   : > { %v256_v2 = vadd.f32 %v255_v1, %v226_v0 }
  0x32   : > { %257 = vst.msk [vmem:[%s469_s22] sm:$0x1] %vm181_vm0, %v256_v2 }
  0x33 PF: > { %s13_s11 = sadd.s32 1, %s420_s11   ;;  %s507_s9 = smov %s416_s10 }
  0x34   : > { %p10_p5 = scmp.ge.s32.totalorder %s13_s11, 4   ;;  %s508_s10 = smov %s510_s12 }
  0x36   :  { %12 = sbr.rel (!%p10_p5) target bundleno = 2 (0x2), region = 70 }

// kernel: fwd.24
= control target key start
LH: loop header
LB: loop body
LE: loop exit
PB: predicated region body
PF: predicated region fallthrough
CT: control target
= control target key end

     0   :  { %s648_s9 = smov 0   ;;  %s650_s10 = smov 0   ;;  %s699_s0 = inlined_call_operand.vmem [shape: bf16[128,72], index: 0, kind: input, shape index: {}]   ;;  %s700_s1 = inlined_call_operand.vmem [shape: bf16[72,128], index: 1, kind: input, shape index: {}]   ;;  %s701_s2 = inlined_call_operand.vmem [shape: bf16[128,128], index: 2, kind: output, shape index: {}]  }
   0x1   :  { %s652_s11 = smov 0  }
   0x2 LB: > { %s31_s12 = sadd.s32 1, %s627_s10  ;;  %p496_p0 = scmp.ge.s32.totalorder %s631_s11, 1  ;;  %s631_s11 = sphi %s652_s11, %s12_s11   ;;  %s627_s10 = sphi %s650_s10, %s703_s10   ;;  %s623_s9 = sphi %s648_s9, %s702_s9  }
   0x3   : > { %p33_p1 = scmp.ge.s32.totalorder %s31_s12, 2  ;;  %p155_p2 = scmp.lt.s32.totalorder %s631_s11, 3 }
   0x5   : > { %s705_s12 = smov (%p33_p1, %s31_s12), 0  ;;  %p156_p3 = pnand %p496_p0, %p155_p2 }
   0x6   : > { %s497_s15 = sshll.u32 (!%p156_p3), %s623_s9, 3 }
   0x7   : > { %159 = sbr.rel (%p156_p3) target bundleno = 182 (0xb6), region = 28  ;;  %p192_p4 = scmp.lt.s32.totalorder (!%p156_p3), %s497_s15, 15 }
   0xc   : > { %v255_v0 = vld [vmem:[%s700_s1 + $0x20] sm:$0xf]  ;;  %vm316_vm0 = vcmask 1043456   ;;  %v546_v4 = vld [vmem:[%s700_s1 + $0x18] sm:$0xff]  ;;  %v545_v5 = vld [vmem:[%s700_s1 + $0x10] sm:$0xff]  ;;  %s707_s15 = smov (!%p192_p4, %s497_s15), 15 }
   0xd   : > { %v293_v1 = vunpack.c.l.b16 %v255_v0  ;;  %v544_v6 = vld [vmem:[%s700_s1 + $0x8] sm:$0xff]  ;;  %s498_s22 = sshll.u32 %s707_s15, 2  ;;  %v543_v7 = vld [vmem:[%s700_s1] sm:$0xff]  ;;  %vm303_vm1 = vcmask 588800  }
   0xe   : > { %s198_s27 = scalar_lea.vmem %s699_s0, %s498_s22  ;;  %s216_s30 = scalar_lea.vmem %s701_s2, %s498_s22 }
   0xf   : > { %v298_v2 = vpack.c.b16 %v293_v1, %v293_v1  ;;  %v539_v8 = vld [vmem:[%s198_s27] sm:$0xff]  ;;  %v540_v9 = vld [vmem:[%s198_s27 + $0x8] sm:$0xff]  ;;  %v541_v10 = vld [vmem:[%s198_s27 + $0x10] sm:$0xff] }
  0x10   : > { %v542_v11 = vld [vmem:[%s198_s27 + $0x18] sm:$0xff] }
  0x11   : > { %v318_v3 = vsel %vm316_vm0, %v298_v2, 0 }
  0x12   : > { %323 = vmatpush.bf16.msra.mxu0 %v318_v3  ;;  %570 = vmatpush.bf16.msra.mxu1 %v318_v3 }
  0x13   : > { %571 = vmatpush.bf16.msra.mxu2 %v318_v3  ;;  %572 = vmatpush.bf16.msra.mxu3 %v318_v3 }
  0x16   : > { %324 = vmatpush.bf16.msra.mxu0 %v546_v4  ;;  %573 = vmatpush.bf16.msra.mxu1 %v546_v4 }
  0x17   : > { %574 = vmatpush.bf16.msra.mxu2 %v546_v4  ;;  %575 = vmatpush.bf16.msra.mxu3 %v546_v4 }
  0x1a   : > { %325 = vmatpush.bf16.msra.mxu0 %v545_v5  ;;  %576 = vmatpush.bf16.msra.mxu1 %v545_v5 }
  0x1b   : > { %577 = vmatpush.bf16.msra.mxu2 %v545_v5  ;;  %578 = vmatpush.bf16.msra.mxu3 %v545_v5 }
  0x1e   : > { %326 = vmatpush.bf16.msra.mxu0 %v544_v6  ;;  %579 = vmatpush.bf16.msra.mxu1 %v544_v6 }
  0x1f   : > { %580 = vmatpush.bf16.msra.mxu2 %v544_v6  ;;  %581 = vmatpush.bf16.msra.mxu3 %v544_v6 }
  0x22   : > { %327 = vmatpush.bf16.msra.mxu0 %v543_v7  ;;  %582 = vmatpush.bf16.msra.mxu1 %v543_v7 }
  0x23   : > { %583 = vmatpush.bf16.msra.mxu2 %v543_v7  ;;  %584 = vmatpush.bf16.msra.mxu3 %v543_v7 }
  0x25   : > { %533 = vmatmul.msk.bf16.vlgmr.msra.gmra.mxu0 %vm303_vm1, %v539_v8  ;;  %534 = vmatmul.msk.bf16.vlgmr.msra.gmra.mxu1 %vm303_vm1, %v540_v9 }
  0x26   : > { %535 = vmatmul.msk.bf16.vlgmr.msra.gmra.mxu2 %vm303_vm1, %v541_v10  ;;  %536 = vmatmul.msk.bf16.vlgmr.msra.gmra.mxu3 %vm303_vm1, %v542_v11 }
  0xa2   : > { %v329_v12 = vpop.f32.mrf.mxu0  ;;  %v334_v13 = vpop.f32.mrf.mxu1 }
  0xa9   : > { %v339_v14 = vpop.f32.mrf.mxu2  ;;  %v344_v15 = vpop.f32.mrf.mxu3 }
  0xaa   : > { %v331_v16 = vpop.f32.mrf.mxu0  ;;  %v336_v17 = vpop.f32.mrf.mxu1 }
  0xab   : > { %v550_v18 = vpack.c.bf16 %v331_v16, %v329_v12  ;;  %v555_v19 = vpack.c.bf16 %v336_v17, %v334_v13 }
  0xad   : > { %551 = vst [vmem:[%s216_s30] sm:$0xff] %v550_v18  }
  0xae   : > { %567 = vst [vmem:[%s216_s30 + $0x8] sm:$0xff] %v555_v19  }
  0xb1   : > { %v341_v20 = vpop.f32.mrf.mxu2  ;;  %v346_v21 = vpop.f32.mrf.mxu3 }
  0xb2   : > { %v560_v22 = vpack.c.bf16 %v341_v20, %v339_v14  ;;  %v565_v23 = vpack.c.bf16 %v346_v21, %v344_v15 }
  0xb4   : > { %568 = vst [vmem:[%s216_s30 + $0x10] sm:$0xff] %v560_v22  }
  0xb5   : > { %569 = vst [vmem:[%s216_s30 + $0x18] sm:$0xff] %v565_v23  }
  0xb6 PF: > { %s12_s11 = sadd.s32 1, %s631_s11   ;;  %s702_s9 = smov %s627_s10 }
  0xb7   : > { %p9_p5 = scmp.ge.s32.totalorder %s12_s11, 4   ;;  %s703_s10 = smov %s705_s12 }
  0xb9   :  { %11 = sbr.rel (!%p9_p5) target bundleno = 2 (0x2), region = 69 }

// kernel: fwd.26
= control target key start
LH: loop header
LB: loop body
LE: loop exit
PB: predicated region body
PF: predicated region fallthrough
CT: control target
= control target key end

     0   :  { %s510_s12 = smov 0   ;;  %s512_s13 = smov 0   ;;  %s566_s0 = inlined_call_operand.vmem [shape: bf16[2,64,8], index: 0, kind: input, shape index: {}]   ;;  %s567_s1 = inlined_call_operand.vmem [shape: f32[2,1,8], index: 1, kind: input, shape index: {}]   ;;  %s568_s2 = inlined_call_operand.vmem [shape: f32[2,1,8], index: 2, kind: input, shape index: {}]   ;;  %s569_s3 = inlined_call_operand.vmem [shape: bf16[2,64,8], index: 3, kind: output, shape index: {}]  }
   0x1   :  { %s514_s14 = smov 0  }
   0x2 LB: > { %s25_s15 = sadd.s32 1, %s484_s13  ;;  %p412_p0 = scmp.ge.s32.totalorder %s488_s14, 1  ;;  %s488_s14 = sphi %s514_s14, %s13_s14   ;;  %s484_s13 = sphi %s512_s13, %s571_s13   ;;  %s480_s12 = sphi %s510_s12, %s570_s12  }
   0x3   : > { %p27_p1 = scmp.ge.s32.totalorder %s25_s15, 2  ;;  %p174_p2 = scmp.lt.s32.totalorder %s488_s14, 3 }
   0x5   : > { %s573_s15 = smov (%p27_p1, %s25_s15), 0  ;;  %p175_p3 = pnand %p412_p0, %p174_p2 }
   0x6   : > { %p213_p4 = scmp.lt.s32.totalorder (!%p175_p3), %s480_s12, 1 }
   0x7   : > { %178 = sbr.rel (%p175_p3) target bundleno = 34 (0x22), region = 32 }
   0xc   : > { %s575_s12 = smov (!%p213_p4, %s480_s12), 1  ;;  %vm294_vm0 = vcmask 60416  }
   0xd   : > { %s419_s16 = sshll.u32 %s575_s12, 5  ;;  %s224_s19 = scalar_lea.vmem %s567_s1, %s575_s12 }
   0xe   : > { %s220_s22 = scalar_lea.vmem %s566_s0, %s419_s16  ;;  %s227_s25 = scalar_lea.vmem %s568_s2, %s575_s12  ;;  %v464_v0 = vld [vmem:[%s224_s19] ss:$0 sm:$0xff] }
   0xf   : > { %v422_v1 = vld [vmem:[%s220_s22] sm:$0xff]   ;;  %v437_v5 = vld [vmem:[%s220_s22 + $0x8] sm:$0xff]   ;;  %v438_v6 = vld [vmem:[%s220_s22 + $0x10] sm:$0xff]   ;;  %s236_s28 = scalar_lea.vmem %s569_s3, %s419_s16 }
  0x10   : > { %v465_v2 = vld [vmem:[%s227_s25] ss:$0 sm:$0xff]  ;;  %v423_v3 = vunpack.c.l.bf16 %v422_v1  ;;  %v424_v4 = vunpack.c.h.bf16 %v422_v1  ;;  %v439_v7 = vld [vmem:[%s220_s22 + $0x18] sm:$0xff]   ;;  %v427_v8 = vunpack.c.l.bf16 %v437_v5  ;;  %v428_v9 = vunpack.c.h.bf16 %v437_v5 }
  0x11   : > { %v431_v10 = vunpack.c.l.bf16 %v438_v6  ;;  %v432_v11 = vunpack.c.h.bf16 %v438_v6  ;;  %v435_v14 = vunpack.c.l.bf16 %v439_v7  ;;  %v436_v15 = vunpack.c.h.bf16 %v439_v7 }
  0x12   : > { %v258_v12 = vmul.f32 %v464_v0, %v423_v3  ;;  %v259_v13 = vmul.f32 %v464_v0, %v424_v4  ;;  %v260_v16 = vmul.f32 %v464_v0, %v427_v8  ;;  %v261_v17 = vmul.f32 %v464_v0, %v428_v9 }
  0x13   : > { %v262_v18 = vmul.f32 %v464_v0, %v431_v10  ;;  %v263_v19 = vmul.f32 %v464_v0, %v432_v11  ;;  %v264_v22 = vmul.f32 %v464_v0, %v435_v14  ;;  %v265_v23 = vmul.f32 %v464_v0, %v436_v15 }
  0x14   : > { %v270_v20 = vadd.f32 %v465_v2, %v258_v12  ;;  %v271_v21 = vadd.f32 %v465_v2, %v259_v13  ;;  %v272_v24 = vadd.f32 %v465_v2, %v260_v16  ;;  %v273_v25 = vadd.f32 %v465_v2, %v261_v17 }
  0x15   : > { %v274_v26 = vadd.f32 %v465_v2, %v262_v18  ;;  %v275_v27 = vadd.f32 %v465_v2, %v263_v19  ;;  %v276_v30 = vadd.f32 %v465_v2, %v264_v22  ;;  %v277_v31 = vadd.f32 %v465_v2, %v265_v23 }
  0x16   : > { %v278_v28 = vmax.f32 %v270_v20, 0.0  ;;  %v279_v29 = vmax.f32 %v271_v21, 0.0  ;;  %v280_v32 = vmax.f32 %v272_v24, 0.0  ;;  %v281_v33 = vmax.f32 %v273_v25, 0.0 }
  0x17   : > { %v282_v34 = vmax.f32 %v274_v26, 0.0  ;;  %v283_v35 = vmax.f32 %v275_v27, 0.0  ;;  %v284_v38 = vmax.f32 %v276_v30, 0.0  ;;  %v285_v41 = vmax.f32 %v277_v31, 0.0 }
  0x18   : > { %v286_v36 = vpack.c.bf16 %v278_v28, %v278_v28  ;;  %v287_v37 = vpack.c.bf16 %v279_v29, %v279_v29  ;;  %v288_v39 = vpack.c.bf16 %v280_v32, %v280_v32  ;;  %v289_v40 = vpack.c.bf16 %v281_v33, %v281_v33 }
  0x19   : > { %v290_v42 = vpack.c.bf16 %v282_v34, %v282_v34  ;;  %v291_v43 = vpack.c.bf16 %v283_v35, %v283_v35  ;;  %v292_v44 = vpack.c.bf16 %v284_v38, %v284_v38  ;;  %v293_v45 = vpack.c.bf16 %v285_v41, %v285_v41 }
  0x1a   : > { %295 = vst.msk [vmem:[%s236_s28] sm:$0xf] %vm294_vm0, %v286_v36 }
  0x1b   : > { %296 = vst.msk [vmem:[%s236_s28 + $0x4] sm:$0xf] %vm294_vm0, %v287_v37 }
  0x1c   : > { %297 = vst.msk [vmem:[%s236_s28 + $0x8] sm:$0xf] %vm294_vm0, %v288_v39 }
  0x1d   : > { %298 = vst.msk [vmem:[%s236_s28 + $0xc] sm:$0xf] %vm294_vm0, %v289_v40 }
  0x1e   : > { %299 = vst.msk [vmem:[%s236_s28 + $0x10] sm:$0xf] %vm294_vm0, %v290_v42 }
  0x1f   : > { %300 = vst.msk [vmem:[%s236_s28 + $0x14] sm:$0xf] %vm294_vm0, %v291_v43 }
  0x20   : > { %301 = vst.msk [vmem:[%s236_s28 + $0x18] sm:$0xf] %vm294_vm0, %v292_v44 }
  0x21   : > { %302 = vst.msk [vmem:[%s236_s28 + $0x1c] sm:$0xf] %vm294_vm0, %v293_v45 }
  0x22 PF: > { %s13_s14 = sadd.s32 1, %s488_s14   ;;  %s570_s12 = smov %s484_s13 }
  0x23   : > { %p10_p5 = scmp.ge.s32.totalorder %s13_s14, 4   ;;  %s571_s13 = smov %s573_s15 }
  0x25   :  { %12 = sbr.rel (!%p10_p5) target bundleno = 2 (0x2), region = 68 }

// kernel: fwd.32
= control target key start
LH: loop header
LB: loop body
LE: loop exit
PB: predicated region body
PF: predicated region fallthrough
CT: control target
= control target key end

     0   :  { %s642_s15 = smov 0   ;;  %s644_s16 = smov 0   ;;  %s697_s0 = inlined_call_operand.vmem [shape: bf16[2,64,32], index: 0, kind: input, shape index: {}]   ;;  %s698_s1 = inlined_call_operand.vmem [shape: bf16[2,64,32], index: 1, kind: input, shape index: {}]   ;;  %s699_s2 = inlined_call_operand.vmem [shape: f32[2,1,32], index: 2, kind: input, shape index: {}]   ;;  %s700_s3 = inlined_call_operand.vmem [shape: f32[2,1,32], index: 3, kind: input, shape index: {}]   ;;  %s701_s4 = inlined_call_operand.vmem [shape: bf16[2,64,32], index: 4, kind: output, shape index: {}]  }
   0x1   :  { %s646_s17 = smov 0  }
   0x2 LB: > { %s26_s18 = sadd.s32 1, %s611_s16  ;;  %p517_p0 = scmp.ge.s32.totalorder %s615_s17, 1  ;;  %s615_s17 = sphi %s646_s17, %s14_s17   ;;  %s611_s16 = sphi %s644_s16, %s703_s16   ;;  %s607_s15 = sphi %s642_s15, %s702_s15  }
   0x3   : > { %p28_p1 = scmp.ge.s32.totalorder %s26_s18, 2  ;;  %p216_p2 = scmp.lt.s32.totalorder %s615_s17, 3 }
   0x5   : > { %s705_s18 = smov (%p28_p1, %s26_s18), 0  ;;  %p217_p3 = pnand %p517_p0, %p216_p2 }
   0x6   : > { %p266_p4 = scmp.lt.s32.totalorder (!%p217_p3), %s607_s15, 1 }
   0x7   : > { %220 = sbr.rel (%p217_p3) target bundleno = 37 (0x25), region = 36 }
   0xc   : > { %s707_s15 = smov (!%p266_p4, %s607_s15), 1  ;;  %vm381_vm0 = vcmask 257024  }
   0xd   : > { %s660_s19 = sshll.u32 %s707_s15, 5  ;;  %s287_s22 = scalar_lea.vmem %s699_s2, %s707_s15 }
   0xe   : > { %s273_s25 = scalar_lea.vmem %s697_s0, %s660_s19  ;;  %s283_s28 = scalar_lea.vmem %s698_s1, %s660_s19  ;;  %v591_v0 = vld [vmem:[%s287_s22] ss:$0 sm:$0xff] }
   0xf   : > { %s290_s5 = scalar_lea.vmem %s700_s3, %s707_s15  ;;  %v530_v1 = vld [vmem:[%s273_s25] sm:$0xff]   ;;  %v561_v3 = vld [vmem:[%s273_s25 + $0x8] sm:$0xff]   ;;  %v562_v14 = vld [vmem:[%s273_s25 + $0x10] sm:$0xff]   ;;  %s299_s8 = scalar_lea.vmem %s701_s4, %s660_s19 }
  0x10   : > { %v546_v2 = vld [vmem:[%s283_s28] sm:$0xff]   ;;  %v531_v4 = vunpack.c.l.bf16 %v530_v1  ;;  %v532_v7 = vunpack.c.h.bf16 %v530_v1  ;;  %v564_v9 = vld [vmem:[%s283_s28 + $0x8] sm:$0xff]   ;;  %v535_v10 = vunpack.c.l.bf16 %v561_v3  ;;  %v536_v12 = vunpack.c.h.bf16 %v561_v3  ;;  %v565_v15 = vld [vmem:[%s283_s28 + $0x10] sm:$0xff]  }
  0x11   : > { %v592_v5 = vld [vmem:[%s290_s5] ss:$0 sm:$0xff]  ;;  %v547_v6 = vunpack.c.l.bf16 %v546_v2  ;;  %v548_v8 = vunpack.c.h.bf16 %v546_v2  ;;  %v551_v11 = vunpack.c.l.bf16 %v564_v9  ;;  %v552_v13 = vunpack.c.h.bf16 %v564_v9  ;;  %v563_v16 = vld [vmem:[%s273_s25 + $0x18] sm:$0xff]  }
  0x12   : > { %v321_v17 = vmul.f32 %v591_v0, %v531_v4  ;;  %v322_v18 = vmul.f32 %v591_v0, %v532_v7  ;;  %v539_v19 = vunpack.c.l.bf16 %v562_v14  ;;  %v555_v20 = vunpack.c.l.bf16 %v565_v15  ;;  %v566_v21 = vld [vmem:[%s283_s28 + $0x18] sm:$0xff]  }
  0x13   : > { %v323_v22 = vmul.f32 %v591_v0, %v535_v10  ;;  %v324_v23 = vmul.f32 %v591_v0, %v536_v12  ;;  %v540_v24 = vunpack.c.h.bf16 %v562_v14  ;;  %v556_v25 = vunpack.c.h.bf16 %v565_v15 }
  0x14   : > { %v333_v26 = vadd.f32 %v592_v5, %v321_v17  ;;  %v334_v27 = vadd.f32 %v592_v5, %v322_v18  ;;  %v325_v28 = vmul.f32 %v591_v0, %v539_v19  ;;  %v543_v29 = vunpack.c.l.bf16 %v563_v16 }
  0x15   : > { %v335_v30 = vadd.f32 %v592_v5, %v323_v22  ;;  %v336_v31 = vadd.f32 %v592_v5, %v324_v23  ;;  %v326_v32 = vmul.f32 %v591_v0, %v540_v24  ;;  %v559_v33 = vunpack.c.l.bf16 %v566_v21 }
  0x16   : > { %v357_v34 = vadd.f32 %v547_v6, %v333_v26  ;;  %v358_v35 = vadd.f32 %v548_v8, %v334_v27  ;;  %v337_v36 = vadd.f32 %v592_v5, %v325_v28  ;;  %v327_v37 = vmul.f32 %v591_v0, %v543_v29 }
  0x17   : > { %v359_v38 = vadd.f32 %v551_v11, %v335_v30  ;;  %v360_v39 = vadd.f32 %v552_v13, %v336_v31  ;;  %v338_v40 = vadd.f32 %v592_v5, %v326_v32  ;;  %v544_v41 = vunpack.c.h.bf16 %v563_v16 }
  0x18   : > { %v365_v42 = vmax.f32 %v357_v34, 0.0  ;;  %v366_v43 = vmax.f32 %v358_v35, 0.0  ;;  %v361_v44 = vadd.f32 %v555_v20, %v337_v36  ;;  %v339_v45 = vadd.f32 %v592_v5, %v327_v37 }
  0x19   : > { %v367_v46 = vmax.f32 %v359_v38, 0.0  ;;  %v368_v47 = vmax.f32 %v360_v39, 0.0  ;;  %v362_v48 = vadd.f32 %v556_v25, %v338_v40  ;;  %v328_v49 = vmul.f32 %v591_v0, %v544_v41 }
  0x1a   : > { %v373_v50 = vpack.c.bf16 %v365_v42, %v365_v42  ;;  %v374_v51 = vpack.c.bf16 %v366_v43, %v366_v43  ;;  %v369_v52 = vmax.f32 %v361_v44, 0.0  ;;  %v363_v53 = vadd.f32 %v559_v33, %v339_v45 }
  0x1b   : > { %v375_v54 = vpack.c.bf16 %v367_v46, %v367_v46  ;;  %v376_v55 = vpack.c.bf16 %v368_v47, %v368_v47  ;;  %v370_v56 = vmax.f32 %v362_v48, 0.0  ;;  %v340_v57 = vadd.f32 %v592_v5, %v328_v49 }
  0x1c   : > { %382 = vst.msk [vmem:[%s299_s8] sm:$0xf] %vm381_vm0, %v373_v50  ;;  %v377_v58 = vpack.c.bf16 %v369_v52, %v369_v52  ;;  %v371_v59 = vmax.f32 %v363_v53, 0.0  ;;  %v560_v60 = vunpack.c.h.bf16 %v566_v21 }
  0x1d   : > { %383 = vst.msk [vmem:[%s299_s8 + $0x4] sm:$0xf] %vm381_vm0, %v374_v51  ;;  %v378_v61 = vpack.c.bf16 %v370_v56, %v370_v56 }
  0x1e   : > { %384 = vst.msk [vmem:[%s299_s8 + $0x8] sm:$0xf] %vm381_vm0, %v375_v54  ;;  %v379_v62 = vpack.c.bf16 %v371_v59, %v371_v59  ;;  %v364_v63 = vadd.f32 %v560_v60, %v340_v57 }
  0x1f   : > { %385 = vst.msk [vmem:[%s299_s8 + $0xc] sm:$0xf] %vm381_vm0, %v376_v55 }
  0x20   : > { %386 = vst.msk [vmem:[%s299_s8 + $0x10] sm:$0xf] %vm381_vm0, %v377_v58  ;;  %v372_v0 = vmax.f32 %v364_v63, 0.0 }
  0x21   : > { %387 = vst.msk [vmem:[%s299_s8 + $0x14] sm:$0xf] %vm381_vm0, %v378_v61 }
  0x22   : > { %388 = vst.msk [vmem:[%s299_s8 + $0x18] sm:$0xf] %vm381_vm0, %v379_v62  ;;  %v380_v1 = vpack.c.bf16 %v372_v0, %v372_v0 }
  0x24   : > { %389 = vst.msk [vmem:[%s299_s8 + $0x1c] sm:$0xf] %vm381_vm0, %v380_v1 }
  0x25 PF: > { %s14_s17 = sadd.s32 1, %s615_s17   ;;  %s702_s15 = smov %s611_s16 }
  0x26   : > { %p11_p5 = scmp.ge.s32.totalorder %s14_s17, 4   ;;  %s703_s16 = smov %s705_s18 }
  0x28   :  { %13 = sbr.rel (!%p11_p5) target bundleno = 2 (0x2), region = 75 }

// kernel: fwd.27
= control target key start
LH: loop header
LB: loop body
LE: loop exit
PB: predicated region body
PF: predicated region fallthrough
CT: control target
= control target key end

     0   :  { %s576_s9 = smov 0   ;;  %s578_s10 = smov 0   ;;  %s612_s0 = inlined_call_operand.vmem [shape: bf16[128,8], index: 0, kind: input, shape index: {}]   ;;  %s613_s1 = inlined_call_operand.vmem [shape: bf16[8,128], index: 1, kind: input, shape index: {}]   ;;  %s614_s2 = inlined_call_operand.vmem [shape: bf16[128,128], index: 2, kind: output, shape index: {}]  }
   0x1   :  { %s580_s11 = smov 0  }
   0x2 LB: > { %s31_s12 = sadd.s32 1, %s555_s10  ;;  %p456_p0 = scmp.ge.s32.totalorder %s559_s11, 1  ;;  %s559_s11 = sphi %s580_s11, %s12_s11   ;;  %s555_s10 = sphi %s578_s10, %s616_s10   ;;  %s551_s9 = sphi %s576_s9, %s615_s9  }
   0x3   : > { %p33_p1 = scmp.ge.s32.totalorder %s31_s12, 2  ;;  %p153_p2 = scmp.lt.s32.totalorder %s559_s11, 3 }
   0x5   : > { %s618_s12 = smov (%p33_p1, %s31_s12), 0  ;;  %p154_p3 = pnand %p456_p0, %p153_p2 }
   0x6   : > { %s457_s15 = sshll.u32 (!%p154_p3), %s551_s9, 3 }
   0x7   : > { %157 = sbr.rel (%p154_p3) target bundleno = 162 (0xa2), region = 28  ;;  %p189_p4 = scmp.lt.s32.totalorder (!%p154_p3), %s457_s15, 15 }
   0xc   : > { %v242_v0 = vld [vmem:[%s613_s1] sm:$0xf]  ;;  %vm276_vm0 = vcmask 1043456   ;;  %s620_s15 = smov (!%p189_p4, %s457_s15), 15  ;;  %vm263_vm1 = vcmask 64512  }
   0xd   : > { %v278_v1 = vsel %vm276_vm0, %v242_v0, 0  ;;  %s458_s16 = sshll.u32 %s620_s15, 2 }
   0xe   : > { %287 = vmatpush.bf16.msra.mxu0 %v278_v1  ;;  %510 = vmatpush.bf16.msra.mxu1 %v278_v1  ;;  %s195_s19 = scalar_lea.vmem %s612_s0, %s458_s16  ;;  %s211_s22 = scalar_lea.vmem %s614_s2, %s458_s16 }
   0xf   : > { %511 = vmatpush.bf16.msra.mxu2 %v278_v1  ;;  %512 = vmatpush.bf16.msra.mxu3 %v278_v1  ;;  %v483_v2 = vld [vmem:[%s195_s19] sm:$0xff]  ;;  %v484_v3 = vld [vmem:[%s195_s19 + $0x8] sm:$0xff]  ;;  %v485_v4 = vld [vmem:[%s195_s19 + $0x10] sm:$0xff] }
  0x10   : > { %v486_v5 = vld [vmem:[%s195_s19 + $0x18] sm:$0xff] }
  0x11   : > { %477 = vmatmul.msk.bf16.vlgmr.msra.gmra.mxu0 %vm263_vm1, %v483_v2  ;;  %478 = vmatmul.msk.bf16.vlgmr.msra.gmra.mxu1 %vm263_vm1, %v484_v3 }
  0x12   : > { %479 = vmatmul.msk.bf16.vlgmr.msra.gmra.mxu2 %vm263_vm1, %v485_v4  ;;  %480 = vmatmul.msk.bf16.vlgmr.msra.gmra.mxu3 %vm263_vm1, %v486_v5 }
  0x8e   : > { %v289_v6 = vpop.f32.mrf.mxu0  ;;  %v294_v7 = vpop.f32.mrf.mxu1 }
  0x95   : > { %v299_v8 = vpop.f32.mrf.mxu2  ;;  %v304_v9 = vpop.f32.mrf.mxu3 }
  0x96   : > { %v291_v10 = vpop.f32.mrf.mxu0  ;;  %v296_v11 = vpop.f32.mrf.mxu1 }
  0x97   : > { %v490_v12 = vpack.c.bf16 %v291_v10, %v289_v6  ;;  %v495_v13 = vpack.c.bf16 %v296_v11, %v294_v7 }
  0x99   : > { %491 = vst [vmem:[%s211_s22] sm:$0xff] %v490_v12  }
  0x9a   : > { %507 = vst [vmem:[%s211_s22 + $0x8] sm:$0xff] %v495_v13  }
  0x9d   : > { %v301_v14 = vpop.f32.mrf.mxu2  ;;  %v306_v15 = vpop.f32.mrf.mxu3 }
  0x9e   : > { %v500_v16 = vpack.c.bf16 %v301_v14, %v299_v8  ;;  %v505_v17 = vpack.c.bf16 %v306_v15, %v304_v9 }
  0xa0   : > { %508 = vst [vmem:[%s211_s22 + $0x10] sm:$0xff] %v500_v16  }
  0xa1   : > { %509 = vst [vmem:[%s211_s22 + $0x18] sm:$0xff] %v505_v17  }
  0xa2 PF: > { %s12_s11 = sadd.s32 1, %s559_s11   ;;  %s615_s9 = smov %s555_s10 }
  0xa3   : > { %p9_p5 = scmp.ge.s32.totalorder %s12_s11, 4   ;;  %s616_s10 = smov %s618_s12 }
  0xa5   :  { %11 = sbr.rel (!%p9_p5) target bundleno = 2 (0x2), region = 69 }

// kernel: fwd.33
= control target key start
LH: loop header
LB: loop body
LE: loop exit
PB: predicated region body
PF: predicated region fallthrough
CT: control target
= control target key end

     0   :  { %s605_s9 = smov 0   ;;  %s607_s10 = smov 0   ;;  %s644_s0 = inlined_call_operand.vmem [shape: bf16[128,32], index: 0, kind: input, shape index: {}]   ;;  %s645_s1 = inlined_call_operand.vmem [shape: bf16[32,128], index: 1, kind: input, shape index: {}]   ;;  %s646_s2 = inlined_call_operand.vmem [shape: bf16[128,128], index: 2, kind: output, shape index: {}]  }
   0x1   :  { %s609_s11 = smov 0  }
   0x2 LB: > { %s31_s12 = sadd.s32 1, %s584_s10  ;;  %p472_p0 = scmp.ge.s32.totalorder %s588_s11, 1  ;;  %s588_s11 = sphi %s609_s11, %s12_s11   ;;  %s584_s10 = sphi %s607_s10, %s648_s10   ;;  %s580_s9 = sphi %s605_s9, %s647_s9  }
   0x3   : > { %p33_p1 = scmp.ge.s32.totalorder %s31_s12, 2  ;;  %p155_p2 = scmp.lt.s32.totalorder %s588_s11, 3 }
   0x5   : > { %s650_s12 = smov (%p33_p1, %s31_s12), 0  ;;  %p156_p3 = pnand %p472_p0, %p155_p2 }
   0x6   : > { %s473_s15 = sshll.u32 (!%p156_p3), %s580_s9, 3 }
   0x7   : > { %159 = sbr.rel (%p156_p3) target bundleno = 165 (0xa5), region = 28  ;;  %p192_p4 = scmp.lt.s32.totalorder (!%p156_p3), %s473_s15, 15 }
   0xc   : > { %v512_v0 = vld [vmem:[%s645_s1 + $0x8] sm:$0xff]  ;;  %v511_v1 = vld [vmem:[%s645_s1] sm:$0xff]  ;;  %s652_s15 = smov (!%p192_p4, %s473_s15), 15  ;;  %vm283_vm0 = vcmask 261120  }
   0xd   : > { %302 = vmatpush.bf16.msra.mxu0 %v512_v0  ;;  %536 = vmatpush.bf16.msra.mxu1 %v512_v0  ;;  %s474_s18 = sshll.u32 %s652_s15, 2 }
   0xe   : > { %537 = vmatpush.bf16.msra.mxu2 %v512_v0  ;;  %538 = vmatpush.bf16.msra.mxu3 %v512_v0  ;;  %s198_s21 = scalar_lea.vmem %s644_s0, %s474_s18  ;;  %s216_s24 = scalar_lea.vmem %s646_s2, %s474_s18 }
   0xf   : > { %v507_v2 = vld [vmem:[%s198_s21] sm:$0xff]  ;;  %v508_v3 = vld [vmem:[%s198_s21 + $0x8] sm:$0xff]  ;;  %v509_v4 = vld [vmem:[%s198_s21 + $0x10] sm:$0xff] }
  0x10   : > { %v510_v5 = vld [vmem:[%s198_s21 + $0x18] sm:$0xff] }
  0x11   : > { %303 = vmatpush.bf16.msra.mxu0 %v511_v1  ;;  %539 = vmatpush.bf16.msra.mxu1 %v511_v1 }
  0x12   : > { %540 = vmatpush.bf16.msra.mxu2 %v511_v1  ;;  %541 = vmatpush.bf16.msra.mxu3 %v511_v1 }
  0x14   : > { %501 = vmatmul.msk.bf16.vlgmr.msra.gmra.mxu0 %vm283_vm0, %v507_v2  ;;  %502 = vmatmul.msk.bf16.vlgmr.msra.gmra.mxu1 %vm283_vm0, %v508_v3 }
  0x15   : > { %503 = vmatmul.msk.bf16.vlgmr.msra.gmra.mxu2 %vm283_vm0, %v509_v4  ;;  %504 = vmatmul.msk.bf16.vlgmr.msra.gmra.mxu3 %vm283_vm0, %v510_v5 }
  0x91   : > { %v305_v6 = vpop.f32.mrf.mxu0  ;;  %v310_v7 = vpop.f32.mrf.mxu1 }
  0x98   : > { %v315_v8 = vpop.f32.mrf.mxu2  ;;  %v320_v9 = vpop.f32.mrf.mxu3 }
  0x99   : > { %v307_v10 = vpop.f32.mrf.mxu0  ;;  %v312_v11 = vpop.f32.mrf.mxu1 }
  0x9a   : > { %v516_v12 = vpack.c.bf16 %v307_v10, %v305_v6  ;;  %v521_v13 = vpack.c.bf16 %v312_v11, %v310_v7 }
  0x9c   : > { %517 = vst [vmem:[%s216_s24] sm:$0xff] %v516_v12  }
  0x9d   : > { %533 = vst [vmem:[%s216_s24 + $0x8] sm:$0xff] %v521_v13  }
  0xa0   : > { %v317_v14 = vpop.f32.mrf.mxu2  ;;  %v322_v15 = vpop.f32.mrf.mxu3 }
  0xa1   : > { %v526_v16 = vpack.c.bf16 %v317_v14, %v315_v8  ;;  %v531_v17 = vpack.c.bf16 %v322_v15, %v320_v9 }
  0xa3   : > { %534 = vst [vmem:[%s216_s24 + $0x10] sm:$0xff] %v526_v16  }
  0xa4   : > { %535 = vst [vmem:[%s216_s24 + $0x18] sm:$0xff] %v531_v17  }
  0xa5 PF: > { %s12_s11 = sadd.s32 1, %s588_s11   ;;  %s647_s9 = smov %s584_s10 }
  0xa6   : > { %p9_p5 = scmp.ge.s32.totalorder %s12_s11, 4   ;;  %s648_s10 = smov %s650_s12 }
  0xa8   :  { %11 = sbr.rel (!%p9_p5) target bundleno = 2 (0x2), region = 69 }

// kernel: fwd.41
= control target key start
LH: loop header
LB: loop body
LE: loop exit
PB: predicated region body
PF: predicated region fallthrough
CT: control target
= control target key end

     0   :  { %9 = vsyncpa [#allocation3], 0  ;;  %s853_s0 = inlined_call_operand.vmem [shape: bf16[2,64,32], index: 0, kind: input, shape index: {}]   ;;  %s854_s1 = inlined_call_operand.vmem [shape: bf16[2,64,32], index: 1, kind: input, shape index: {}]   ;;  %s855_s2 = inlined_call_operand.vmem [shape: f32[2,1,32], index: 2, kind: input, shape index: {}]   ;;  %s856_s3 = inlined_call_operand.vmem [shape: f32[2,1,32], index: 3, kind: input, shape index: {}]   ;;  %s857_s4 = inlined_call_operand.hbm [shape: bf16[2,64,32], index: 4, kind: output, shape index: {}]  }
   0x1   :  { %11 = vsyncpa [#allocation3 + $0x1], 0  ;;  %s735_s15 = smov 0   ;;  %s737_s16 = smov 0  }
   0x2   :  { %s739_s17 = smov 0   ;;  %s741_s18 = smov 0  }
   0x3   :  { %s743_s19 = smov 0   ;;  %s745_s20 = smov 0  }
   0x4 LB: > { %s513_s21 = sadd.s32 4294967295, %s706_s20   ;;  %s514_s22 = sadd.s32 4294967294, %s706_s20   ;;  %s706_s20 = sphi %s745_s20, %s17_s20   ;;  %s702_s19 = sphi %s743_s19, %s864_s19   ;;  %s698_s18 = sphi %s741_s18, %s863_s18   ;;  %s694_s17 = sphi %s739_s17, %s862_s17   ;;  %s690_s16 = sphi %s737_s16, %s861_s16   ;;  %s686_s15 = sphi %s735_s15, %s860_s15  }
   0x5   : > { %s29_s23 = sadd.s32 1, %s702_s19  ;;  %s146_s24 = sadd.s32 1, %s694_s17 }
   0x6   : > { %p31_p0 = scmp.ge.s32.totalorder %s29_s23, 2  ;;  %p156_p1 = scmp.ne.s32.totalorder %s694_s17, %s690_s16 }
   0x7   : > { %p157_p2 = scmp.eq.s32.totalorder %s513_s21, 1  ;;  %p162_p3 = scmp.ne.s32.totalorder %s690_s16, %s686_s15 }
   0x8   : > { %s866_s23 = smov (%p31_p0, %s29_s23), 0  ;;  %p163_p5 = scmp.eq.s32.totalorder %s514_s22, 1 }
   0x9   : > { %p775_p4 = por %p157_p2, %p156_p1  ;;  %s141_s26 = ssub.s32 %s702_s19, %s866_s23 }
   0xa   : > { %p517_p6 = scmp.ge.s32.totalorder %s706_s20, 1  ;;  %p144_p7 = scmp.eq.s32.totalorder %s141_s26, 0 }
   0xb   : > { %p782_p8 = por %p163_p5, %p162_p3  ;;  %p219_p9 = scmp.lt.s32.totalorder %s706_s20, 3 }
   0xc   : > { %s788_s28 = scalar_select %p144_p7, %s694_s17, %s146_s24  }
   0xd   : > { %p220_p10 = pnand %p517_p6, %p219_p9 }
   0xe   : > { %p265_p11 = scmp.lt.s32.totalorder (!%p220_p10), %s698_s18, 1  ;;  %s261_s24 = sand.u32 (!%p220_p10), 1, %s690_s16  }
   0xf   : > { %223 = sbr.rel (%p220_p10) target bundleno = 49 (0x31), region = 36  ;;  %s518_s26 = sshll.u32 (!%p220_p10), %s261_s24, 5 }
  0x10   : > { %s381_s9 = scalar_lea.sflag (!%p220_p10), [#allocation3], %s261_s24  ;;  %s648_s14 = scalar_lea.hbm (!%p220_p10), %s857_s4, 64 }
  0x14   : > { %s266_s29 = scalar_select %p265_p11, %s698_s18, 1  ;;  %vm371_vm0 = vcmask 257024  }
  0x16   : > { %s528_s30 = sshll.u32 %s266_s29, 5  ;;  %s286_s7 = scalar_lea.vmem %s855_s2, %s266_s29 }
  0x17   : > { %s272_s10 = scalar_lea.vmem %s853_s0, %s528_s30  ;;  %s282_s13 = scalar_lea.vmem %s854_s1, %s528_s30  ;;  %v626_v0 = vld [vmem:[%s286_s7] ss:$0 sm:$0xff] }
  0x18   : > { %s289_s22 = scalar_lea.vmem %s856_s3, %s266_s29  ;;  %v532_v1 = vld [vmem:[%s272_s10] sm:$0xff]   ;;  %v563_v3 = vld [vmem:[%s272_s10 + $0x8] sm:$0xff]   ;;  %v564_v14 = vld [vmem:[%s272_s10 + $0x10] sm:$0xff]   ;;  %s530_s29 = sshll.u32 %s698_s18, 5 }
  0x19   : > { %v548_v2 = vld [vmem:[%s282_s13] sm:$0xff]   ;;  %v533_v4 = vunpack.c.l.bf16 %v532_v1  ;;  %v534_v7 = vunpack.c.h.bf16 %v532_v1  ;;  %v566_v9 = vld [vmem:[%s282_s13 + $0x8] sm:$0xff]   ;;  %v537_v10 = vunpack.c.l.bf16 %v563_v3  ;;  %v538_v12 = vunpack.c.h.bf16 %v563_v3  ;;  %v567_v15 = vld [vmem:[%s282_s13 + $0x10] sm:$0xff]   ;;  %s394_s6 = scalar_lea.hbm %s857_s4, %s530_s29  ;;  %s263_s7 = scalar_lea.vmem [#allocation2], %s518_s26 }
  0x1a   : > { %v627_v5 = vld [vmem:[%s289_s22] ss:$0 sm:$0xff]  ;;  %v549_v6 = vunpack.c.l.bf16 %v548_v2  ;;  %v550_v8 = vunpack.c.h.bf16 %v548_v2  ;;  %v553_v11 = vunpack.c.l.bf16 %v566_v9  ;;  %v554_v13 = vunpack.c.h.bf16 %v566_v9  ;;  %v565_v16 = vld [vmem:[%s272_s10 + $0x18] sm:$0xff]   ;;  %s395_s18 = sshll.u32 %s263_s7, 4  ;;  %s397_s8 = sshll.u32 %s394_s6, 4  ;;  %s396_s18 = int_to_ptr.vmem [resolvable:$true] %s395_s18  ;;  %s398_s8 = int_to_ptr.hbm [resolvable:$true] %s397_s8 }
  0x1b   : > { %v311_v17 = vmul.f32 %v626_v0, %v533_v4  ;;  %v312_v18 = vmul.f32 %v626_v0, %v534_v7  ;;  %v541_v19 = vunpack.c.l.bf16 %v564_v14  ;;  %v557_v20 = vunpack.c.l.bf16 %v567_v15  ;;  %v568_v21 = vld [vmem:[%s282_s13 + $0x18] sm:$0xff]   ;;  %s642_s10 = sshra.s32 %s398_s8, 4  ;;  %s643_s10 = int_to_ptr.hbm [resolvable:$true] %s642_s10 }
  0x1c   : > { %v313_v22 = vmul.f32 %v626_v0, %v537_v10  ;;  %v314_v23 = vmul.f32 %v626_v0, %v538_v12  ;;  %v542_v24 = vunpack.c.h.bf16 %v564_v14  ;;  %v558_v25 = vunpack.c.h.bf16 %v567_v15  ;;  %s644_s11 = scalar_lea.hbm %s643_s10, 32  ;;  %p649_p1 = scmp.lt.s32.totalorder %s643_s10, %s857_s4 }
  0x1d   : > { %v323_v26 = vadd.f32 %v627_v5, %v311_v17  ;;  %v324_v27 = vadd.f32 %v627_v5, %v312_v18  ;;  %v315_v28 = vmul.f32 %v626_v0, %v541_v19  ;;  %v545_v29 = vunpack.c.l.bf16 %v565_v16  ;;  %p645_p12 = scmp.ne.s32.totalorder %s643_s10, %s644_s11  ;;  %p650_p2 = scmp.lt.s32.totalorder %s648_s14, %s644_s11 }
  0x1e   : > { %v325_v30 = vadd.f32 %v627_v5, %v313_v22  ;;  %v326_v31 = vadd.f32 %v627_v5, %v314_v23  ;;  %v316_v32 = vmul.f32 %v626_v0, %v542_v24  ;;  %v561_v33 = vunpack.c.l.bf16 %v568_v21 }
  0x1f   : > { %v347_v34 = vadd.f32 %v549_v6, %v323_v26  ;;  %v348_v35 = vadd.f32 %v550_v8, %v324_v27  ;;  %v327_v36 = vadd.f32 %v627_v5, %v315_v28  ;;  %v317_v37 = vmul.f32 %v626_v0, %v545_v29  ;;  %p646_p13 = pnand %p645_p12, %p775_p4  ;;  %p651_p3 = por %p650_p2, %p649_p1 }
  0x20   : > { %v349_v38 = vadd.f32 %v553_v11, %v325_v30  ;;  %v350_v39 = vadd.f32 %v554_v13, %v326_v31  ;;  %v328_v40 = vadd.f32 %v627_v5, %v316_v32  ;;  %v546_v41 = vunpack.c.h.bf16 %v565_v16 }
  0x21   : > { %v355_v42 = vmax.f32 %v347_v34, 0.0  ;;  %v356_v43 = vmax.f32 %v348_v35, 0.0  ;;  %v351_v44 = vadd.f32 %v557_v20, %v327_v36  ;;  %v329_v45 = vadd.f32 %v627_v5, %v317_v37  ;;  %p647_p0 = pneg %p646_p13 }
  0x22   : > { %v357_v46 = vmax.f32 %v349_v38, 0.0  ;;  %v358_v47 = vmax.f32 %v350_v39, 0.0  ;;  %v352_v48 = vadd.f32 %v558_v25, %v328_v40  ;;  %v318_v49 = vmul.f32 %v626_v0, %v546_v41 }
  0x23   : > { %v363_v50 = vpack.c.bf16 %v355_v42, %v355_v42  ;;  %v364_v51 = vpack.c.bf16 %v356_v43, %v356_v43  ;;  %v359_v52 = vmax.f32 %v351_v44, 0.0  ;;  %v353_v53 = vadd.f32 %v561_v33, %v329_v45  ;;  %p652_p5 = pnand %p651_p3, %p647_p0 }
  0x24   : > { %v365_v54 = vpack.c.bf16 %v357_v46, %v357_v46  ;;  %v366_v55 = vpack.c.bf16 %v358_v47, %v358_v47  ;;  %v360_v56 = vmax.f32 %v352_v48, 0.0  ;;  %v330_v57 = vadd.f32 %v627_v5, %v318_v49 }
  0x25   : > { %372 = vst.msk [vmem:[%s263_s7] sm:$0xf] %vm371_vm0, %v363_v50  ;;  %v367_v58 = vpack.c.bf16 %v359_v52, %v359_v52  ;;  %v361_v59 = vmax.f32 %v353_v53, 0.0  ;;  %v562_v60 = vunpack.c.h.bf16 %v568_v21 }
  0x26   : > { %373 = vst.msk [vmem:[%s263_s7 + $0x4] sm:$0xf] %vm371_vm0, %v364_v51  ;;  %v368_v61 = vpack.c.bf16 %v360_v56, %v360_v56 }
  0x27   : > { %374 = vst.msk [vmem:[%s263_s7 + $0x8] sm:$0xf] %vm371_vm0, %v365_v54  ;;  %v369_v62 = vpack.c.bf16 %v361_v59, %v361_v59  ;;  %v354_v63 = vadd.f32 %v562_v60, %v330_v57 }
  0x28   : > { %375 = vst.msk [vmem:[%s263_s7 + $0xc] sm:$0xf] %vm371_vm0, %v366_v55 }
  0x29   : > { %376 = vst.msk [vmem:[%s263_s7 + $0x10] sm:$0xf] %vm371_vm0, %v367_v58  ;;  %v362_v0 = vmax.f32 %v354_v63, 0.0 }
  0x2a   : > { %377 = vst.msk [vmem:[%s263_s7 + $0x14] sm:$0xf] %vm371_vm0, %v368_v61 }
  0x2b   : > { %378 = vst.msk [vmem:[%s263_s7 + $0x18] sm:$0xf] %vm371_vm0, %v369_v62  ;;  %v370_v1 = vpack.c.bf16 %v362_v0, %v362_v0 }
  0x2d   : > { %379 = vst.msk [vmem:[%s263_s7 + $0x1c] sm:$0xf] %vm371_vm0, %v370_v1 }
  0x2e   : > { %655 = shalt.err (!%p652_p5)
}
  0x2f   : > { %s708_s24 = smov 64   ;;  %s709_s26 = smov 4  }
  0x30   : > { %569 = dma.vmem_to_hbm [thread:$0]  (%p775_p4), %s396_s18, 512, %s398_s8, %s381_s9, %s708_s24, %s708_s24, %s709_s26  }
  0x31 PF: > { %p575_p6 = scmp.ge.s32.totalorder %s706_s20, 2  ;;  %s412_s29 = sand.u32 1, %s686_s15  }
  0x32   : > { %s413_s30 = scalar_lea.sflag [#allocation3], %s412_s29 }
  0x33   : > { %p572_p7 = pnand %p575_p6, %p782_p8 }
  0x35   : > { %p573_p9 = pneg %p572_p7 }
  0x37   : > { %681 = dma.done.wait (%p573_p9), %s413_s30, 512  }
  0x38   : > { %683 = vsyncadd (%p573_p9), %s413_s30, 4294966784  ;;  %s17_s20 = sadd.s32 1, %s706_s20   ;;  %s860_s15 = smov %s690_s16 }
  0x39   : > { %p14_p10 = scmp.ge.s32.totalorder %s17_s20, 4   ;;  %s861_s16 = smov %s694_s17 }
  0x3a   : > { %s862_s17 = smov %s788_s28  ;;  %s863_s18 = smov %s702_s19 }
  0x3b   : > { %s864_s19 = smov %s866_s23  ;;  %16 = sbr.rel (!%p14_p10) target bundleno = 4 (0x4), region = 80 }
  0x40   :  { %419 = vsyncpa [#allocation3], 1 }
  0x41   :  { %421 = vsyncpa [#allocation3 + $0x1], 1 }

</bundles_post_ra>
